<compile_context>
chip_gen: v7x
topology: tpu7x:2x2x1
jax: 0.10.0
libtpu: 0.0.40
codegen_flags: <defaults>
</compile_context>

<pallas_src>
import functools

import jax
import jax.numpy as jnp
from jax.experimental import pallas as pl
from jax.experimental.pallas import tpu as pltpu


def _round_up(x, m):
    return (x + m - 1) // m * m


# ----------------------------------------------------------------------------
# Pallas kernel: the whole multi-layer LSTM, TT timesteps per grid step.
# ----------------------------------------------------------------------------
def _encoder_lstm_kernel(x_ref, w_ih_ref, w_hh_ref, b_ref, hf_ref, cf_ref,
                         act_sc, gates_sc, h_sc, c_sc, *,
                         seq_len, needs_mask, unrolled):
    """Fused multi-layer LSTM over one time block.

    x_ref    : (TT*Bp, Ep)   time-major flattened embedded inputs (compute dtype)
    w_ih_ref : (L, Dp, 4*Hp) input->gate weights, gate order [i,f,o,g] (compute dtype)
    w_hh_ref : (L, Hp, 4*Hp) recurrent weights                         (compute dtype)
    b_ref    : (L, 1, 4*Hp)  b_ih + b_hh (f32)
    hf_ref   : (L, Bp, Hp)   final hidden state (f32) -- written on the last grid step
    cf_ref   : (L, Bp, Hp)   final cell state   (f32) -- written on the last grid step
    act_sc   : (TT*Bp, Dp)   inter-layer activation handoff (compute dtype, VMEM)
    gates_sc : (TT*Bp, 4*Hp) hoisted input projection + bias (f32, VMEM)
    h_sc/c_sc: (L, Bp, Hp)   recurrent state, resident across the whole grid (f32, VMEM)
    """
    tc = pl.program_id(0)

    @pl.when(tc == 0)
    def _():
        h_sc[...] = jnp.zeros_like(h_sc)
        c_sc[...] = jnp.zeros_like(c_sc)

    num_layers, bp, hp = h_sc.shape
    rows, ep = x_ref.shape
    dp = act_sc.shape[1]
    tt = rows // bp
    cdt = act_sc.dtype                      # matmul compute dtype (f32 or bf16)

    # Layer-0 bulk input: the whole time block as one (TT*Bp, Dp) matrix.
    x_blk = x_ref[...].astype(cdt)
    if dp > ep:                             # only when embedding dim > hidden dim
        x_blk = jnp.pad(x_blk, ((0, 0), (0, dp - ep)))

    for l in range(num_layers):
        w_ih = w_ih_ref[l]                  # (Dp, 4*Hp)
        w_hh = w_hh_ref[l]                  # (Hp, 4*Hp)
        b = b_ref[l]                        # (1, 4*Hp) f32

        # --- Hoisted non-recurrent input projection (single large-M MXU matmul for
        #     all TT timesteps, bias folded in once) -- off the serial critical path.
        bulk_in = x_blk if l == 0 else act_sc[...]
        gates_sc[...] = jnp.dot(bulk_in, w_ih,
                                preferred_element_type=jnp.float32) + b

        write_next = l + 1 < num_layers

        def step(t, h, c):
            # Only the recurrent (Bp, Hp) x (Hp, 4*Hp) dot remains per timestep.
            row = t * bp if isinstance(t, int) else pl.multiple_of(t * bp, bp)
            gates = gates_sc[pl.ds(row, bp), :] + jnp.dot(
                h.astype(cdt), w_hh, preferred_element_type=jnp.float32)
            # Gate columns pre-permuted offline to [i | f | o | g]: one contiguous
            # sigmoid over 3*Hp lanes, one tanh over the trailing Hp lanes.
            sig = jax.nn.sigmoid(gates[:, :3 * hp])
            g_g = jnp.tanh(gates[:, 3 * hp:])
            i_g = sig[:, :hp]
            f_g = sig[:, hp:2 * hp]
            o_g = sig[:, 2 * hp:]
            c_new = f_g * c + i_g * g_g
            h_new = o_g * jnp.tanh(c_new)
            if needs_mask:
                # T was padded up to the grid: freeze state on padded timesteps.
                # (Padded rows of act_sc then hold the frozen h; harmless because the
                # next layer masks the same timesteps and finals come from the scratch.)
                valid = tc * tt + t < seq_len
                c_new = jnp.where(valid, c_new, c)
                h_new = jnp.where(valid, h_new, h)
            if write_next:
                nxt = h_new.astype(cdt)
                if dp > hp:
                    nxt = jnp.pad(nxt, ((0, 0), (0, dp - hp)))
                act_sc[pl.ds(row, bp), :] = nxt    # VMEM layer-to-layer handoff
            return h_new, c_new

        h = h_sc[l]
        c = c_sc[l]
        if unrolled:                        # small TT: full unroll (LLO visibility)
            for t in range(tt):
                h, c = step(t, h, c)
        else:                               # large TT: bounded live ranges
            h, c = jax.lax.fori_loop(
                0, tt, lambda t, hc: step(t, hc[0], hc[1]), (h, c), unroll=2)
        h_sc[l] = h
        c_sc[l] = c

    # Final-state writeback only on the last grid step (constant-index output blocks).
    @pl.when(tc == pl.num_programs(0) - 1)
    def _():
        hf_ref[...] = h_sc[...]
        cf_ref[...] = c_sc[...]


# ----------------------------------------------------------------------------
# Offline weight packing (once per model, NOT inside the jitted forward).
# ----------------------------------------------------------------------------
def pack_encoder_params(params, *, compute_dtype=jnp.float32):
    """Fuse biases, permute gates to [i,f,o,g], zero-pad for lane alignment, stack
    per layer, cast matmul operands to the compute dtype.

    NOTE on small H: each gate is padded to Hp = round_up(H, 128) columns so the
    sigmoid/tanh slices stay lane-aligned; for H < 128 this wastes MXU columns and EUP
    work -- this packing targets H >= 128 (production sizes).  The zero padding is
    numerically transparent (padded gate columns keep h/c exactly 0).
    """
    E = params["embedding"].shape[1]
    H = params["lstm_layers"][0]["w_hh"].shape[0]
    Hp = _round_up(H, 128)
    Ep = _round_up(E, 128)
    Dp = max(Ep, Hp)        # shared row count for every layer's bulk input projection

    def regate(w):          # (rows, 4H) -> (rows, 4*Hp): order [i,f,o,g], per-gate pad
        gi, gf, gg, go = jnp.split(w, 4, axis=1)
        return jnp.concatenate(
            [jnp.pad(blk, ((0, 0), (0, Hp - H))) for blk in (gi, gf, go, gg)], axis=1)

    w_ih, w_hh, bias = [], [], []
    for lw in params["lstm_layers"]:
        d_in = lw["w_ih"].shape[0]
        w_ih.append(jnp.pad(regate(lw["w_ih"]), ((0, Dp - d_in), (0, 0))))
        w_hh.append(jnp.pad(regate(lw["w_hh"]), ((0, Hp - H), (0, 0))))
        bias.append(regate((lw["b_ih"] + lw["b_hh"])[None, :]))

    return {
        "embedding": params["embedding"],
        "w_ih": jnp.stack(w_ih).astype(compute_dtype),   # (L, Dp, 4*Hp)
        "w_hh": jnp.stack(w_hh).astype(compute_dtype),   # (L, Hp, 4*Hp)
        "b": jnp.stack(bias).astype(jnp.float32),        # (L, 1, 4*Hp)
    }


# ----------------------------------------------------------------------------
# Encoder forward: embedding gather (glue) + one fused Pallas LSTM kernel.
# ----------------------------------------------------------------------------
def encoder_forward(packed, x_tokens, *, hidden_size, time_block=32):
    """x_tokens: (T, B) int32.  Returns (hidden, cell), each (num_layers, B, H) f32."""
    emb = jnp.take(packed["embedding"], x_tokens, axis=0)   # (T, B, E) f32
    # TODO(synk): nn.Dropout (embedding + inter-layer LSTM dropout) is modeled in eval
    # mode (identity); no RNG dropout mask is generated.

    T, B, E = emb.shape
    w_ih, w_hh, b_all = packed["w_ih"], packed["w_hh"], packed["b"]
    L, Dp, G = w_ih.shape
    Hp = w_hh.shape[1]
    cdt = w_ih.dtype

    sub = 16 if cdt == jnp.bfloat16 else 8      # bf16 packs 2 rows per sublane
    Bp = _round_up(B, sub)
    Ep = _round_up(E, 128)

    # Split T as evenly as possible into blocks of at most `time_block` steps.
    n_blk = -(-T // time_block)
    TT = -(-T // n_blk)
    Tp = TT * n_blk

    # Pad + flatten to a lane-dense, time-major (Tp*Bp, Ep) slab (XLA-side glue).
    x = jnp.pad(emb, ((0, Tp - T), (0, Bp - B), (0, Ep - E))).astype(cdt)
    x = x.reshape(Tp * Bp, Ep)

    # Explicit VMEM budget: single-buffered weights + double-buffered x blocks +
    # scratch, with ~50% headroom (review item for v6e; also keeps v7x honest).
    cb = cdt.itemsize
    vmem_bytes = (w_ih.size * cb + w_hh.size * cb + b_all.size * 4
                  + 2 * TT * Bp * Ep * cb        # x blocks (double-buffered)
                  + TT * Bp * Dp * cb            # activation scratch
                  + TT * Bp * G * 4              # gates scratch
                  + 2 * L * Bp * Hp * 4          # h/c state scratch
                  + 4 * L * Bp * Hp * 4)         # hf/cf output blocks
    vmem_limit = int(min(100 * 2 ** 20, max(32 * 2 ** 20, vmem_bytes * 3 // 2)))

    kernel = functools.partial(
        _encoder_lstm_kernel,
        seq_len=T, needs_mask=(Tp != T), unrolled=(TT <= 16))

    # NOTE(v7x megacore): at larger batch, add a leading "parallel" grid axis over
    # batch blocks (dimension_semantics=("parallel", "arbitrary")) so the two
    # TensorCores each take half the batch; at B=2 it cannot pay for itself.
    hf, cf = pl.pallas_call(
        kernel,
        out_shape=(
            jax.ShapeDtypeStruct((L, Bp, Hp), jnp.float32),   # final h per layer
            jax.ShapeDtypeStruct((L, Bp, Hp), jnp.float32),   # final c per layer
        ),
        grid_spec=pltpu.PrefetchScalarGridSpec(
            num_scalar_prefetch=0,
            grid=(n_blk,),
            in_specs=[
                pl.BlockSpec((TT * Bp, Ep), lambda t: (t, 0)),
                # Grid-invariant weights: single-buffered so the resident footprint is
                # 1x instead of 2x (essential at production H on v7x's 64 MiB VMEM).
                pl.BlockSpec((L, Dp, G), lambda t: (0, 0, 0),
                             pipeline_mode=pl.Buffered(1)),
                pl.BlockSpec((L, Hp, G), lambda t: (0, 0, 0),
                             pipeline_mode=pl.Buffered(1)),
                pl.BlockSpec((L, 1, G), lambda t: (0, 0, 0)),
            ],
            out_specs=(
                pl.BlockSpec((L, Bp, Hp), lambda t: (0, 0, 0)),
                pl.BlockSpec((L, Bp, Hp), lambda t: (0, 0, 0)),
            ),
            scratch_shapes=[
                pltpu.VMEM((TT * Bp, Dp), cdt),          # inter-layer activations
                pltpu.VMEM((TT * Bp, G), jnp.float32),   # hoisted input projection
                pltpu.VMEM((L, Bp, Hp), jnp.float32),    # h state (f32 across grid)
                pltpu.VMEM((L, Bp, Hp), jnp.float32),    # c state
            ],
        ),
        compiler_params=pltpu.CompilerParams(
            dimension_semantics=("arbitrary",),           # sequential recurrence
            vmem_limit_bytes=vmem_limit),
    )(x, w_ih, w_hh, b_all)

    H = hidden_size
    return hf[:, :B, :H], cf[:, :B, :H]


def init_params(key, input_size, embedding_size, hidden_size, num_layers):
    """Logical (PyTorch-layout) parameters: gate order i, f, g, o."""
    keys = jax.random.split(key, 1 + 4 * num_layers)
    params = {
        "embedding": jax.random.normal(
            keys[0], (input_size, embedding_size), jnp.float32),
        "lstm_layers": [],
    }
    bound = 1.0 / jnp.sqrt(hidden_size)
    for l in range(num_layers):
        d_in = embedding_size if l == 0 else hidden_size
        k0, k1, k2, k3 = keys[1 + 4 * l:1 + 4 * (l + 1)]
        params["lstm_layers"].append({
            "w_ih": jax.random.uniform(k0, (d_in, 4 * hidden_size),
                                       jnp.float32, -bound, bound),
            "w_hh": jax.random.uniform(k1, (hidden_size, 4 * hidden_size),
                                       jnp.float32, -bound, bound),
            "b_ih": jax.random.uniform(k2, (4 * hidden_size,),
                                       jnp.float32, -bound, bound),
            "b_hh": jax.random.uniform(k3, (4 * hidden_size,),
                                       jnp.float32, -bound, bound),
        })
    return params


# ----------------------------------------------------------------------------
# Pure-JAX reference (same math / same matmul precision) for correctness checks.
# ----------------------------------------------------------------------------
def encoder_forward_ref(params, x_tokens, compute_dtype=jnp.float32):
    emb = jnp.take(params["embedding"], x_tokens, axis=0)
    T, B, _ = emb.shape
    layer_in = emb
    hiddens, cells = [], []
    for lw in params["lstm_layers"]:
        H = lw["w_hh"].shape[0]
        h = jnp.zeros((B, H), jnp.float32)
        c = jnp.zeros((B, H), jnp.float32)
        w_ih = lw["w_ih"].astype(compute_dtype)
        w_hh = lw["w_hh"].astype(compute_dtype)
        b = (lw["b_ih"] + lw["b_hh"])[None, :]
        ys = []
        for t in range(T):
            gates = (jnp.dot(layer_in[t].astype(compute_dtype), w_ih,
                             preferred_element_type=jnp.float32)
                     + jnp.dot(h.astype(compute_dtype), w_hh,
                               preferred_element_type=jnp.float32)
                     + b)
            i_g = jax.nn.sigmoid(gates[:, 0 * H:1 * H])
            f_g = jax.nn.sigmoid(gates[:, 1 * H:2 * H])
            g_g = jnp.tanh(gates[:, 2 * H:3 * H])
            o_g = jax.nn.sigmoid(gates[:, 3 * H:4 * H])
            c = f_g * c + i_g * g_g
            h = o_g * jnp.tanh(c)
            ys.append(h)
        hiddens.append(h)
        cells.append(c)
        layer_in = jnp.stack(ys, axis=0)
    return jnp.stack(hiddens, 0), jnp.stack(cells, 0)


if __name__ == "__main__":
    input_size = 50        # vocab
    embedding_size = 32
    hidden_size = 32
    num_layers = 2
    seq_len = 8
    batch = 2

    key = jax.random.PRNGKey(0)
    pkey, xkey, xkey2 = jax.random.split(key, 3)
    params = init_params(pkey, input_size, embedding_size, hidden_size, num_layers)

    # x: (seq_len, batch) token ids, PyTorch seq-first convention.
    x_tokens = jax.random.randint(xkey, (seq_len, batch), 0, input_size, jnp.int32)

    fwd = jax.jit(functools.partial(encoder_forward, hidden_size=hidden_size))

    # --- f32 path: parity with the PyTorch module's math ---
    packed_f32 = pack_encoder_params(params, compute_dtype=jnp.float32)
    hidden, cell = fwd(packed_f32, x_tokens)
    hidden = jax.block_until_ready(hidden)
    cell = jax.block_until_ready(cell)
    h_ref, c_ref = encoder_forward_ref(params, x_tokens, compute_dtype=jnp.float32)
    assert hidden.shape == (num_layers, batch, hidden_size)
    assert cell.shape == (num_layers, batch, hidden_size)
    assert jnp.allclose(hidden, h_ref, atol=1e-3, rtol=1e-3)
    assert jnp.allclose(cell, c_ref, atol=1e-3, rtol=1e-3)

    # --- longer sequence: exercises the multi-block grid, the fori_loop recurrence
    #     and the padded-timestep masking path ---
    seq_len2 = 41
    x_tokens2 = jax.random.randint(xkey2, (seq_len2, batch), 0, input_size, jnp.int32)
    hidden2, cell2 = fwd(packed_f32, x_tokens2)
    hidden2 = jax.block_until_ready(hidden2)
    cell2 = jax.block_until_ready(cell2)
    h_ref2, c_ref2 = encoder_forward_ref(params, x_tokens2, compute_dtype=jnp.float32)
    assert jnp.allclose(hidden2, h_ref2, atol=1e-3, rtol=1e-3)
    assert jnp.allclose(cell2, c_ref2, atol=1e-3, rtol=1e-3)

    # --- bf16-matmul path (perf-recommended on v6e/v7x), checked against a
    #     matched-precision reference (bf16 matmul operands, f32 accumulation) ---
    packed_bf16 = pack_encoder_params(params, compute_dtype=jnp.bfloat16)
    hidden_b, cell_b = fwd(packed_bf16, x_tokens)
    hidden_b = jax.block_until_ready(hidden_b)
    cell_b = jax.block_until_ready(cell_b)
    h_ref_b, c_ref_b = encoder_forward_ref(params, x_tokens, compute_dtype=jnp.bfloat16)
    assert jnp.allclose(hidden_b, h_ref_b, atol=2e-3, rtol=2e-3)
    assert jnp.allclose(cell_b, c_ref_b, atol=2e-3, rtol=2e-3)

    print("KERNEL_OK")
</pallas_src>

<mosaic_0001>
module attributes {stable_mosaic.version = 11 : i64} {
  func.func @_encoder_lstm_kernel(%arg0: i32, %arg1: memref<64x128xf32, #tpu.memory_space<vmem>>, %arg2: memref<2x128x512xf32, #tpu.memory_space<vmem>>, %arg3: memref<2x128x512xf32, #tpu.memory_space<vmem>>, %arg4: memref<2x1x512xf32, #tpu.memory_space<vmem>>, %arg5: memref<2x8x128xf32, #tpu.memory_space<vmem>>, %arg6: memref<2x8x128xf32, #tpu.memory_space<vmem>>, %arg7: memref<64x128xf32, #tpu.memory_space<vmem>>, %arg8: memref<64x512xf32, #tpu.memory_space<vmem>>, %arg9: memref<2x8x128xf32, #tpu.memory_space<vmem>>, %arg10: memref<2x8x128xf32, #tpu.memory_space<vmem>>) attributes {dimension_semantics = [#tpu.dimension_semantics<arbitrary>], iteration_bounds = array<i64: 1>, scalar_prefetch = 0 : i64, scratch_operands = 4 : i64, tpu.core_type = #tpu.core_type<tc>, window_params = [{transform_indices = @transform_0, window_bounds = array<i64: 64, 128>}, {pipeline_mode = #tpu.pipeline_mode<synchronous>, transform_indices = @transform_1, window_bounds = array<i64: 2, 128, 512>}, {pipeline_mode = #tpu.pipeline_mode<synchronous>, transform_indices = @transform_2, window_bounds = array<i64: 2, 128, 512>}, {pipeline_mode = #tpu.pipeline_mode<synchronous>, transform_indices = @transform_3, window_bounds = array<i64: 2, 1, 512>}, {pipeline_mode = #tpu.pipeline_mode<synchronous>, transform_indices = @transform_4, window_bounds = array<i64: 2, 8, 128>}, {pipeline_mode = #tpu.pipeline_mode<synchronous>, transform_indices = @transform_5, window_bounds = array<i64: 2, 8, 128>}]} {
    %c0_i32 = arith.constant 0 : i32
    %0 = arith.cmpi eq, %arg0, %c0_i32 : i32
    %1 = arith.extui %0 : i1 to i32
    %c0_i32_0 = arith.constant 0 : i32
    %2 = arith.cmpi ne, %1, %c0_i32_0 : i32
    scf.if %2 {
      %cst_125 = arith.constant 0.000000e+00 : f32
      %360 = vector.broadcast %cst_125 : f32 to vector<2x8x128xf32>
      %c0_126 = arith.constant 0 : index
      %c0_127 = arith.constant 0 : index
      %c0_128 = arith.constant 0 : index
      %361 = vector.load %arg9[%c0_126, %c0_127, %c0_128] : memref<2x8x128xf32, #tpu.memory_space<vmem>>, vector<2x8x128xf32>
      tpu.vector_store %arg9[%c0_126, %c0_127, %c0_128], %360 {strides = array<i32>} : memref<2x8x128xf32, #tpu.memory_space<vmem>>, vector<2x8x128xf32>,
      %cst_129 = arith.constant 0.000000e+00 : f32
      %362 = vector.broadcast %cst_129 : f32 to vector<2x8x128xf32>
      %c0_130 = arith.constant 0 : index
      %c0_131 = arith.constant 0 : index
      %c0_132 = arith.constant 0 : index
      %363 = vector.load %arg10[%c0_130, %c0_131, %c0_132] : memref<2x8x128xf32, #tpu.memory_space<vmem>>, vector<2x8x128xf32>
      tpu.vector_store %arg10[%c0_130, %c0_131, %c0_132], %362 {strides = array<i32>} : memref<2x8x128xf32, #tpu.memory_space<vmem>>, vector<2x8x128xf32>,
    } else {
    }
    %c0 = arith.constant 0 : index
    %c0_1 = arith.constant 0 : index
    %3 = vector.load %arg1[%c0, %c0_1] : memref<64x128xf32, #tpu.memory_space<vmem>>, vector<64x128xf32>
    %c0_2 = arith.constant 0 : index
    %c0_3 = arith.constant 0 : index
    %c0_4 = arith.constant 0 : index
    %4 = vector.load %arg2[%c0_2, %c0_3, %c0_4] : memref<2x128x512xf32, #tpu.memory_space<vmem>>, vector<1x128x512xf32>
    %5 = vector.shape_cast %4 : vector<1x128x512xf32> to vector<128x512xf32>
    %c0_5 = arith.constant 0 : index
    %c0_6 = arith.constant 0 : index
    %c0_7 = arith.constant 0 : index
    %6 = vector.load %arg3[%c0_5, %c0_6, %c0_7] : memref<2x128x512xf32, #tpu.memory_space<vmem>>, vector<1x128x512xf32>
    %7 = vector.shape_cast %6 : vector<1x128x512xf32> to vector<128x512xf32>
    %c0_8 = arith.constant 0 : index
    %c0_9 = arith.constant 0 : index
    %c0_10 = arith.constant 0 : index
    %8 = vector.load %arg4[%c0_8, %c0_9, %c0_10] : memref<2x1x512xf32, #tpu.memory_space<vmem>>, vector<1x1x512xf32>
    %9 = vector.shape_cast %8 : vector<1x1x512xf32> to vector<1x512xf32>
    %cst = arith.constant dense<0.000000e+00> : vector<64x512xf32>
    %10 = tpu.matmul %3, %5, %cst {dimension_numbers = #tpu.dot_dimension_numbers<[1], [0], [0], [1], [0, 0, 1, 1], [], []>} : vector<64x128xf32>, vector<128x512xf32>, vector<64x512xf32> -> vector<64x512xf32>
    %11 = vector.broadcast %9 : vector<1x512xf32> to vector<64x512xf32>
    %12 = arith.addf %10, %11 : vector<64x512xf32>
    %c0_11 = arith.constant 0 : index
    %c0_12 = arith.constant 0 : index
    %13 = vector.load %arg8[%c0_11, %c0_12] : memref<64x512xf32, #tpu.memory_space<vmem>>, vector<64x512xf32>
    tpu.vector_store %arg8[%c0_11, %c0_12], %12 {strides = array<i32>} : memref<64x512xf32, #tpu.memory_space<vmem>>, vector<64x512xf32>,
    %c0_13 = arith.constant 0 : index
    %c0_14 = arith.constant 0 : index
    %c0_15 = arith.constant 0 : index
    %14 = vector.load %arg9[%c0_13, %c0_14, %c0_15] : memref<2x8x128xf32, #tpu.memory_space<vmem>>, vector<1x8x128xf32>
    %15 = vector.shape_cast %14 : vector<1x8x128xf32> to vector<8x128xf32>
    %c0_16 = arith.constant 0 : index
    %c0_17 = arith.constant 0 : index
    %c0_18 = arith.constant 0 : index
    %16 = vector.load %arg10[%c0_16, %c0_17, %c0_18] : memref<2x8x128xf32, #tpu.memory_space<vmem>>, vector<1x8x128xf32>
    %17 = vector.shape_cast %16 : vector<1x8x128xf32> to vector<8x128xf32>
    %c0_19 = arith.constant 0 : index
    %c0_20 = arith.constant 0 : index
    %18 = vector.load %arg8[%c0_19, %c0_20] : memref<64x512xf32, #tpu.memory_space<vmem>>, vector<8x512xf32>
    %cst_21 = arith.constant dense<0.000000e+00> : vector<8x512xf32>
    %19 = tpu.matmul %15, %7, %cst_21 {dimension_numbers = #tpu.dot_dimension_numbers<[1], [0], [0], [1], [0, 0, 1, 1], [], []>} : vector<8x128xf32>, vector<128x512xf32>, vector<8x512xf32> -> vector<8x512xf32>
    %20 = arith.addf %18, %19 : vector<8x512xf32>
    %21 = vector.extract_strided_slice %20 {offsets = [0, 0], sizes = [8, 384], strides = [1, 1]} : vector<8x512xf32> to vector<8x384xf32>
    %22 = arith.negf %21 : vector<8x384xf32>
    %23 = math.exp %22 : vector<8x384xf32>
    %cst_22 = arith.constant 1.000000e+00 : f32
    %24 = vector.broadcast %cst_22 : f32 to vector<8x384xf32>
    %25 = arith.addf %24, %23 : vector<8x384xf32>
    %26 = arith.divf %24, %25 : vector<8x384xf32>
    %27 = vector.extract_strided_slice %20 {offsets = [0, 384], sizes = [8, 128], strides = [1, 1]} : vector<8x512xf32> to vector<8x128xf32>
    %28 = math.tanh %27 : vector<8x128xf32>
    %29 = vector.extract_strided_slice %26 {offsets = [0, 0], sizes = [8, 128], strides = [1, 1]} : vector<8x384xf32> to vector<8x128xf32>
    %30 = vector.extract_strided_slice %26 {offsets = [0, 128], sizes = [8, 128], strides = [1, 1]} : vector<8x384xf32> to vector<8x128xf32>
    %31 = vector.extract_strided_slice %26 {offsets = [0, 256], sizes = [8, 128], strides = [1, 1]} : vector<8x384xf32> to vector<8x128xf32>
    %32 = arith.mulf %30, %17 : vector<8x128xf32>
    %33 = arith.mulf %29, %28 : vector<8x128xf32>
    %34 = arith.addf %32, %33 : vector<8x128xf32>
    %35 = math.tanh %34 : vector<8x128xf32>
    %36 = arith.mulf %31, %35 : vector<8x128xf32>
    %c0_23 = arith.constant 0 : index
    %c0_24 = arith.constant 0 : index
    %37 = vector.load %arg7[%c0_23, %c0_24] : memref<64x128xf32, #tpu.memory_space<vmem>>, vector<8x128xf32>
    tpu.vector_store %arg7[%c0_23, %c0_24], %36 {strides = array<i32>} : memref<64x128xf32, #tpu.memory_space<vmem>>, vector<8x128xf32>,
    %c8 = arith.constant 8 : index
    %c0_25 = arith.constant 0 : index
    %38 = vector.load %arg8[%c8, %c0_25] : memref<64x512xf32, #tpu.memory_space<vmem>>, vector<8x512xf32>
    %cst_26 = arith.constant dense<0.000000e+00> : vector<8x512xf32>
    %39 = tpu.matmul %36, %7, %cst_26 {dimension_numbers = #tpu.dot_dimension_numbers<[1], [0], [0], [1], [0, 0, 1, 1], [], []>} : vector<8x128xf32>, vector<128x512xf32>, vector<8x512xf32> -> vector<8x512xf32>
    %40 = arith.addf %38, %39 : vector<8x512xf32>
    %41 = vector.extract_strided_slice %40 {offsets = [0, 0], sizes = [8, 384], strides = [1, 1]} : vector<8x512xf32> to vector<8x384xf32>
    %42 = arith.negf %41 : vector<8x384xf32>
    %43 = math.exp %42 : vector<8x384xf32>
    %cst_27 = arith.constant 1.000000e+00 : f32
    %44 = vector.broadcast %cst_27 : f32 to vector<8x384xf32>
    %45 = arith.addf %44, %43 : vector<8x384xf32>
    %46 = arith.divf %44, %45 : vector<8x384xf32>
    %47 = vector.extract_strided_slice %40 {offsets = [0, 384], sizes = [8, 128], strides = [1, 1]} : vector<8x512xf32> to vector<8x128xf32>
    %48 = math.tanh %47 : vector<8x128xf32>
    %49 = vector.extract_strided_slice %46 {offsets = [0, 0], sizes = [8, 128], strides = [1, 1]} : vector<8x384xf32> to vector<8x128xf32>
    %50 = vector.extract_strided_slice %46 {offsets = [0, 128], sizes = [8, 128], strides = [1, 1]} : vector<8x384xf32> to vector<8x128xf32>
    %51 = vector.extract_strided_slice %46 {offsets = [0, 256], sizes = [8, 128], strides = [1, 1]} : vector<8x384xf32> to vector<8x128xf32>
    %52 = arith.mulf %50, %34 : vector<8x128xf32>
    %53 = arith.mulf %49, %48 : vector<8x128xf32>
    %54 = arith.addf %52, %53 : vector<8x128xf32>
    %55 = math.tanh %54 : vector<8x128xf32>
    %56 = arith.mulf %51, %55 : vector<8x128xf32>
    %c8_28 = arith.constant 8 : index
    %c0_29 = arith.constant 0 : index
    %57 = vector.load %arg7[%c8_28, %c0_29] : memref<64x128xf32, #tpu.memory_space<vmem>>, vector<8x128xf32>
    tpu.vector_store %arg7[%c8_28, %c0_29], %56 {strides = array<i32>} : memref<64x128xf32, #tpu.memory_space<vmem>>, vector<8x128xf32>,
    %c16 = arith.constant 16 : index
    %c0_30 = arith.constant 0 : index
    %58 = vector.load %arg8[%c16, %c0_30] : memref<64x512xf32, #tpu.memory_space<vmem>>, vector<8x512xf32>
    %cst_31 = arith.constant dense<0.000000e+00> : vector<8x512xf32>
    %59 = tpu.matmul %56, %7, %cst_31 {dimension_numbers = #tpu.dot_dimension_numbers<[1], [0], [0], [1], [0, 0, 1, 1], [], []>} : vector<8x128xf32>, vector<128x512xf32>, vector<8x512xf32> -> vector<8x512xf32>
    %60 = arith.addf %58, %59 : vector<8x512xf32>
    %61 = vector.extract_strided_slice %60 {offsets = [0, 0], sizes = [8, 384], strides = [1, 1]} : vector<8x512xf32> to vector<8x384xf32>
    %62 = arith.negf %61 : vector<8x384xf32>
    %63 = math.exp %62 : vector<8x384xf32>
    %cst_32 = arith.constant 1.000000e+00 : f32
    %64 = vector.broadcast %cst_32 : f32 to vector<8x384xf32>
    %65 = arith.addf %64, %63 : vector<8x384xf32>
    %66 = arith.divf %64, %65 : vector<8x384xf32>
    %67 = vector.extract_strided_slice %60 {offsets = [0, 384], sizes = [8, 128], strides = [1, 1]} : vector<8x512xf32> to vector<8x128xf32>
    %68 = math.tanh %67 : vector<8x128xf32>
    %69 = vector.extract_strided_slice %66 {offsets = [0, 0], sizes = [8, 128], strides = [1, 1]} : vector<8x384xf32> to vector<8x128xf32>
    %70 = vector.extract_strided_slice %66 {offsets = [0, 128], sizes = [8, 128], strides = [1, 1]} : vector<8x384xf32> to vector<8x128xf32>
    %71 = vector.extract_strided_slice %66 {offsets = [0, 256], sizes = [8, 128], strides = [1, 1]} : vector<8x384xf32> to vector<8x128xf32>
    %72 = arith.mulf %70, %54 : vector<8x128xf32>
    %73 = arith.mulf %69, %68 : vector<8x128xf32>
    %74 = arith.addf %72, %73 : vector<8x128xf32>
    %75 = math.tanh %74 : vector<8x128xf32>
    %76 = arith.mulf %71, %75 : vector<8x128xf32>
    %c16_33 = arith.constant 16 : index
    %c0_34 = arith.constant 0 : index
    %77 = vector.load %arg7[%c16_33, %c0_34] : memref<64x128xf32, #tpu.memory_space<vmem>>, vector<8x128xf32>
    tpu.vector_store %arg7[%c16_33, %c0_34], %76 {strides = array<i32>} : memref<64x128xf32, #tpu.memory_space<vmem>>, vector<8x128xf32>,
    %c24 = arith.constant 24 : index
    %c0_35 = arith.constant 0 : index
    %78 = vector.load %arg8[%c24, %c0_35] : memref<64x512xf32, #tpu.memory_space<vmem>>, vector<8x512xf32>
    %cst_36 = arith.constant dense<0.000000e+00> : vector<8x512xf32>
    %79 = tpu.matmul %76, %7, %cst_36 {dimension_numbers = #tpu.dot_dimension_numbers<[1], [0], [0], [1], [0, 0, 1, 1], [], []>} : vector<8x128xf32>, vector<128x512xf32>, vector<8x512xf32> -> vector<8x512xf32>
    %80 = arith.addf %78, %79 : vector<8x512xf32>
    %81 = vector.extract_strided_slice %80 {offsets = [0, 0], sizes = [8, 384], strides = [1, 1]} : vector<8x512xf32> to vector<8x384xf32>
    %82 = arith.negf %81 : vector<8x384xf32>
    %83 = math.exp %82 : vector<8x384xf32>
    %cst_37 = arith.constant 1.000000e+00 : f32
    %84 = vector.broadcast %cst_37 : f32 to vector<8x384xf32>
    %85 = arith.addf %84, %83 : vector<8x384xf32>
    %86 = arith.divf %84, %85 : vector<8x384xf32>
    %87 = vector.extract_strided_slice %80 {offsets = [0, 384], sizes = [8, 128], strides = [1, 1]} : vector<8x512xf32> to vector<8x128xf32>
    %88 = math.tanh %87 : vector<8x128xf32>
    %89 = vector.extract_strided_slice %86 {offsets = [0, 0], sizes = [8, 128], strides = [1, 1]} : vector<8x384xf32> to vector<8x128xf32>
    %90 = vector.extract_strided_slice %86 {offsets = [0, 128], sizes = [8, 128], strides = [1, 1]} : vector<8x384xf32> to vector<8x128xf32>
    %91 = vector.extract_strided_slice %86 {offsets = [0, 256], sizes = [8, 128], strides = [1, 1]} : vector<8x384xf32> to vector<8x128xf32>
    %92 = arith.mulf %90, %74 : vector<8x128xf32>
    %93 = arith.mulf %89, %88 : vector<8x128xf32>
    %94 = arith.addf %92, %93 : vector<8x128xf32>
    %95 = math.tanh %94 : vector<8x128xf32>
    %96 = arith.mulf %91, %95 : vector<8x128xf32>
    %c24_38 = arith.constant 24 : index
    %c0_39 = arith.constant 0 : index
    %97 = vector.load %arg7[%c24_38, %c0_39] : memref<64x128xf32, #tpu.memory_space<vmem>>, vector<8x128xf32>
    tpu.vector_store %arg7[%c24_38, %c0_39], %96 {strides = array<i32>} : memref<64x128xf32, #tpu.memory_space<vmem>>, vector<8x128xf32>,
    %c32 = arith.constant 32 : index
    %c0_40 = arith.constant 0 : index
    %98 = vector.load %arg8[%c32, %c0_40] : memref<64x512xf32, #tpu.memory_space<vmem>>, vector<8x512xf32>
    %cst_41 = arith.constant dense<0.000000e+00> : vector<8x512xf32>
    %99 = tpu.matmul %96, %7, %cst_41 {dimension_numbers = #tpu.dot_dimension_numbers<[1], [0], [0], [1], [0, 0, 1, 1], [], []>} : vector<8x128xf32>, vector<128x512xf32>, vector<8x512xf32> -> vector<8x512xf32>
    %100 = arith.addf %98, %99 : vector<8x512xf32>
    %101 = vector.extract_strided_slice %100 {offsets = [0, 0], sizes = [8, 384], strides = [1, 1]} : vector<8x512xf32> to vector<8x384xf32>
    %102 = arith.negf %101 : vector<8x384xf32>
    %103 = math.exp %102 : vector<8x384xf32>
    %cst_42 = arith.constant 1.000000e+00 : f32
    %104 = vector.broadcast %cst_42 : f32 to vector<8x384xf32>
    %105 = arith.addf %104, %103 : vector<8x384xf32>
    %106 = arith.divf %104, %105 : vector<8x384xf32>
    %107 = vector.extract_strided_slice %100 {offsets = [0, 384], sizes = [8, 128], strides = [1, 1]} : vector<8x512xf32> to vector<8x128xf32>
    %108 = math.tanh %107 : vector<8x128xf32>
    %109 = vector.extract_strided_slice %106 {offsets = [0, 0], sizes = [8, 128], strides = [1, 1]} : vector<8x384xf32> to vector<8x128xf32>
    %110 = vector.extract_strided_slice %106 {offsets = [0, 128], sizes = [8, 128], strides = [1, 1]} : vector<8x384xf32> to vector<8x128xf32>
    %111 = vector.extract_strided_slice %106 {offsets = [0, 256], sizes = [8, 128], strides = [1, 1]} : vector<8x384xf32> to vector<8x128xf32>
    %112 = arith.mulf %110, %94 : vector<8x128xf32>
    %113 = arith.mulf %109, %108 : vector<8x128xf32>
    %114 = arith.addf %112, %113 : vector<8x128xf32>
    %115 = math.tanh %114 : vector<8x128xf32>
    %116 = arith.mulf %111, %115 : vector<8x128xf32>
    %c32_43 = arith.constant 32 : index
    %c0_44 = arith.constant 0 : index
    %117 = vector.load %arg7[%c32_43, %c0_44] : memref<64x128xf32, #tpu.memory_space<vmem>>, vector<8x128xf32>
    tpu.vector_store %arg7[%c32_43, %c0_44], %116 {strides = array<i32>} : memref<64x128xf32, #tpu.memory_space<vmem>>, vector<8x128xf32>,
    %c40 = arith.constant 40 : index
    %c0_45 = arith.constant 0 : index
    %118 = vector.load %arg8[%c40, %c0_45] : memref<64x512xf32, #tpu.memory_space<vmem>>, vector<8x512xf32>
    %cst_46 = arith.constant dense<0.000000e+00> : vector<8x512xf32>
    %119 = tpu.matmul %116, %7, %cst_46 {dimension_numbers = #tpu.dot_dimension_numbers<[1], [0], [0], [1], [0, 0, 1, 1], [], []>} : vector<8x128xf32>, vector<128x512xf32>, vector<8x512xf32> -> vector<8x512xf32>
    %120 = arith.addf %118, %119 : vector<8x512xf32>
    %121 = vector.extract_strided_slice %120 {offsets = [0, 0], sizes = [8, 384], strides = [1, 1]} : vector<8x512xf32> to vector<8x384xf32>
    %122 = arith.negf %121 : vector<8x384xf32>
    %123 = math.exp %122 : vector<8x384xf32>
    %cst_47 = arith.constant 1.000000e+00 : f32
    %124 = vector.broadcast %cst_47 : f32 to vector<8x384xf32>
    %125 = arith.addf %124, %123 : vector<8x384xf32>
    %126 = arith.divf %124, %125 : vector<8x384xf32>
    %127 = vector.extract_strided_slice %120 {offsets = [0, 384], sizes = [8, 128], strides = [1, 1]} : vector<8x512xf32> to vector<8x128xf32>
    %128 = math.tanh %127 : vector<8x128xf32>
    %129 = vector.extract_strided_slice %126 {offsets = [0, 0], sizes = [8, 128], strides = [1, 1]} : vector<8x384xf32> to vector<8x128xf32>
    %130 = vector.extract_strided_slice %126 {offsets = [0, 128], sizes = [8, 128], strides = [1, 1]} : vector<8x384xf32> to vector<8x128xf32>
    %131 = vector.extract_strided_slice %126 {offsets = [0, 256], sizes = [8, 128], strides = [1, 1]} : vector<8x384xf32> to vector<8x128xf32>
    %132 = arith.mulf %130, %114 : vector<8x128xf32>
    %133 = arith.mulf %129, %128 : vector<8x128xf32>
    %134 = arith.addf %132, %133 : vector<8x128xf32>
    %135 = math.tanh %134 : vector<8x128xf32>
    %136 = arith.mulf %131, %135 : vector<8x128xf32>
    %c40_48 = arith.constant 40 : index
    %c0_49 = arith.constant 0 : index
    %137 = vector.load %arg7[%c40_48, %c0_49] : memref<64x128xf32, #tpu.memory_space<vmem>>, vector<8x128xf32>
    tpu.vector_store %arg7[%c40_48, %c0_49], %136 {strides = array<i32>} : memref<64x128xf32, #tpu.memory_space<vmem>>, vector<8x128xf32>,
    %c48 = arith.constant 48 : index
    %c0_50 = arith.constant 0 : index
    %138 = vector.load %arg8[%c48, %c0_50] : memref<64x512xf32, #tpu.memory_space<vmem>>, vector<8x512xf32>
    %cst_51 = arith.constant dense<0.000000e+00> : vector<8x512xf32>
    %139 = tpu.matmul %136, %7, %cst_51 {dimension_numbers = #tpu.dot_dimension_numbers<[1], [0], [0], [1], [0, 0, 1, 1], [], []>} : vector<8x128xf32>, vector<128x512xf32>, vector<8x512xf32> -> vector<8x512xf32>
    %140 = arith.addf %138, %139 : vector<8x512xf32>
    %141 = vector.extract_strided_slice %140 {offsets = [0, 0], sizes = [8, 384], strides = [1, 1]} : vector<8x512xf32> to vector<8x384xf32>
    %142 = arith.negf %141 : vector<8x384xf32>
    %143 = math.exp %142 : vector<8x384xf32>
    %cst_52 = arith.constant 1.000000e+00 : f32
    %144 = vector.broadcast %cst_52 : f32 to vector<8x384xf32>
    %145 = arith.addf %144, %143 : vector<8x384xf32>
    %146 = arith.divf %144, %145 : vector<8x384xf32>
    %147 = vector.extract_strided_slice %140 {offsets = [0, 384], sizes = [8, 128], strides = [1, 1]} : vector<8x512xf32> to vector<8x128xf32>
    %148 = math.tanh %147 : vector<8x128xf32>
    %149 = vector.extract_strided_slice %146 {offsets = [0, 0], sizes = [8, 128], strides = [1, 1]} : vector<8x384xf32> to vector<8x128xf32>
    %150 = vector.extract_strided_slice %146 {offsets = [0, 128], sizes = [8, 128], strides = [1, 1]} : vector<8x384xf32> to vector<8x128xf32>
    %151 = vector.extract_strided_slice %146 {offsets = [0, 256], sizes = [8, 128], strides = [1, 1]} : vector<8x384xf32> to vector<8x128xf32>
    %152 = arith.mulf %150, %134 : vector<8x128xf32>
    %153 = arith.mulf %149, %148 : vector<8x128xf32>
    %154 = arith.addf %152, %153 : vector<8x128xf32>
    %155 = math.tanh %154 : vector<8x128xf32>
    %156 = arith.mulf %151, %155 : vector<8x128xf32>
    %c48_53 = arith.constant 48 : index
    %c0_54 = arith.constant 0 : index
    %157 = vector.load %arg7[%c48_53, %c0_54] : memref<64x128xf32, #tpu.memory_space<vmem>>, vector<8x128xf32>
    tpu.vector_store %arg7[%c48_53, %c0_54], %156 {strides = array<i32>} : memref<64x128xf32, #tpu.memory_space<vmem>>, vector<8x128xf32>,
    %c56 = arith.constant 56 : index
    %c0_55 = arith.constant 0 : index
    %158 = vector.load %arg8[%c56, %c0_55] : memref<64x512xf32, #tpu.memory_space<vmem>>, vector<8x512xf32>
    %cst_56 = arith.constant dense<0.000000e+00> : vector<8x512xf32>
    %159 = tpu.matmul %156, %7, %cst_56 {dimension_numbers = #tpu.dot_dimension_numbers<[1], [0], [0], [1], [0, 0, 1, 1], [], []>} : vector<8x128xf32>, vector<128x512xf32>, vector<8x512xf32> -> vector<8x512xf32>
    %160 = arith.addf %158, %159 : vector<8x512xf32>
    %161 = vector.extract_strided_slice %160 {offsets = [0, 0], sizes = [8, 384], strides = [1, 1]} : vector<8x512xf32> to vector<8x384xf32>
    %162 = arith.negf %161 : vector<8x384xf32>
    %163 = math.exp %162 : vector<8x384xf32>
    %cst_57 = arith.constant 1.000000e+00 : f32
    %164 = vector.broadcast %cst_57 : f32 to vector<8x384xf32>
    %165 = arith.addf %164, %163 : vector<8x384xf32>
    %166 = arith.divf %164, %165 : vector<8x384xf32>
    %167 = vector.extract_strided_slice %160 {offsets = [0, 384], sizes = [8, 128], strides = [1, 1]} : vector<8x512xf32> to vector<8x128xf32>
    %168 = math.tanh %167 : vector<8x128xf32>
    %169 = vector.extract_strided_slice %166 {offsets = [0, 0], sizes = [8, 128], strides = [1, 1]} : vector<8x384xf32> to vector<8x128xf32>
    %170 = vector.extract_strided_slice %166 {offsets = [0, 128], sizes = [8, 128], strides = [1, 1]} : vector<8x384xf32> to vector<8x128xf32>
    %171 = vector.extract_strided_slice %166 {offsets = [0, 256], sizes = [8, 128], strides = [1, 1]} : vector<8x384xf32> to vector<8x128xf32>
    %172 = arith.mulf %170, %154 : vector<8x128xf32>
    %173 = arith.mulf %169, %168 : vector<8x128xf32>
    %174 = arith.addf %172, %173 : vector<8x128xf32>
    %175 = math.tanh %174 : vector<8x128xf32>
    %176 = arith.mulf %171, %175 : vector<8x128xf32>
    %c56_58 = arith.constant 56 : index
    %c0_59 = arith.constant 0 : index
    %177 = vector.load %arg7[%c56_58, %c0_59] : memref<64x128xf32, #tpu.memory_space<vmem>>, vector<8x128xf32>
    tpu.vector_store %arg7[%c56_58, %c0_59], %176 {strides = array<i32>} : memref<64x128xf32, #tpu.memory_space<vmem>>, vector<8x128xf32>,
    %c0_60 = arith.constant 0 : index
    %c0_61 = arith.constant 0 : index
    %c0_62 = arith.constant 0 : index
    %178 = vector.load %arg9[%c0_60, %c0_61, %c0_62] : memref<2x8x128xf32, #tpu.memory_space<vmem>>, vector<1x8x128xf32>
    %179 = vector.shape_cast %178 : vector<1x8x128xf32> to vector<8x128xf32>
    %180 = vector.shape_cast %176 : vector<8x128xf32> to vector<1x8x128xf32>
    tpu.vector_store %arg9[%c0_60, %c0_61, %c0_62], %180 {strides = array<i32>} : memref<2x8x128xf32, #tpu.memory_space<vmem>>, vector<1x8x128xf32>,
    %c0_63 = arith.constant 0 : index
    %c0_64 = arith.constant 0 : index
    %c0_65 = arith.constant 0 : index
    %181 = vector.load %arg10[%c0_63, %c0_64, %c0_65] : memref<2x8x128xf32, #tpu.memory_space<vmem>>, vector<1x8x128xf32>
    %182 = vector.shape_cast %181 : vector<1x8x128xf32> to vector<8x128xf32>
    %183 = vector.shape_cast %174 : vector<8x128xf32> to vector<1x8x128xf32>
    tpu.vector_store %arg10[%c0_63, %c0_64, %c0_65], %183 {strides = array<i32>} : memref<2x8x128xf32, #tpu.memory_space<vmem>>, vector<1x8x128xf32>,
    %c1 = arith.constant 1 : index
    %c0_66 = arith.constant 0 : index
    %c0_67 = arith.constant 0 : index
    %184 = vector.load %arg2[%c1, %c0_66, %c0_67] : memref<2x128x512xf32, #tpu.memory_space<vmem>>, vector<1x128x512xf32>
    %185 = vector.shape_cast %184 : vector<1x128x512xf32> to vector<128x512xf32>
    %c1_68 = arith.constant 1 : index
    %c0_69 = arith.constant 0 : index
    %c0_70 = arith.constant 0 : index
    %186 = vector.load %arg3[%c1_68, %c0_69, %c0_70] : memref<2x128x512xf32, #tpu.memory_space<vmem>>, vector<1x128x512xf32>
    %187 = vector.shape_cast %186 : vector<1x128x512xf32> to vector<128x512xf32>
    %c1_71 = arith.constant 1 : index
    %c0_72 = arith.constant 0 : index
    %c0_73 = arith.constant 0 : index
    %188 = vector.load %arg4[%c1_71, %c0_72, %c0_73] : memref<2x1x512xf32, #tpu.memory_space<vmem>>, vector<1x1x512xf32>
    %189 = vector.shape_cast %188 : vector<1x1x512xf32> to vector<1x512xf32>
    %c0_74 = arith.constant 0 : index
    %c0_75 = arith.constant 0 : index
    %190 = vector.load %arg7[%c0_74, %c0_75] : memref<64x128xf32, #tpu.memory_space<vmem>>, vector<64x128xf32>
    %cst_76 = arith.constant dense<0.000000e+00> : vector<64x512xf32>
    %191 = tpu.matmul %190, %185, %cst_76 {dimension_numbers = #tpu.dot_dimension_numbers<[1], [0], [0], [1], [0, 0, 1, 1], [], []>} : vector<64x128xf32>, vector<128x512xf32>, vector<64x512xf32> -> vector<64x512xf32>
    %192 = vector.broadcast %189 : vector<1x512xf32> to vector<64x512xf32>
    %193 = arith.addf %191, %192 : vector<64x512xf32>
    %c0_77 = arith.constant 0 : index
    %c0_78 = arith.constant 0 : index
    %194 = vector.load %arg8[%c0_77, %c0_78] : memref<64x512xf32, #tpu.memory_space<vmem>>, vector<64x512xf32>
    tpu.vector_store %arg8[%c0_77, %c0_78], %193 {strides = array<i32>} : memref<64x512xf32, #tpu.memory_space<vmem>>, vector<64x512xf32>,
    %c1_79 = arith.constant 1 : index
    %c0_80 = arith.constant 0 : index
    %c0_81 = arith.constant 0 : index
    %195 = vector.load %arg9[%c1_79, %c0_80, %c0_81] : memref<2x8x128xf32, #tpu.memory_space<vmem>>, vector<1x8x128xf32>
    %196 = vector.shape_cast %195 : vector<1x8x128xf32> to vector<8x128xf32>
    %c1_82 = arith.constant 1 : index
    %c0_83 = arith.constant 0 : index
    %c0_84 = arith.constant 0 : index
    %197 = vector.load %arg10[%c1_82, %c0_83, %c0_84] : memref<2x8x128xf32, #tpu.memory_space<vmem>>, vector<1x8x128xf32>
    %198 = vector.shape_cast %197 : vector<1x8x128xf32> to vector<8x128xf32>
    %c0_85 = arith.constant 0 : index
    %c0_86 = arith.constant 0 : index
    %199 = vector.load %arg8[%c0_85, %c0_86] : memref<64x512xf32, #tpu.memory_space<vmem>>, vector<8x512xf32>
    %cst_87 = arith.constant dense<0.000000e+00> : vector<8x512xf32>
    %200 = tpu.matmul %196, %187, %cst_87 {dimension_numbers = #tpu.dot_dimension_numbers<[1], [0], [0], [1], [0, 0, 1, 1], [], []>} : vector<8x128xf32>, vector<128x512xf32>, vector<8x512xf32> -> vector<8x512xf32>
    %201 = arith.addf %199, %200 : vector<8x512xf32>
    %202 = vector.extract_strided_slice %201 {offsets = [0, 0], sizes = [8, 384], strides = [1, 1]} : vector<8x512xf32> to vector<8x384xf32>
    %203 = arith.negf %202 : vector<8x384xf32>
    %204 = math.exp %203 : vector<8x384xf32>
    %cst_88 = arith.constant 1.000000e+00 : f32
    %205 = vector.broadcast %cst_88 : f32 to vector<8x384xf32>
    %206 = arith.addf %205, %204 : vector<8x384xf32>
    %207 = arith.divf %205, %206 : vector<8x384xf32>
    %208 = vector.extract_strided_slice %201 {offsets = [0, 384], sizes = [8, 128], strides = [1, 1]} : vector<8x512xf32> to vector<8x128xf32>
    %209 = math.tanh %208 : vector<8x128xf32>
    %210 = vector.extract_strided_slice %207 {offsets = [0, 0], sizes = [8, 128], strides = [1, 1]} : vector<8x384xf32> to vector<8x128xf32>
    %211 = vector.extract_strided_slice %207 {offsets = [0, 128], sizes = [8, 128], strides = [1, 1]} : vector<8x384xf32> to vector<8x128xf32>
    %212 = vector.extract_strided_slice %207 {offsets = [0, 256], sizes = [8, 128], strides = [1, 1]} : vector<8x384xf32> to vector<8x128xf32>
    %213 = arith.mulf %211, %198 : vector<8x128xf32>
    %214 = arith.mulf %210, %209 : vector<8x128xf32>
    %215 = arith.addf %213, %214 : vector<8x128xf32>
    %216 = math.tanh %215 : vector<8x128xf32>
    %217 = arith.mulf %212, %216 : vector<8x128xf32>
    %c8_89 = arith.constant 8 : index
    %c0_90 = arith.constant 0 : index
    %218 = vector.load %arg8[%c8_89, %c0_90] : memref<64x512xf32, #tpu.memory_space<vmem>>, vector<8x512xf32>
    %cst_91 = arith.constant dense<0.000000e+00> : vector<8x512xf32>
    %219 = tpu.matmul %217, %187, %cst_91 {dimension_numbers = #tpu.dot_dimension_numbers<[1], [0], [0], [1], [0, 0, 1, 1], [], []>} : vector<8x128xf32>, vector<128x512xf32>, vector<8x512xf32> -> vector<8x512xf32>
    %220 = arith.addf %218, %219 : vector<8x512xf32>
    %221 = vector.extract_strided_slice %220 {offsets = [0, 0], sizes = [8, 384], strides = [1, 1]} : vector<8x512xf32> to vector<8x384xf32>
    %222 = arith.negf %221 : vector<8x384xf32>
    %223 = math.exp %222 : vector<8x384xf32>
    %cst_92 = arith.constant 1.000000e+00 : f32
    %224 = vector.broadcast %cst_92 : f32 to vector<8x384xf32>
    %225 = arith.addf %224, %223 : vector<8x384xf32>
    %226 = arith.divf %224, %225 : vector<8x384xf32>
    %227 = vector.extract_strided_slice %220 {offsets = [0, 384], sizes = [8, 128], strides = [1, 1]} : vector<8x512xf32> to vector<8x128xf32>
    %228 = math.tanh %227 : vector<8x128xf32>
    %229 = vector.extract_strided_slice %226 {offsets = [0, 0], sizes = [8, 128], strides = [1, 1]} : vector<8x384xf32> to vector<8x128xf32>
    %230 = vector.extract_strided_slice %226 {offsets = [0, 128], sizes = [8, 128], strides = [1, 1]} : vector<8x384xf32> to vector<8x128xf32>
    %231 = vector.extract_strided_slice %226 {offsets = [0, 256], sizes = [8, 128], strides = [1, 1]} : vector<8x384xf32> to vector<8x128xf32>
    %232 = arith.mulf %230, %215 : vector<8x128xf32>
    %233 = arith.mulf %229, %228 : vector<8x128xf32>
    %234 = arith.addf %232, %233 : vector<8x128xf32>
    %235 = math.tanh %234 : vector<8x128xf32>
    %236 = arith.mulf %231, %235 : vector<8x128xf32>
    %c16_93 = arith.constant 16 : index
    %c0_94 = arith.constant 0 : index
    %237 = vector.load %arg8[%c16_93, %c0_94] : memref<64x512xf32, #tpu.memory_space<vmem>>, vector<8x512xf32>
    %cst_95 = arith.constant dense<0.000000e+00> : vector<8x512xf32>
    %238 = tpu.matmul %236, %187, %cst_95 {dimension_numbers = #tpu.dot_dimension_numbers<[1], [0], [0], [1], [0, 0, 1, 1], [], []>} : vector<8x128xf32>, vector<128x512xf32>, vector<8x512xf32> -> vector<8x512xf32>
    %239 = arith.addf %237, %238 : vector<8x512xf32>
    %240 = vector.extract_strided_slice %239 {offsets = [0, 0], sizes = [8, 384], strides = [1, 1]} : vector<8x512xf32> to vector<8x384xf32>
    %241 = arith.negf %240 : vector<8x384xf32>
    %242 = math.exp %241 : vector<8x384xf32>
    %cst_96 = arith.constant 1.000000e+00 : f32
    %243 = vector.broadcast %cst_96 : f32 to vector<8x384xf32>
    %244 = arith.addf %243, %242 : vector<8x384xf32>
    %245 = arith.divf %243, %244 : vector<8x384xf32>
    %246 = vector.extract_strided_slice %239 {offsets = [0, 384], sizes = [8, 128], strides = [1, 1]} : vector<8x512xf32> to vector<8x128xf32>
    %247 = math.tanh %246 : vector<8x128xf32>
    %248 = vector.extract_strided_slice %245 {offsets = [0, 0], sizes = [8, 128], strides = [1, 1]} : vector<8x384xf32> to vector<8x128xf32>
    %249 = vector.extract_strided_slice %245 {offsets = [0, 128], sizes = [8, 128], strides = [1, 1]} : vector<8x384xf32> to vector<8x128xf32>
    %250 = vector.extract_strided_slice %245 {offsets = [0, 256], sizes = [8, 128], strides = [1, 1]} : vector<8x384xf32> to vector<8x128xf32>
    %251 = arith.mulf %249, %234 : vector<8x128xf32>
    %252 = arith.mulf %248, %247 : vector<8x128xf32>
    %253 = arith.addf %251, %252 : vector<8x128xf32>
    %254 = math.tanh %253 : vector<8x128xf32>
    %255 = arith.mulf %250, %254 : vector<8x128xf32>
    %c24_97 = arith.constant 24 : index
    %c0_98 = arith.constant 0 : index
    %256 = vector.load %arg8[%c24_97, %c0_98] : memref<64x512xf32, #tpu.memory_space<vmem>>, vector<8x512xf32>
    %cst_99 = arith.constant dense<0.000000e+00> : vector<8x512xf32>
    %257 = tpu.matmul %255, %187, %cst_99 {dimension_numbers = #tpu.dot_dimension_numbers<[1], [0], [0], [1], [0, 0, 1, 1], [], []>} : vector<8x128xf32>, vector<128x512xf32>, vector<8x512xf32> -> vector<8x512xf32>
    %258 = arith.addf %256, %257 : vector<8x512xf32>
    %259 = vector.extract_strided_slice %258 {offsets = [0, 0], sizes = [8, 384], strides = [1, 1]} : vector<8x512xf32> to vector<8x384xf32>
    %260 = arith.negf %259 : vector<8x384xf32>
    %261 = math.exp %260 : vector<8x384xf32>
    %cst_100 = arith.constant 1.000000e+00 : f32
    %262 = vector.broadcast %cst_100 : f32 to vector<8x384xf32>
    %263 = arith.addf %262, %261 : vector<8x384xf32>
    %264 = arith.divf %262, %263 : vector<8x384xf32>
    %265 = vector.extract_strided_slice %258 {offsets = [0, 384], sizes = [8, 128], strides = [1, 1]} : vector<8x512xf32> to vector<8x128xf32>
    %266 = math.tanh %265 : vector<8x128xf32>
    %267 = vector.extract_strided_slice %264 {offsets = [0, 0], sizes = [8, 128], strides = [1, 1]} : vector<8x384xf32> to vector<8x128xf32>
    %268 = vector.extract_strided_slice %264 {offsets = [0, 128], sizes = [8, 128], strides = [1, 1]} : vector<8x384xf32> to vector<8x128xf32>
    %269 = vector.extract_strided_slice %264 {offsets = [0, 256], sizes = [8, 128], strides = [1, 1]} : vector<8x384xf32> to vector<8x128xf32>
    %270 = arith.mulf %268, %253 : vector<8x128xf32>
    %271 = arith.mulf %267, %266 : vector<8x128xf32>
    %272 = arith.addf %270, %271 : vector<8x128xf32>
    %273 = math.tanh %272 : vector<8x128xf32>
    %274 = arith.mulf %269, %273 : vector<8x128xf32>
    %c32_101 = arith.constant 32 : index
    %c0_102 = arith.constant 0 : index
    %275 = vector.load %arg8[%c32_101, %c0_102] : memref<64x512xf32, #tpu.memory_space<vmem>>, vector<8x512xf32>
    %cst_103 = arith.constant dense<0.000000e+00> : vector<8x512xf32>
    %276 = tpu.matmul %274, %187, %cst_103 {dimension_numbers = #tpu.dot_dimension_numbers<[1], [0], [0], [1], [0, 0, 1, 1], [], []>} : vector<8x128xf32>, vector<128x512xf32>, vector<8x512xf32> -> vector<8x512xf32>
    %277 = arith.addf %275, %276 : vector<8x512xf32>
    %278 = vector.extract_strided_slice %277 {offsets = [0, 0], sizes = [8, 384], strides = [1, 1]} : vector<8x512xf32> to vector<8x384xf32>
    %279 = arith.negf %278 : vector<8x384xf32>
    %280 = math.exp %279 : vector<8x384xf32>
    %cst_104 = arith.constant 1.000000e+00 : f32
    %281 = vector.broadcast %cst_104 : f32 to vector<8x384xf32>
    %282 = arith.addf %281, %280 : vector<8x384xf32>
    %283 = arith.divf %281, %282 : vector<8x384xf32>
    %284 = vector.extract_strided_slice %277 {offsets = [0, 384], sizes = [8, 128], strides = [1, 1]} : vector<8x512xf32> to vector<8x128xf32>
    %285 = math.tanh %284 : vector<8x128xf32>
    %286 = vector.extract_strided_slice %283 {offsets = [0, 0], sizes = [8, 128], strides = [1, 1]} : vector<8x384xf32> to vector<8x128xf32>
    %287 = vector.extract_strided_slice %283 {offsets = [0, 128], sizes = [8, 128], strides = [1, 1]} : vector<8x384xf32> to vector<8x128xf32>
    %288 = vector.extract_strided_slice %283 {offsets = [0, 256], sizes = [8, 128], strides = [1, 1]} : vector<8x384xf32> to vector<8x128xf32>
    %289 = arith.mulf %287, %272 : vector<8x128xf32>
    %290 = arith.mulf %286, %285 : vector<8x128xf32>
    %291 = arith.addf %289, %290 : vector<8x128xf32>
    %292 = math.tanh %291 : vector<8x128xf32>
    %293 = arith.mulf %288, %292 : vector<8x128xf32>
    %c40_105 = arith.constant 40 : index
    %c0_106 = arith.constant 0 : index
    %294 = vector.load %arg8[%c40_105, %c0_106] : memref<64x512xf32, #tpu.memory_space<vmem>>, vector<8x512xf32>
    %cst_107 = arith.constant dense<0.000000e+00> : vector<8x512xf32>
    %295 = tpu.matmul %293, %187, %cst_107 {dimension_numbers = #tpu.dot_dimension_numbers<[1], [0], [0], [1], [0, 0, 1, 1], [], []>} : vector<8x128xf32>, vector<128x512xf32>, vector<8x512xf32> -> vector<8x512xf32>
    %296 = arith.addf %294, %295 : vector<8x512xf32>
    %297 = vector.extract_strided_slice %296 {offsets = [0, 0], sizes = [8, 384], strides = [1, 1]} : vector<8x512xf32> to vector<8x384xf32>
    %298 = arith.negf %297 : vector<8x384xf32>
    %299 = math.exp %298 : vector<8x384xf32>
    %cst_108 = arith.constant 1.000000e+00 : f32
    %300 = vector.broadcast %cst_108 : f32 to vector<8x384xf32>
    %301 = arith.addf %300, %299 : vector<8x384xf32>
    %302 = arith.divf %300, %301 : vector<8x384xf32>
    %303 = vector.extract_strided_slice %296 {offsets = [0, 384], sizes = [8, 128], strides = [1, 1]} : vector<8x512xf32> to vector<8x128xf32>
    %304 = math.tanh %303 : vector<8x128xf32>
    %305 = vector.extract_strided_slice %302 {offsets = [0, 0], sizes = [8, 128], strides = [1, 1]} : vector<8x384xf32> to vector<8x128xf32>
    %306 = vector.extract_strided_slice %302 {offsets = [0, 128], sizes = [8, 128], strides = [1, 1]} : vector<8x384xf32> to vector<8x128xf32>
    %307 = vector.extract_strided_slice %302 {offsets = [0, 256], sizes = [8, 128], strides = [1, 1]} : vector<8x384xf32> to vector<8x128xf32>
    %308 = arith.mulf %306, %291 : vector<8x128xf32>
    %309 = arith.mulf %305, %304 : vector<8x128xf32>
    %310 = arith.addf %308, %309 : vector<8x128xf32>
    %311 = math.tanh %310 : vector<8x128xf32>
    %312 = arith.mulf %307, %311 : vector<8x128xf32>
    %c48_109 = arith.constant 48 : index
    %c0_110 = arith.constant 0 : index
    %313 = vector.load %arg8[%c48_109, %c0_110] : memref<64x512xf32, #tpu.memory_space<vmem>>, vector<8x512xf32>
    %cst_111 = arith.constant dense<0.000000e+00> : vector<8x512xf32>
    %314 = tpu.matmul %312, %187, %cst_111 {dimension_numbers = #tpu.dot_dimension_numbers<[1], [0], [0], [1], [0, 0, 1, 1], [], []>} : vector<8x128xf32>, vector<128x512xf32>, vector<8x512xf32> -> vector<8x512xf32>
    %315 = arith.addf %313, %314 : vector<8x512xf32>
    %316 = vector.extract_strided_slice %315 {offsets = [0, 0], sizes = [8, 384], strides = [1, 1]} : vector<8x512xf32> to vector<8x384xf32>
    %317 = arith.negf %316 : vector<8x384xf32>
    %318 = math.exp %317 : vector<8x384xf32>
    %cst_112 = arith.constant 1.000000e+00 : f32
    %319 = vector.broadcast %cst_112 : f32 to vector<8x384xf32>
    %320 = arith.addf %319, %318 : vector<8x384xf32>
    %321 = arith.divf %319, %320 : vector<8x384xf32>
    %322 = vector.extract_strided_slice %315 {offsets = [0, 384], sizes = [8, 128], strides = [1, 1]} : vector<8x512xf32> to vector<8x128xf32>
    %323 = math.tanh %322 : vector<8x128xf32>
    %324 = vector.extract_strided_slice %321 {offsets = [0, 0], sizes = [8, 128], strides = [1, 1]} : vector<8x384xf32> to vector<8x128xf32>
    %325 = vector.extract_strided_slice %321 {offsets = [0, 128], sizes = [8, 128], strides = [1, 1]} : vector<8x384xf32> to vector<8x128xf32>
    %326 = vector.extract_strided_slice %321 {offsets = [0, 256], sizes = [8, 128], strides = [1, 1]} : vector<8x384xf32> to vector<8x128xf32>
    %327 = arith.mulf %325, %310 : vector<8x128xf32>
    %328 = arith.mulf %324, %323 : vector<8x128xf32>
    %329 = arith.addf %327, %328 : vector<8x128xf32>
    %330 = math.tanh %329 : vector<8x128xf32>
    %331 = arith.mulf %326, %330 : vector<8x128xf32>
    %c56_113 = arith.constant 56 : index
    %c0_114 = arith.constant 0 : index
    %332 = vector.load %arg8[%c56_113, %c0_114] : memref<64x512xf32, #tpu.memory_space<vmem>>, vector<8x512xf32>
    %cst_115 = arith.constant dense<0.000000e+00> : vector<8x512xf32>
    %333 = tpu.matmul %331, %187, %cst_115 {dimension_numbers = #tpu.dot_dimension_numbers<[1], [0], [0], [1], [0, 0, 1, 1], [], []>} : vector<8x128xf32>, vector<128x512xf32>, vector<8x512xf32> -> vector<8x512xf32>
    %334 = arith.addf %332, %333 : vector<8x512xf32>
    %335 = vector.extract_strided_slice %334 {offsets = [0, 0], sizes = [8, 384], strides = [1, 1]} : vector<8x512xf32> to vector<8x384xf32>
    %336 = arith.negf %335 : vector<8x384xf32>
    %337 = math.exp %336 : vector<8x384xf32>
    %cst_116 = arith.constant 1.000000e+00 : f32
    %338 = vector.broadcast %cst_116 : f32 to vector<8x384xf32>
    %339 = arith.addf %338, %337 : vector<8x384xf32>
    %340 = arith.divf %338, %339 : vector<8x384xf32>
    %341 = vector.extract_strided_slice %334 {offsets = [0, 384], sizes = [8, 128], strides = [1, 1]} : vector<8x512xf32> to vector<8x128xf32>
    %342 = math.tanh %341 : vector<8x128xf32>
    %343 = vector.extract_strided_slice %340 {offsets = [0, 0], sizes = [8, 128], strides = [1, 1]} : vector<8x384xf32> to vector<8x128xf32>
    %344 = vector.extract_strided_slice %340 {offsets = [0, 128], sizes = [8, 128], strides = [1, 1]} : vector<8x384xf32> to vector<8x128xf32>
    %345 = vector.extract_strided_slice %340 {offsets = [0, 256], sizes = [8, 128], strides = [1, 1]} : vector<8x384xf32> to vector<8x128xf32>
    %346 = arith.mulf %344, %329 : vector<8x128xf32>
    %347 = arith.mulf %343, %342 : vector<8x128xf32>
    %348 = arith.addf %346, %347 : vector<8x128xf32>
    %349 = math.tanh %348 : vector<8x128xf32>
    %350 = arith.mulf %345, %349 : vector<8x128xf32>
    %c1_117 = arith.constant 1 : index
    %c0_118 = arith.constant 0 : index
    %c0_119 = arith.constant 0 : index
    %351 = vector.load %arg9[%c1_117, %c0_118, %c0_119] : memref<2x8x128xf32, #tpu.memory_space<vmem>>, vector<1x8x128xf32>
    %352 = vector.shape_cast %351 : vector<1x8x128xf32> to vector<8x128xf32>
    %353 = vector.shape_cast %350 : vector<8x128xf32> to vector<1x8x128xf32>
    tpu.vector_store %arg9[%c1_117, %c0_118, %c0_119], %353 {strides = array<i32>} : memref<2x8x128xf32, #tpu.memory_space<vmem>>, vector<1x8x128xf32>,
    %c1_120 = arith.constant 1 : index
    %c0_121 = arith.constant 0 : index
    %c0_122 = arith.constant 0 : index
    %354 = vector.load %arg10[%c1_120, %c0_121, %c0_122] : memref<2x8x128xf32, #tpu.memory_space<vmem>>, vector<1x8x128xf32>
    %355 = vector.shape_cast %354 : vector<1x8x128xf32> to vector<8x128xf32>
    %356 = vector.shape_cast %348 : vector<8x128xf32> to vector<1x8x128xf32>
    tpu.vector_store %arg10[%c1_120, %c0_121, %c0_122], %356 {strides = array<i32>} : memref<2x8x128xf32, #tpu.memory_space<vmem>>, vector<1x8x128xf32>,
    %c0_i32_123 = arith.constant 0 : i32
    %357 = arith.cmpi eq, %arg0, %c0_i32_123 : i32
    %358 = arith.extui %357 : i1 to i32
    %c0_i32_124 = arith.constant 0 : i32
    %359 = arith.cmpi ne, %358, %c0_i32_124 : i32
    scf.if %359 {
      %c0_125 = arith.constant 0 : index
      %c0_126 = arith.constant 0 : index
      %c0_127 = arith.constant 0 : index
      %360 = vector.load %arg9[%c0_125, %c0_126, %c0_127] : memref<2x8x128xf32, #tpu.memory_space<vmem>>, vector<2x8x128xf32>
      %c0_128 = arith.constant 0 : index
      %c0_129 = arith.constant 0 : index
      %c0_130 = arith.constant 0 : index
      %361 = vector.load %arg5[%c0_128, %c0_129, %c0_130] : memref<2x8x128xf32, #tpu.memory_space<vmem>>, vector<2x8x128xf32>
      tpu.vector_store %arg5[%c0_128, %c0_129, %c0_130], %360 {strides = array<i32>} : memref<2x8x128xf32, #tpu.memory_space<vmem>>, vector<2x8x128xf32>,
      %c0_131 = arith.constant 0 : index
      %c0_132 = arith.constant 0 : index
      %c0_133 = arith.constant 0 : index
      %362 = vector.load %arg10[%c0_131, %c0_132, %c0_133] : memref<2x8x128xf32, #tpu.memory_space<vmem>>, vector<2x8x128xf32>
      %c0_134 = arith.constant 0 : index
      %c0_135 = arith.constant 0 : index
      %c0_136 = arith.constant 0 : index
      %363 = vector.load %arg6[%c0_134, %c0_135, %c0_136] : memref<2x8x128xf32, #tpu.memory_space<vmem>>, vector<2x8x128xf32>
      tpu.vector_store %arg6[%c0_134, %c0_135, %c0_136], %362 {strides = array<i32>} : memref<2x8x128xf32, #tpu.memory_space<vmem>>, vector<2x8x128xf32>,
    } else {
    }
    return
  }
  func.func @transform_0(%arg0: i32) -> (i32, i32) {
    %c0_i32 = arith.constant 0 : i32
    %c0_i32_0 = arith.constant 0 : i32
    return %arg0, %c0_i32 : i32, i32
  }
  func.func @transform_1(%arg0: i32) -> (i32, i32, i32) {
    %c0_i32 = arith.constant 0 : i32
    %c0_i32_0 = arith.constant 0 : i32
    %c0_i32_1 = arith.constant 0 : i32
    %c0_i32_2 = arith.constant 0 : i32
    return %c0_i32, %c0_i32_0, %c0_i32_1 : i32, i32, i32
  }
  func.func @transform_2(%arg0: i32) -> (i32, i32, i32) {
    %c0_i32 = arith.constant 0 : i32
    %c0_i32_0 = arith.constant 0 : i32
    %c0_i32_1 = arith.constant 0 : i32
    %c0_i32_2 = arith.constant 0 : i32
    return %c0_i32, %c0_i32_0, %c0_i32_1 : i32, i32, i32
  }
  func.func @transform_3(%arg0: i32) -> (i32, i32, i32) {
    %c0_i32 = arith.constant 0 : i32
    %c0_i32_0 = arith.constant 0 : i32
    %c0_i32_1 = arith.constant 0 : i32
    %c0_i32_2 = arith.constant 0 : i32
    return %c0_i32, %c0_i32_0, %c0_i32_1 : i32, i32, i32
  }
  func.func @transform_4(%arg0: i32) -> (i32, i32, i32) {
    %c0_i32 = arith.constant 0 : i32
    %c0_i32_0 = arith.constant 0 : i32
    %c0_i32_1 = arith.constant 0 : i32
    %c0_i32_2 = arith.constant 0 : i32
    return %c0_i32, %c0_i32_0, %c0_i32_1 : i32, i32, i32
  }
  func.func @transform_5(%arg0: i32) -> (i32, i32, i32) {
    %c0_i32 = arith.constant 0 : i32
    %c0_i32_0 = arith.constant 0 : i32
    %c0_i32_1 = arith.constant 0 : i32
    %c0_i32_2 = arith.constant 0 : i32
    return %c0_i32, %c0_i32_0, %c0_i32_1 : i32, i32, i32
  }
}

</mosaic_0001>

<bundles_post_ra>
// kernel: encoder_forward.1
= control target key start
LH: loop header
LB: loop body
LE: loop exit
PB: predicated region body
PF: predicated region fallthrough
CT: control target
= control target key end

     0   :  { %11 = vsyncpa [#allocation7], 0  ;;  %s6356_s0 = inlined_call_operand.vmem [shape: f32[64,128], index: 0, kind: input, shape index: {}]   ;;  %s6357_s1 = inlined_call_operand.hbm [shape: f32[2,128,512], index: 1, kind: input, shape index: {}]   ;;  %s6358_s2 = inlined_call_operand.hbm [shape: f32[2,128,512], index: 2, kind: input, shape index: {}]   ;;  %s6359_s3 = inlined_call_operand.vmem [shape: f32[2,1,512], index: 3, kind: input, shape index: {}]   ;;  %s6360_s4 = inlined_call_operand.vmem [shape: f32[2,8,128], index: 4, kind: output, shape index: {0}]   ;;  %s6361_s5 = inlined_call_operand.vmem [shape: f32[2,8,128], index: 5, kind: output, shape index: {1}]  }
   0x1   :  { %12 = vsyncpa [#allocation9], 0  ;;  %s5351_s18 = smov [#allocation6]   ;;  %s5303_s22 = scalar_lea.hbm %s6357_s1, 16384 }
   0x2   :  { %s20_s19 = sshll.u32 %s5351_s18, 4  ;;  %p5304_p0 = scmp.ne.s32.totalorder %s6357_s1, %s5303_s22  ;;  %s21_s19 = int_to_ptr.vmem [resolvable:$true] %s20_s19 }
   0x3   :  { %p5307_p1 = scmp.lt.u32.totalorder %s5303_s22, %s6357_s1 }
   0x5   :  { %p5309_p2 = pnand %p5307_p1, %p5304_p0 }
   0x7   :  { %5312 = shalt.err (!%p5309_p2)
}
   0x8   :  { %s5313_s27 = scalar_lea.vmem %s21_s19, 16384  ;;  %p5318_p4 = scmp.lt.s32.totalorder %s21_s19, %s21_s19 }
   0x9   :  { %p5314_p3 = scmp.ne.s32.totalorder %s21_s19, %s5313_s27  ;;  %p5319_p5 = scmp.lt.s32.totalorder %s5313_s27, %s5313_s27 }
   0xb   :  { %p5320_p6 = por %p5319_p5, %p5318_p4 }
   0xd   :  { %p5321_p7 = pnand %p5320_p6, %p5314_p3 }
   0xf   :  { %5324 = shalt.err (!%p5321_p7)
}
  0x10   :  { %s5352_s28 = smov 512   ;;  %s5353_s29 = smov 32  }
  0x11   :  { %26 = dma.hbm_to_vmem [thread:$0]  %s6357_s1, 16384, %s21_s19, [#allocation7], %s5352_s28, %s5352_s28, %s5353_s29  }
  0x12   :  { %s5354_s7 = smov [#allocation8]   ;;  %s5325_s11 = scalar_lea.hbm %s6358_s2, 16384 }
  0x13   :  { %s32_s8 = sshll.u32 %s5354_s7, 4  ;;  %p5326_p8 = scmp.ne.s32.totalorder %s6358_s2, %s5325_s11  ;;  %s33_s8 = int_to_ptr.vmem [resolvable:$true] %s32_s8 }
  0x14   :  { %p5329_p9 = scmp.lt.u32.totalorder %s5325_s11, %s6358_s2 }
  0x16   :  { %p5331_p10 = pnand %p5329_p9, %p5326_p8 }
  0x18   :  { %5334 = shalt.err (!%p5331_p10)
}
  0x19   :  { %s5335_s16 = scalar_lea.vmem %s33_s8, 16384  ;;  %p5340_p12 = scmp.lt.s32.totalorder %s33_s8, %s33_s8 }
  0x1a   :  { %p5336_p11 = scmp.ne.s32.totalorder %s33_s8, %s5335_s16  ;;  %p5341_p13 = scmp.lt.s32.totalorder %s5335_s16, %s5335_s16 }
  0x1c   :  { %p5342_p0 = por %p5341_p13, %p5340_p12 }
  0x1e   :  { %p5343_p1 = pnand %p5342_p0, %p5336_p11 }
  0x20   :  { %5346 = shalt.err (!%p5343_p1)
}
  0x21   :  { %38 = dma.hbm_to_vmem [thread:$0]  %s6358_s2, 16384, %s33_s8, [#allocation9], %s5352_s28, %s5352_s28, %s5353_s29  }
  0x22   :  { %5347 = dma.done.wait [#allocation7], 16384  }
  0x23   :  { %5348 = vsyncadd [#allocation7], 4294950912 }
  0x24   :  { %5349 = dma.done.wait [#allocation9], 16384  }
  0x25   :  { %5350 = vsyncadd [#allocation9], 4294950912  ;;  %v5355_v0 = vmov 0.0   ;;  %v64_v1 = vld [vmem:[#allocation6 + $0x8] sm:$0xff]  ;;  %v66_v3 = vld [vmem:[#allocation6 + $0x18] sm:$0xff] }
  0x26   :  { %277 = vmatprep.mubr.f32.mxu0 %v5355_v0  ;;  %390 = vmatprep.mubr.f32.mxu1 %v5355_v0  ;;  %v68_v2 = vld [vmem:[#allocation6 + $0x28] sm:$0xff]  ;;  %v70_v5 = vld [vmem:[#allocation6 + $0x38] sm:$0xff]  ;;  %v63_v6 = vld [vmem:[#allocation6] sm:$0xff] }
  0x27   :  { %v3762_v4 = vpack.c.bf16 %v68_v2, %v64_v1  ;;  %v67_v7 = vld [vmem:[#allocation6 + $0x20] sm:$0xff]  ;;  %v3794_v8 = vpack.c.bf16 %v70_v5, %v66_v3  ;;  %v65_v10 = vld [vmem:[#allocation6 + $0x10] sm:$0xff]  ;;  %v72_v12 = vld [vmem:[#allocation6 + $0x48] sm:$0xff] }
  0x28   :  { %v3764_v9 = vpack.c.bf16 %v67_v7, %v63_v6  ;;  %v69_v11 = vld [vmem:[#allocation6 + $0x30] sm:$0xff]  ;;  %v76_v14 = vld [vmem:[#allocation6 + $0x68] sm:$0xff]  ;;  %v74_v15 = vld [vmem:[#allocation6 + $0x58] sm:$0xff] }
  0x29   :  { %3763 = vmatprep.subr.bf16.mxu0 %v3762_v4  ;;  %v3796_v13 = vpack.c.bf16 %v69_v11, %v65_v10  ;;  %v78_v16 = vld [vmem:[#allocation6 + $0x78] sm:$0xff]  ;;  %3795 = vmatprep.subr.bf16.mxu1 %v3794_v8  ;;  %v3766_v17 = vpack.c.bf16 %v76_v14, %v72_v12  ;;  %v71_v19 = vld [vmem:[#allocation6 + $0x40] sm:$0xff]  ;;  %v73_v21 = vld [vmem:[#allocation6 + $0x50] sm:$0xff] }
  0x2a   :  { %3765 = vmatpush1.bf16.msra.mxu0 %v3764_v9  ;;  %v3798_v18 = vpack.c.bf16 %v78_v16, %v74_v15  ;;  %v75_v20 = vld [vmem:[#allocation6 + $0x60] sm:$0xff]  ;;  %v77_v23 = vld [vmem:[#allocation6 + $0x70] sm:$0xff]  ;;  %v80_v24 = vld [vmem:[#allocation6 + $0x88] sm:$0xff] }
  0x2b   :  { %3797 = vmatpush1.bf16.msra.mxu1 %v3796_v13  ;;  %v3768_v22 = vpack.c.bf16 %v75_v20, %v71_v19  ;;  %v84_v25 = vld [vmem:[#allocation6 + $0xa8] sm:$0xff]  ;;  %3767 = vmatprep.subr.bf16.mxu0 %v3766_v17  ;;  %v3800_v26 = vpack.c.bf16 %v77_v23, %v73_v21  ;;  %v82_v28 = vld [vmem:[#allocation6 + $0x98] sm:$0xff]  ;;  %v79_v30 = vld [vmem:[#allocation6 + $0x80] sm:$0xff] }
  0x2c   :  { %3799 = vmatprep.subr.bf16.mxu1 %v3798_v18  ;;  %v3770_v27 = vpack.c.bf16 %v84_v25, %v80_v24  ;;  %v86_v29 = vld [vmem:[#allocation6 + $0xb8] sm:$0xff]  ;;  %v83_v32 = vld [vmem:[#allocation6 + $0xa0] sm:$0xff]  ;;  %v81_v33 = vld [vmem:[#allocation6 + $0x90] sm:$0xff] }
  0x2d   :  { %v3802_v31 = vpack.c.bf16 %v86_v29, %v82_v28  ;;  %v85_v34 = vld [vmem:[#allocation6 + $0xb0] sm:$0xff]  ;;  %v3772_v35 = vpack.c.bf16 %v83_v32, %v79_v30  ;;  %v88_v36 = vld [vmem:[#allocation6 + $0xc8] sm:$0xff]  ;;  %v90_v38 = vld [vmem:[#allocation6 + $0xd8] sm:$0xff] }
  0x2e   :  { %3769 = vmatpush1.bf16.msra.mxu0 %v3768_v22  ;;  %v92_v37 = vld [vmem:[#allocation6 + $0xe8] sm:$0xff]  ;;  %v3804_v39 = vpack.c.bf16 %v85_v34, %v81_v33  ;;  %v94_v41 = vld [vmem:[#allocation6 + $0xf8] sm:$0xff]  ;;  %v87_v42 = vld [vmem:[#allocation6 + $0xc0] sm:$0xff] }
  0x2f   :  { %3801 = vmatpush1.bf16.msra.mxu1 %v3800_v26  ;;  %3771 = vmatprep.subr.bf16.mxu0 %v3770_v27  ;;  %v3774_v40 = vpack.c.bf16 %v92_v37, %v88_v36  ;;  %v91_v43 = vld [vmem:[#allocation6 + $0xe0] sm:$0xff]  ;;  %v3806_v44 = vpack.c.bf16 %v94_v41, %v90_v38  ;;  %v89_v45 = vld [vmem:[#allocation6 + $0xd0] sm:$0xff]  ;;  %v96_v47 = vld [vmem:[#allocation6 + $0x108] sm:$0xff] }
  0x30   :  { %3803 = vmatprep.subr.bf16.mxu1 %v3802_v31  ;;  %v93_v46 = vld [vmem:[#allocation6 + $0xf0] sm:$0xff]  ;;  %v100_v48 = vld [vmem:[#allocation6 + $0x128] sm:$0xff]  ;;  %v98_v49 = vld [vmem:[#allocation6 + $0x118] sm:$0xff]  ;;  %v3776_v51 = vpack.c.bf16 %v91_v43, %v87_v42 }
  0x31   :  { %v102_v50 = vld [vmem:[#allocation6 + $0x138] sm:$0xff]  ;;  %v3808_v52 = vpack.c.bf16 %v93_v46, %v89_v45  ;;  %v3778_v53 = vpack.c.bf16 %v100_v48, %v96_v47  ;;  %v95_v54 = vld [vmem:[#allocation6 + $0x100] sm:$0xff]  ;;  %v97_v56 = vld [vmem:[#allocation6 + $0x110] sm:$0xff] }
  0x32   :  { %3773 = vmatpush1.bf16.msra.mxu0 %v3772_v35  ;;  %v99_v55 = vld [vmem:[#allocation6 + $0x120] sm:$0xff]  ;;  %v3810_v57 = vpack.c.bf16 %v102_v50, %v98_v49  ;;  %v101_v58 = vld [vmem:[#allocation6 + $0x130] sm:$0xff]  ;;  %v104_v59 = vld [vmem:[#allocation6 + $0x148] sm:$0xff] }
  0x33   :  { %3805 = vmatpush1.bf16.msra.mxu1 %v3804_v39  ;;  %3775 = vmatprep.subr.bf16.mxu0 %v3774_v40  ;;  %v108_v60 = vld [vmem:[#allocation6 + $0x168] sm:$0xff]  ;;  %v106_v61 = vld [vmem:[#allocation6 + $0x158] sm:$0xff]  ;;  %v3780_v63 = vpack.c.bf16 %v99_v55, %v95_v54  ;;  %v3812_v1 = vpack.c.bf16 %v101_v58, %v97_v56  ;;  %v103_v3 = vld [vmem:[#allocation6 + $0x140] sm:$0xff] }
  0x34   :  { %3807 = vmatprep.subr.bf16.mxu1 %v3806_v44  ;;  %v110_v62 = vld [vmem:[#allocation6 + $0x178] sm:$0xff]  ;;  %v3782_v2 = vpack.c.bf16 %v108_v60, %v104_v59  ;;  %v107_v4 = vld [vmem:[#allocation6 + $0x160] sm:$0xff]  ;;  %v105_v5 = vld [vmem:[#allocation6 + $0x150] sm:$0xff] }
  0x35   :  { %v3814_v6 = vpack.c.bf16 %v110_v62, %v106_v61  ;;  %v109_v7 = vld [vmem:[#allocation6 + $0x170] sm:$0xff]  ;;  %v112_v8 = vld [vmem:[#allocation6 + $0x188] sm:$0xff]  ;;  %v114_v10 = vld [vmem:[#allocation6 + $0x198] sm:$0xff]  ;;  %v3784_v12 = vpack.c.bf16 %v107_v4, %v103_v3 }
  0x36   :  { %3777 = vmatpush1.bf16.msra.mxu0 %v3776_v51  ;;  %v116_v9 = vld [vmem:[#allocation6 + $0x1a8] sm:$0xff]  ;;  %v118_v11 = vld [vmem:[#allocation6 + $0x1b8] sm:$0xff]  ;;  %v3816_v13 = vpack.c.bf16 %v109_v7, %v105_v5  ;;  %v111_v15 = vld [vmem:[#allocation6 + $0x180] sm:$0xff] }
  0x37   :  { %3809 = vmatpush1.bf16.msra.mxu1 %v3808_v52  ;;  %3779 = vmatprep.subr.bf16.mxu0 %v3778_v53  ;;  %v3786_v14 = vpack.c.bf16 %v116_v9, %v112_v8  ;;  %v115_v16 = vld [vmem:[#allocation6 + $0x1a0] sm:$0xff]  ;;  %v113_v17 = vld [vmem:[#allocation6 + $0x190] sm:$0xff]  ;;  %v3818_v18 = vpack.c.bf16 %v118_v11, %v114_v10  ;;  %v120_v20 = vld [vmem:[#allocation6 + $0x1c8] sm:$0xff] }
  0x38   :  { %3811 = vmatprep.subr.bf16.mxu1 %v3810_v57  ;;  %v117_v19 = vld [vmem:[#allocation6 + $0x1b0] sm:$0xff]  ;;  %v124_v21 = vld [vmem:[#allocation6 + $0x1e8] sm:$0xff]  ;;  %v122_v22 = vld [vmem:[#allocation6 + $0x1d8] sm:$0xff]  ;;  %v3788_v24 = vpack.c.bf16 %v115_v16, %v111_v15 }
  0x39   :  { %v126_v23 = vld [vmem:[#allocation6 + $0x1f8] sm:$0xff]  ;;  %v3820_v25 = vpack.c.bf16 %v117_v19, %v113_v17  ;;  %v3790_v26 = vpack.c.bf16 %v124_v21, %v120_v20  ;;  %v119_v27 = vld [vmem:[#allocation6 + $0x1c0] sm:$0xff]  ;;  %v121_v29 = vld [vmem:[#allocation6 + $0x1d0] sm:$0xff] }
  0x3a   :  { %3781 = vmatpush1.bf16.msra.mxu0 %v3780_v63  ;;  %v123_v28 = vld [vmem:[#allocation6 + $0x1e0] sm:$0xff]  ;;  %v3822_v30 = vpack.c.bf16 %v126_v23, %v122_v22  ;;  %v125_v31 = vld [vmem:[#allocation6 + $0x1f0] sm:$0xff]  ;;  %v128_v32 = vld [vmem:[#allocation8 + $0x8] sm:$0xff] }
  0x3b   :  { %3813 = vmatpush1.bf16.msra.mxu1 %v3812_v1  ;;  %3783 = vmatprep.subr.bf16.mxu0 %v3782_v2  ;;  %v132_v33 = vld [vmem:[#allocation8 + $0x28] sm:$0xff]  ;;  %v130_v34 = vld [vmem:[#allocation8 + $0x18] sm:$0xff]  ;;  %v3792_v36 = vpack.c.bf16 %v123_v28, %v119_v27  ;;  %v3824_v37 = vpack.c.bf16 %v125_v31, %v121_v29  ;;  %v127_v39 = vld [vmem:[#allocation8] sm:$0xff] }
  0x3c   :  { %3815 = vmatprep.subr.bf16.mxu1 %v3814_v6  ;;  %v134_v35 = vld [vmem:[#allocation8 + $0x38] sm:$0xff]  ;;  %v5412_v38 = vpack.c.bf16 %v132_v33, %v128_v32  ;;  %v131_v40 = vld [vmem:[#allocation8 + $0x20] sm:$0xff]  ;;  %v129_v42 = vld [vmem:[#allocation8 + $0x10] sm:$0xff] }
  0x3d   :  { %v5414_v41 = vpack.c.bf16 %v134_v35, %v130_v34  ;;  %v133_v43 = vld [vmem:[#allocation8 + $0x30] sm:$0xff]  ;;  %v136_v44 = vld [vmem:[#allocation8 + $0x48] sm:$0xff]  ;;  %v55_v46 = vld [vmem:[%s6356_s0] sm:$0xff]  ;;  %v5419_v47 = vpack.c.bf16 %v131_v40, %v127_v39 }
  0x3e   :  { %3785 = vmatpush1.bf16.msra.mxu0 %v3784_v12  ;;  %v140_v45 = vld [vmem:[#allocation8 + $0x68] sm:$0xff]  ;;  %v138_v48 = vld [vmem:[#allocation8 + $0x58] sm:$0xff]  ;;  %v5422_v50 = vpack.c.bf16 %v133_v43, %v129_v42  ;;  %v135_v51 = vld [vmem:[#allocation8 + $0x40] sm:$0xff] }
  0x3f   :  { %3817 = vmatpush1.bf16.msra.mxu1 %v3816_v13  ;;  %3787 = vmatprep.subr.bf16.mxu0 %v3786_v14  ;;  %v142_v49 = vld [vmem:[#allocation8 + $0x78] sm:$0xff]  ;;  %v139_v52 = vld [vmem:[#allocation8 + $0x60] sm:$0xff]  ;;  %v5425_v53 = vpack.c.bf16 %v140_v45, %v136_v44  ;;  %v137_v54 = vld [vmem:[#allocation8 + $0x50] sm:$0xff] }
  0x40   :  { %3819 = vmatprep.subr.bf16.mxu1 %v3818_v18  ;;  %v141_v55 = vld [vmem:[#allocation8 + $0x70] sm:$0xff]  ;;  %v5427_v56 = vpack.c.bf16 %v142_v49, %v138_v48  ;;  %v144_v57 = vld [vmem:[#allocation8 + $0x88] sm:$0xff]  ;;  %v5433_v60 = vpack.c.bf16 %v139_v52, %v135_v51  ;;  %v146_v61 = vld [vmem:[#allocation8 + $0x98] sm:$0xff] }
  0x41   :  { %v148_v58 = vld [vmem:[#allocation8 + $0xa8] sm:$0xff]  ;;  %v150_v62 = vld [vmem:[#allocation8 + $0xb8] sm:$0xff]  ;;  %v5437_v63 = vpack.c.bf16 %v141_v55, %v137_v54  ;;  %v143_v1 = vld [vmem:[#allocation8 + $0x80] sm:$0xff] }
  0x42   :  { %3789 = vmatpush1.bf16.msra.mxu0 %v3788_v24  ;;  %v56_v59 = vld [vmem:[%s6356_s0 + $0x8] sm:$0xff]  ;;  %v147_v2 = vld [vmem:[#allocation8 + $0xa0] sm:$0xff]  ;;  %v5441_v3 = vpack.c.bf16 %v148_v58, %v144_v57  ;;  %v145_v4 = vld [vmem:[#allocation8 + $0x90] sm:$0xff]  ;;  %v5444_v6 = vpack.c.bf16 %v150_v62, %v146_v61 }
  0x43   :  { %3821 = vmatpush1.bf16.msra.mxu1 %v3820_v25  ;;  %3791 = vmatprep.subr.bf16.mxu0 %v3790_v26  ;;  %v149_v5 = vld [vmem:[#allocation8 + $0xb0] sm:$0xff]  ;;  %v152_v7 = vld [vmem:[#allocation8 + $0xc8] sm:$0xff]  ;;  %v5450_v10 = vpack.c.bf16 %v147_v2, %v143_v1  ;;  %v154_v11 = vld [vmem:[#allocation8 + $0xd8] sm:$0xff] }
  0x44   :  { %3823 = vmatprep.subr.bf16.mxu1 %v3822_v30  ;;  %v156_v8 = vld [vmem:[#allocation8 + $0xe8] sm:$0xff]  ;;  %v57_v9 = vld [vmem:[%s6356_s0 + $0x10] sm:$0xff]  ;;  %v158_v12 = vld [vmem:[#allocation8 + $0xf8] sm:$0xff]  ;;  %v5454_v13 = vpack.c.bf16 %v149_v5, %v145_v4 }
  0x45   :  { %v151_v14 = vld [vmem:[#allocation8 + $0xc0] sm:$0xff]  ;;  %v5458_v16 = vpack.c.bf16 %v156_v8, %v152_v7  ;;  %v153_v17 = vld [vmem:[#allocation8 + $0xd0] sm:$0xff]  ;;  %v5461_v19 = vpack.c.bf16 %v158_v12, %v154_v11  ;;  %v160_v20 = vld [vmem:[#allocation8 + $0x108] sm:$0xff] }
  0x46   :  { %3793 = vmatpush1.bf16.msra.mxu0 %v3792_v36  ;;  %v155_v15 = vld [vmem:[#allocation8 + $0xe0] sm:$0xff]  ;;  %v157_v18 = vld [vmem:[#allocation8 + $0xf0] sm:$0xff]  ;;  %v164_v21 = vld [vmem:[#allocation8 + $0x128] sm:$0xff] }
  0x47   :  { %3825 = vmatpush1.bf16.msra.mxu1 %v3824_v37  ;;  %3827 = vmatprep.subr.bf16.mxu0 %v5412_v38  ;;  %v58_v22 = vld [vmem:[%s6356_s0 + $0x18] sm:$0xff]  ;;  %v5467_v23 = vpack.c.bf16 %v155_v15, %v151_v14  ;;  %v5471_v26 = vpack.c.bf16 %v157_v18, %v153_v17  ;;  %v159_v27 = vld [vmem:[#allocation8 + $0x100] sm:$0xff]  ;;  %v5475_v29 = vpack.c.bf16 %v164_v21, %v160_v20  ;;  %v161_v30 = vld [vmem:[#allocation8 + $0x110] sm:$0xff] }
  0x48   :  { %3859 = vmatprep.subr.bf16.mxu1 %v5414_v41  ;;  %v162_v24 = vld [vmem:[#allocation8 + $0x118] sm:$0xff]  ;;  %v163_v28 = vld [vmem:[#allocation8 + $0x120] sm:$0xff]  ;;  %v165_v31 = vld [vmem:[#allocation8 + $0x130] sm:$0xff] }
  0x49   :  { %278 = vmatmul.mubr.f32.vlgmr.msra.gmra.mrb[0].mxu0 %v55_v46  ;;  %v166_v25 = vld [vmem:[#allocation8 + $0x138] sm:$0xff]  ;;  %v168_v33 = vld [vmem:[#allocation8 + $0x148] sm:$0xff]  ;;  %v59_v35 = vld [vmem:[%s6356_s0 + $0x20] sm:$0xff]  ;;  %v5484_v36 = vpack.c.bf16 %v163_v28, %v159_v27  ;;  %v5488_v40 = vpack.c.bf16 %v165_v31, %v161_v30  ;;  %v193_v28 = vlaneseq }
  0x4a   :  { %391 = vmatmul.mubr.f32.vlgmr.msra.gmra.mrb[0].mxu1 %v55_v46  ;;  %3829 = vmatpush1.bf16.msra.mxu0 %v5419_v47  ;;  %v5478_v32 = vpack.c.bf16 %v166_v25, %v162_v24  ;;  %v172_v34 = vld [vmem:[#allocation8 + $0x168] sm:$0xff]  ;;  %v170_v37 = vld [vmem:[#allocation8 + $0x158] sm:$0xff]  ;;  %v167_v42 = vld [vmem:[#allocation8 + $0x140] sm:$0xff] }
  0x4b   :  { %3861 = vmatpush1.bf16.msra.mxu1 %v5422_v50  ;;  %283 = vmatprep.mubr.f32.mxu0 %v5355_v0  ;;  %v174_v39 = vld [vmem:[#allocation8 + $0x178] sm:$0xff]  ;;  %v171_v43 = vld [vmem:[#allocation8 + $0x160] sm:$0xff]  ;;  %v5492_v44 = vpack.c.bf16 %v172_v34, %v168_v33  ;;  %v169_v45 = vld [vmem:[#allocation8 + $0x150] sm:$0xff]  ;;  %v5586_v30 = vshrl.u32 %v193_v28, 7 }
  0x4c   :  { %396 = vmatprep.mubr.f32.mxu1 %v5355_v0  ;;  %3831 = vmatprep.subr.bf16.mxu0 %v5425_v53  ;;  %v173_v46 = vld [vmem:[#allocation8 + $0x170] sm:$0xff]  ;;  %v5495_v48 = vpack.c.bf16 %v174_v39, %v170_v37  ;;  %v176_v49 = vld [vmem:[#allocation8 + $0x188] sm:$0xff]  ;;  %v5501_v54 = vpack.c.bf16 %v171_v43, %v167_v42  ;;  %v178_v55 = vld [vmem:[#allocation8 + $0x198] sm:$0xff] }
  0x4d   :  { %284 = vmatmul.mubr.f32.gmra.mrb[2].mxu0 %v56_v59  ;;  %3863 = vmatprep.subr.bf16.mxu1 %v5427_v56  ;;  %v180_v51 = vld [vmem:[#allocation8 + $0x1a8] sm:$0xff]  ;;  %v182_v57 = vld [vmem:[#allocation8 + $0x1b8] sm:$0xff]  ;;  %v5505_v58 = vpack.c.bf16 %v173_v46, %v169_v45  ;;  %v179_v61 = vld [vmem:[#allocation8 + $0x1a0] sm:$0xff]  ;;  %v195_v31 = vsub.s32 0, %v5586_v30  ;;  %v199_v34 = vsub.s32 1, %v5586_v30  ;;  %v203_v42 = vsub.s32 2, %v5586_v30 }
  0x4e   :  { %397 = vmatmul.mubr.f32.gmra.mrb[2].mxu1 %v56_v59  ;;  %3833 = vmatpush1.bf16.msra.mxu0 %v5433_v60  ;;  %v60_v52 = vld [vmem:[%s6356_s0 + $0x28] sm:$0xff]  ;;  %v175_v59 = vld [vmem:[#allocation8 + $0x180] sm:$0xff]  ;;  %v5509_v62 = vpack.c.bf16 %v180_v51, %v176_v49  ;;  %v177_v1 = vld [vmem:[#allocation8 + $0x190] sm:$0xff]  ;;  %v5512_v4 = vpack.c.bf16 %v182_v57, %v178_v55 }
  0x4f   :  { %3865 = vmatpush1.bf16.msra.mxu1 %v5437_v63  ;;  %289 = vmatprep.mubr.f32.mxu0 %v5355_v0  ;;  %v181_v2 = vld [vmem:[#allocation8 + $0x1b0] sm:$0xff]  ;;  %v184_v5 = vld [vmem:[#allocation8 + $0x1c8] sm:$0xff]  ;;  %v186_v11 = vld [vmem:[#allocation8 + $0x1d8] sm:$0xff] }
  0x50   :  { %402 = vmatprep.mubr.f32.mxu1 %v5355_v0  ;;  %3835 = vmatprep.subr.bf16.mxu0 %v5441_v3  ;;  %v188_v7 = vld [vmem:[#allocation8 + $0x1e8] sm:$0xff]  ;;  %v61_v8 = vld [vmem:[%s6356_s0 + $0x30] sm:$0xff]  ;;  %v190_v12 = vld [vmem:[#allocation8 + $0x1f8] sm:$0xff]  ;;  %v5522_v14 = vpack.c.bf16 %v181_v2, %v177_v1 }
  0x51   :  { %290 = vmatmul.mubr.f32.gmra.mrb[4].mxu0 %v57_v9  ;;  %3867 = vmatprep.subr.bf16.mxu1 %v5444_v6  ;;  %v183_v15 = vld [vmem:[#allocation8 + $0x1c0] sm:$0xff]  ;;  %v5526_v18 = vpack.c.bf16 %v188_v7, %v184_v5  ;;  %v185_v20 = vld [vmem:[#allocation8 + $0x1d0] sm:$0xff]  ;;  %v62_v24 = vld [vmem:[%s6356_s0 + $0x38] sm:$0xff] }
  0x52   :  { %403 = vmatmul.mubr.f32.gmra.mrb[4].mxu1 %v57_v9  ;;  %3837 = vmatpush1.bf16.msra.mxu0 %v5450_v10  ;;  %v5518_v9 = vpack.c.bf16 %v179_v61, %v175_v59  ;;  %v187_v17 = vld [vmem:[#allocation8 + $0x1e0] sm:$0xff]  ;;  %v189_v21 = vld [vmem:[#allocation8 + $0x1f0] sm:$0xff]  ;;  %v207_v59 = vsub.s32 3, %v5586_v30 }
  0x53   :  { %3869 = vmatpush1.bf16.msra.mxu1 %v5454_v13  ;;  %295 = vmatprep.mubr.f32.mxu0 %v5355_v0  ;;  %v5535_v25 = vpack.c.bf16 %v187_v17, %v183_v15  ;;  %v5539_v27 = vpack.c.bf16 %v189_v21, %v185_v20  ;;  %v191_v33 = vld [vmem:[%s6359_s3] sm:$0xf] }
  0x54   :  { %408 = vmatprep.mubr.f32.mxu1 %v5355_v0  ;;  %3839 = vmatprep.subr.bf16.mxu0 %v5458_v16  ;;  %v5599_v37 = vrot.slane %v191_v33, %v199_v34  ;;  %v5606_v55 = vrot.slane %v191_v33, %v203_v42  ;;  %v5612_v1 = vrot.slane %v191_v33, %v207_v59 }
  0x55   :  { %296 = vmatmul.mubr.f32.gmra.mrb[6].mxu0 %v58_v22  ;;  %3871 = vmatprep.subr.bf16.mxu1 %v5461_v19 }
  0x56   :  { %409 = vmatmul.mubr.f32.gmra.mrb[6].mxu1 %v58_v22  ;;  %3841 = vmatpush1.bf16.msra.mxu0 %v5467_v23  ;;  %v5529_v22 = vpack.c.bf16 %v190_v12, %v186_v11 }
  0x57   :  { %3873 = vmatpush1.bf16.msra.mxu1 %v5471_v26  ;;  %301 = vmatprep.mubr.f32.mxu0 %v5355_v0 }
  0x58   :  { %414 = vmatprep.mubr.f32.mxu1 %v5355_v0  ;;  %3843 = vmatprep.subr.bf16.mxu0 %v5475_v29 }
  0x59   :  { %302 = vmatmul.mubr.f32.gmra.mrb[8].mxu0 %v59_v35  ;;  %3875 = vmatprep.subr.bf16.mxu1 %v5478_v32 }
  0x5a   :  { %415 = vmatmul.mubr.f32.gmra.mrb[8].mxu1 %v59_v35  ;;  %3845 = vmatpush1.bf16.msra.mxu0 %v5484_v36  ;;  %v5595_v35 = vrot.slane %v191_v33, %v195_v31 }
  0x5b   :  { %3877 = vmatpush1.bf16.msra.mxu1 %v5488_v40  ;;  %307 = vmatprep.mubr.f32.mxu0 %v5355_v0 }
  0x5c   :  { %420 = vmatprep.mubr.f32.mxu1 %v5355_v0  ;;  %3847 = vmatprep.subr.bf16.mxu0 %v5492_v44 }
  0x5d   :  { %308 = vmatmul.mubr.f32.gmra.mrb[10].mxu0 %v60_v52  ;;  %3879 = vmatprep.subr.bf16.mxu1 %v5495_v48 }
  0x5e   :  { %421 = vmatmul.mubr.f32.gmra.mrb[10].mxu1 %v60_v52  ;;  %3849 = vmatpush1.bf16.msra.mxu0 %v5501_v54 }
  0x5f   :  { %3881 = vmatpush1.bf16.msra.mxu1 %v5505_v58  ;;  %313 = vmatprep.mubr.f32.mxu0 %v5355_v0 }
  0x60   :  { %426 = vmatprep.mubr.f32.mxu1 %v5355_v0  ;;  %3851 = vmatprep.subr.bf16.mxu0 %v5509_v62 }
  0x61   :  { %314 = vmatmul.mubr.f32.gmra.mrb[12].mxu0 %v61_v8  ;;  %3883 = vmatprep.subr.bf16.mxu1 %v5512_v4 }
  0x62   :  { %427 = vmatmul.mubr.f32.gmra.mrb[12].mxu1 %v61_v8  ;;  %3853 = vmatpush1.bf16.msra.mxu0 %v5518_v9 }
  0x63   :  { %3885 = vmatpush1.bf16.msra.mxu1 %v5522_v14  ;;  %319 = vmatprep.mubr.f32.mxu0 %v5355_v0 }
  0x64   :  { %432 = vmatprep.mubr.f32.mxu1 %v5355_v0  ;;  %3855 = vmatprep.subr.bf16.mxu0 %v5526_v18 }
  0x65   :  { %320 = vmatmul.mubr.f32.gmra.mrb[14].mxu0 %v62_v24  ;;  %3887 = vmatprep.subr.bf16.mxu1 %v5529_v22 }
  0x66   :  { %433 = vmatmul.mubr.f32.gmra.mrb[14].mxu1 %v62_v24  ;;  %3857 = vmatpush1.bf16.msra.mxu0 %v5535_v25 }
  0x67   :  { %3889 = vmatpush1.bf16.msra.mxu1 %v5539_v27  ;;  %541 = vmatprep.mubr.f32.mxu0 %v5355_v0 }
  0x68   :  { %612 = vmatprep.mubr.f32.mxu1 %v5355_v0  ;;  %3891 = vmatprep.subr.bf16.mxu0 %v5412_v38 }
  0x69   :  { %542 = vmatmul.mubr.f32.vlgmr.msra.gmra.mrb[0].mxu0 %v5355_v0  ;;  %3923 = vmatprep.subr.bf16.mxu1 %v5414_v41 }
  0x6a   :  { %613 = vmatmul.mubr.f32.vlgmr.msra.gmra.mrb[0].mxu1 %v5355_v0  ;;  %3893 = vmatpush1.bf16.msra.mxu0 %v5419_v47 }
  0x6b   :  { %3925 = vmatpush1.bf16.msra.mxu1 %v5422_v50  ;;  %3895 = vmatprep.subr.bf16.mxu0 %v5425_v53 }
  0x6c   :  { %3927 = vmatprep.subr.bf16.mxu1 %v5427_v56  ;;  %716 = vmatprep.mubr.f32.mxu0 %v5355_v0 }
  0x6d   :  { %787 = vmatprep.mubr.f32.mxu1 %v5355_v0 }
  0x6e   :  { %3897 = vmatpush1.bf16.msra.mxu0 %v5433_v60 }
  0x6f   :  { %3929 = vmatpush1.bf16.msra.mxu1 %v5437_v63  ;;  %3899 = vmatprep.subr.bf16.mxu0 %v5441_v3 }
  0x70   :  { %3931 = vmatprep.subr.bf16.mxu1 %v5444_v6 }
  0x72   :  { %3901 = vmatpush1.bf16.msra.mxu0 %v5450_v10 }
  0x73   :  { %3933 = vmatpush1.bf16.msra.mxu1 %v5454_v13  ;;  %3903 = vmatprep.subr.bf16.mxu0 %v5458_v16 }
  0x74   :  { %3935 = vmatprep.subr.bf16.mxu1 %v5461_v19 }
  0x76   :  { %3905 = vmatpush1.bf16.msra.mxu0 %v5467_v23 }
  0x77   :  { %3937 = vmatpush1.bf16.msra.mxu1 %v5471_v26  ;;  %3907 = vmatprep.subr.bf16.mxu0 %v5475_v29 }
  0x78   :  { %3939 = vmatprep.subr.bf16.mxu1 %v5478_v32 }
  0x7a   :  { %3909 = vmatpush1.bf16.msra.mxu0 %v5484_v36 }
  0x7b   :  { %3941 = vmatpush1.bf16.msra.mxu1 %v5488_v40  ;;  %3911 = vmatprep.subr.bf16.mxu0 %v5492_v44 }
  0x7c   :  { %3943 = vmatprep.subr.bf16.mxu1 %v5495_v48 }
  0x7e   :  { %3913 = vmatpush1.bf16.msra.mxu0 %v5501_v54 }
  0x7f   :  { %3945 = vmatpush1.bf16.msra.mxu1 %v5505_v58  ;;  %3915 = vmatprep.subr.bf16.mxu0 %v5509_v62 }
  0x80   :  { %3947 = vmatprep.subr.bf16.mxu1 %v5512_v4 }
  0x82   :  { %3917 = vmatpush1.bf16.msra.mxu0 %v5518_v9 }
  0x83   :  { %3949 = vmatpush1.bf16.msra.mxu1 %v5522_v14  ;;  %3919 = vmatprep.subr.bf16.mxu0 %v5526_v18 }
  0x84   :  { %3951 = vmatprep.subr.bf16.mxu1 %v5529_v22 }
  0x86   :  { %3921 = vmatpush1.bf16.msra.mxu0 %v5535_v25 }
  0x87   :  { %3953 = vmatpush1.bf16.msra.mxu1 %v5539_v27  ;;  %3955 = vmatprep.subr.bf16.mxu0 %v5412_v38 }
  0x88   :  { %3987 = vmatprep.subr.bf16.mxu1 %v5414_v41 }
 0x13c   :  { %v543_v39 = vpop.f32.mrb[0].mxu0 }
 0x13d   :  { %v4914_v43 = vadd.f32 %v543_v39, %v5595_v35  ;;  %v614_v45 = vpop.f32.mrb[0].mxu1  ;;  %v545_v46 = vpop.f32.mrb[1].mxu0 }
 0x13e   :  { %v4915_v49 = vadd.f32 %v545_v46, %v5599_v37  ;;  %v616_v51 = vpop.f32.mrb[1].mxu1  ;;  %v4930_v61 = vadd.f32 %v614_v45, %v5606_v55 }
 0x13f   :  { %v3713_v52 = vmul.f32 -1.442695, %v4914_v43  ;;  %v4931_v5 = vadd.f32 %v616_v51, %v5612_v1 }
 0x140   :  { %v3714_v57 = vmul.f32 -1.442695, %v4915_v49  ;;  %v3715_v2 = vmul.f32 -1.442695, %v4930_v61 }
 0x141   :  { %5047 = vpow2.f32 %v3713_v52 }
 0x142   :  { %5049 = vpow2.f32 %v3714_v57 }
 0x143   :  { %5051 = vpow2.f32 %v3715_v2 }
 0x144   :  { %5053 = vtanh.f32 %v4931_v5 }
 0x14b   :  { %v5048_v7 = vpop.eup %5047 }
 0x14c   :  { %v632_v8 = vadd.f32 1.0, %v5048_v7  ;;  %v5050_v11 = vpop.eup %5049 }
 0x14d   :  { %v633_v12 = vadd.f32 1.0, %v5050_v11  ;;  %v5052_v15 = vpop.eup %5051 }
 0x14e   :  { %5055 = vrcp.f32 %v632_v8  ;;  %v5054_v17 = vpop.eup %5053  ;;  %v634_v28 = vadd.f32 1.0, %v5052_v15 }
 0x14f   :  { %5057 = vrcp.f32 %v633_v12 }
 0x150   :  { %5059 = vrcp.f32 %v634_v28 }
 0x158   :  { %v5056_v20 = vpop.eup %5055 }
 0x159   :  { %v643_v21 = vmul.f32 %v5056_v20, %v5054_v17  ;;  %v5058_v24 = vpop.eup %5057 }
 0x15a   :  { %v642_v39 = vmul.f32 0.0, %v5058_v24  ;;  %v5060_v43 = vpop.eup %5059 }
 0x15c   :  { %v5615_v33 = vadd.f32 %v643_v21, %v642_v39 }
 0x15e   :  { %5061 = vtanh.f32 %v5615_v33 }
 0x168   :  { %v5062_v45 = vpop.eup %5061 }
 0x169   :  { %v5618_v46 = vmul.f32 %v5062_v45, %v5060_v43 }
 0x16b   :  { %717 = vmatmul.mubr.f32.vlgmr.msra.gmra.mrb[2].mxu0 %v5618_v46  ;;  %788 = vmatmul.mubr.f32.vlgmr.msra.gmra.mrb[2].mxu1 %v5618_v46 }
 0x16c   :  { %3957 = vmatpush1.bf16.msra.mxu0 %v5419_v47  ;;  %3989 = vmatpush1.bf16.msra.mxu1 %v5422_v50 }
 0x16d   :  { %3959 = vmatprep.subr.bf16.mxu0 %v5425_v53  ;;  %3991 = vmatprep.subr.bf16.mxu1 %v5427_v56 }
 0x16e   :  { %891 = vmatprep.mubr.f32.mxu0 %v5355_v0  ;;  %962 = vmatprep.mubr.f32.mxu1 %v5355_v0 }
 0x170   :  { %3961 = vmatpush1.bf16.msra.mxu0 %v5433_v60  ;;  %3993 = vmatpush1.bf16.msra.mxu1 %v5437_v63 }
 0x171   :  { %3963 = vmatprep.subr.bf16.mxu0 %v5441_v3  ;;  %3995 = vmatprep.subr.bf16.mxu1 %v5444_v6 }
 0x174   :  { %3965 = vmatpush1.bf16.msra.mxu0 %v5450_v10  ;;  %3997 = vmatpush1.bf16.msra.mxu1 %v5454_v13 }
 0x175   :  { %3967 = vmatprep.subr.bf16.mxu0 %v5458_v16  ;;  %3999 = vmatprep.subr.bf16.mxu1 %v5461_v19 }
 0x178   :  { %3969 = vmatpush1.bf16.msra.mxu0 %v5467_v23  ;;  %4001 = vmatpush1.bf16.msra.mxu1 %v5471_v26 }
 0x179   :  { %3971 = vmatprep.subr.bf16.mxu0 %v5475_v29  ;;  %4003 = vmatprep.subr.bf16.mxu1 %v5478_v32 }
 0x17c   :  { %3973 = vmatpush1.bf16.msra.mxu0 %v5484_v36  ;;  %4005 = vmatpush1.bf16.msra.mxu1 %v5488_v40 }
 0x17d   :  { %3975 = vmatprep.subr.bf16.mxu0 %v5492_v44  ;;  %4007 = vmatprep.subr.bf16.mxu1 %v5495_v48 }
 0x180   :  { %3977 = vmatpush1.bf16.msra.mxu0 %v5501_v54  ;;  %4009 = vmatpush1.bf16.msra.mxu1 %v5505_v58 }
 0x181   :  { %3979 = vmatprep.subr.bf16.mxu0 %v5509_v62  ;;  %4011 = vmatprep.subr.bf16.mxu1 %v5512_v4 }
 0x184   :  { %3981 = vmatpush1.bf16.msra.mxu0 %v5518_v9  ;;  %4013 = vmatpush1.bf16.msra.mxu1 %v5522_v14 }
 0x185   :  { %3983 = vmatprep.subr.bf16.mxu0 %v5526_v18  ;;  %4015 = vmatprep.subr.bf16.mxu1 %v5529_v22 }
 0x188   :  { %3985 = vmatpush1.bf16.msra.mxu0 %v5535_v25  ;;  %4017 = vmatpush1.bf16.msra.mxu1 %v5539_v27 }
 0x189   :  { %4019 = vmatprep.subr.bf16.mxu0 %v5412_v38  ;;  %4051 = vmatprep.subr.bf16.mxu1 %v5414_v41 }
 0x23e   :  { %v718_v49 = vpop.f32.mrb[2].mxu0  ;;  %v789_v51 = vpop.f32.mrb[2].mxu1 }
 0x23f   :  { %v4916_v52 = vadd.f32 %v718_v49, %v5595_v35  ;;  %v720_v57 = vpop.f32.mrb[3].mxu0  ;;  %v791_v61 = vpop.f32.mrb[3].mxu1  ;;  %v4932_v8 = vadd.f32 %v789_v51, %v5606_v55 }
 0x240   :  { %v4917_v2 = vadd.f32 %v720_v57, %v5599_v37  ;;  %v4933_v11 = vadd.f32 %v791_v61, %v5612_v1 }
 0x241   :  { %v3716_v5 = vmul.f32 -1.442695, %v4916_v52  ;;  %v3718_v12 = vmul.f32 -1.442695, %v4932_v8 }
 0x242   :  { %v3717_v7 = vmul.f32 -1.442695, %v4917_v2 }
 0x243   :  { %5063 = vpow2.f32 %v3716_v5 }
 0x244   :  { %5065 = vpow2.f32 %v3717_v7 }
 0x245   :  { %5067 = vtanh.f32 %v4933_v11 }
 0x246   :  { %5069 = vpow2.f32 %v3718_v12 }
 0x24d   :  { %v5064_v15 = vpop.eup %5063 }
 0x24e   :  { %v807_v17 = vadd.f32 1.0, %v5064_v15  ;;  %v5066_v20 = vpop.eup %5065 }
 0x24f   :  { %v808_v21 = vadd.f32 1.0, %v5066_v20  ;;  %v5068_v24 = vpop.eup %5067 }
 0x250   :  { %5071 = vrcp.f32 %v807_v17  ;;  %v5070_v28 = vpop.eup %5069 }
 0x251   :  { %5073 = vrcp.f32 %v808_v21  ;;  %v809_v49 = vadd.f32 1.0, %v5070_v28 }
 0x253   :  { %5075 = vrcp.f32 %v809_v49 }
 0x25a   :  { %v5072_v39 = vpop.eup %5071 }
 0x25b   :  { %v818_v43 = vmul.f32 %v5072_v39, %v5068_v24  ;;  %v5074_v45 = vpop.eup %5073 }
 0x25c   :  { %v817_v52 = vmul.f32 %v5074_v45, %v5615_v33 }
 0x25d   :  { %v5076_v57 = vpop.eup %5075 }
 0x25e   :  { %v5661_v51 = vadd.f32 %v818_v43, %v817_v52 }
 0x260   :  { %5077 = vtanh.f32 %v5661_v51 }
 0x26a   :  { %v5078_v61 = vpop.eup %5077 }
 0x26b   :  { %v5664_v2 = vmul.f32 %v5078_v61, %v5076_v57 }
 0x26d   :  { %892 = vmatmul.mubr.f32.vlgmr.msra.gmra.mrb[4].mxu0 %v5664_v2  ;;  %963 = vmatmul.mubr.f32.vlgmr.msra.gmra.mrb[4].mxu1 %v5664_v2 }
 0x26e   :  { %4021 = vmatpush1.bf16.msra.mxu0 %v5419_v47  ;;  %4053 = vmatpush1.bf16.msra.mxu1 %v5422_v50 }
 0x26f   :  { %4023 = vmatprep.subr.bf16.mxu0 %v5425_v53  ;;  %4055 = vmatprep.subr.bf16.mxu1 %v5427_v56 }
 0x270   :  { %1066 = vmatprep.mubr.f32.mxu0 %v5355_v0  ;;  %1137 = vmatprep.mubr.f32.mxu1 %v5355_v0 }
 0x272   :  { %4025 = vmatpush1.bf16.msra.mxu0 %v5433_v60  ;;  %4057 = vmatpush1.bf16.msra.mxu1 %v5437_v63 }
 0x273   :  { %4027 = vmatprep.subr.bf16.mxu0 %v5441_v3  ;;  %4059 = vmatprep.subr.bf16.mxu1 %v5444_v6 }
 0x276   :  { %4029 = vmatpush1.bf16.msra.mxu0 %v5450_v10  ;;  %4061 = vmatpush1.bf16.msra.mxu1 %v5454_v13 }
 0x277   :  { %4031 = vmatprep.subr.bf16.mxu0 %v5458_v16  ;;  %4063 = vmatprep.subr.bf16.mxu1 %v5461_v19 }
 0x27a   :  { %4033 = vmatpush1.bf16.msra.mxu0 %v5467_v23  ;;  %4065 = vmatpush1.bf16.msra.mxu1 %v5471_v26 }
 0x27b   :  { %4035 = vmatprep.subr.bf16.mxu0 %v5475_v29  ;;  %4067 = vmatprep.subr.bf16.mxu1 %v5478_v32 }
 0x27e   :  { %4037 = vmatpush1.bf16.msra.mxu0 %v5484_v36  ;;  %4069 = vmatpush1.bf16.msra.mxu1 %v5488_v40 }
 0x27f   :  { %4039 = vmatprep.subr.bf16.mxu0 %v5492_v44  ;;  %4071 = vmatprep.subr.bf16.mxu1 %v5495_v48 }
 0x282   :  { %4041 = vmatpush1.bf16.msra.mxu0 %v5501_v54  ;;  %4073 = vmatpush1.bf16.msra.mxu1 %v5505_v58 }
 0x283   :  { %4043 = vmatprep.subr.bf16.mxu0 %v5509_v62  ;;  %4075 = vmatprep.subr.bf16.mxu1 %v5512_v4 }
 0x286   :  { %4045 = vmatpush1.bf16.msra.mxu0 %v5518_v9  ;;  %4077 = vmatpush1.bf16.msra.mxu1 %v5522_v14 }
 0x287   :  { %4047 = vmatprep.subr.bf16.mxu0 %v5526_v18  ;;  %4079 = vmatprep.subr.bf16.mxu1 %v5529_v22 }
 0x28a   :  { %4049 = vmatpush1.bf16.msra.mxu0 %v5535_v25  ;;  %4081 = vmatpush1.bf16.msra.mxu1 %v5539_v27 }
 0x28b   :  { %4083 = vmatprep.subr.bf16.mxu0 %v5412_v38  ;;  %4115 = vmatprep.subr.bf16.mxu1 %v5414_v41 }
 0x340   :  { %v893_v33 = vpop.f32.mrb[4].mxu0  ;;  %v964_v5 = vpop.f32.mrb[4].mxu1 }
 0x341   :  { %v4918_v7 = vadd.f32 %v893_v33, %v5595_v35  ;;  %v895_v8 = vpop.f32.mrb[5].mxu0  ;;  %v966_v11 = vpop.f32.mrb[5].mxu1  ;;  %v4934_v20 = vadd.f32 %v964_v5, %v5606_v55 }
 0x342   :  { %v4919_v12 = vadd.f32 %v895_v8, %v5599_v37  ;;  %v4935_v21 = vadd.f32 %v966_v11, %v5612_v1 }
 0x343   :  { %v3719_v15 = vmul.f32 -1.442695, %v4918_v7  ;;  %v3721_v24 = vmul.f32 -1.442695, %v4934_v20 }
 0x344   :  { %v3720_v17 = vmul.f32 -1.442695, %v4919_v12 }
 0x345   :  { %5079 = vpow2.f32 %v3719_v15 }
 0x346   :  { %5081 = vpow2.f32 %v3720_v17 }
 0x347   :  { %5083 = vtanh.f32 %v4935_v21 }
 0x348   :  { %5085 = vpow2.f32 %v3721_v24 }
 0x34f   :  { %v5080_v28 = vpop.eup %5079 }
 0x350   :  { %v982_v39 = vadd.f32 1.0, %v5080_v28  ;;  %v5082_v43 = vpop.eup %5081 }
 0x351   :  { %v983_v45 = vadd.f32 1.0, %v5082_v43  ;;  %v5084_v49 = vpop.eup %5083 }
 0x352   :  { %5087 = vrcp.f32 %v982_v39  ;;  %v5086_v52 = vpop.eup %5085 }
 0x353   :  { %5089 = vrcp.f32 %v983_v45  ;;  %v984_v7 = vadd.f32 1.0, %v5086_v52 }
 0x355   :  { %5091 = vrcp.f32 %v984_v7 }
 0x35c   :  { %v5088_v57 = vpop.eup %5087 }
 0x35d   :  { %v993_v61 = vmul.f32 %v5088_v57, %v5084_v49  ;;  %v5090_v33 = vpop.eup %5089 }
 0x35e   :  { %v992_v8 = vmul.f32 %v5090_v33, %v5661_v51 }
 0x35f   :  { %v5092_v11 = vpop.eup %5091 }
 0x360   :  { %v5707_v5 = vadd.f32 %v993_v61, %v992_v8 }
 0x362   :  { %5093 = vtanh.f32 %v5707_v5 }
 0x36c   :  { %v5094_v12 = vpop.eup %5093 }
 0x36d   :  { %v5710_v15 = vmul.f32 %v5094_v12, %v5092_v11 }
 0x36f   :  { %1067 = vmatmul.mubr.f32.vlgmr.msra.gmra.mrb[6].mxu0 %v5710_v15  ;;  %1138 = vmatmul.mubr.f32.vlgmr.msra.gmra.mrb[6].mxu1 %v5710_v15 }
 0x370   :  { %4085 = vmatpush1.bf16.msra.mxu0 %v5419_v47  ;;  %4117 = vmatpush1.bf16.msra.mxu1 %v5422_v50 }
 0x371   :  { %4087 = vmatprep.subr.bf16.mxu0 %v5425_v53  ;;  %4119 = vmatprep.subr.bf16.mxu1 %v5427_v56 }
 0x372   :  { %1241 = vmatprep.mubr.f32.mxu0 %v5355_v0  ;;  %1312 = vmatprep.mubr.f32.mxu1 %v5355_v0 }
 0x374   :  { %4089 = vmatpush1.bf16.msra.mxu0 %v5433_v60  ;;  %4121 = vmatpush1.bf16.msra.mxu1 %v5437_v63 }
 0x375   :  { %4091 = vmatprep.subr.bf16.mxu0 %v5441_v3  ;;  %4123 = vmatprep.subr.bf16.mxu1 %v5444_v6 }
 0x378   :  { %4093 = vmatpush1.bf16.msra.mxu0 %v5450_v10  ;;  %4125 = vmatpush1.bf16.msra.mxu1 %v5454_v13 }
 0x379   :  { %4095 = vmatprep.subr.bf16.mxu0 %v5458_v16  ;;  %4127 = vmatprep.subr.bf16.mxu1 %v5461_v19 }
 0x37c   :  { %4097 = vmatpush1.bf16.msra.mxu0 %v5467_v23  ;;  %4129 = vmatpush1.bf16.msra.mxu1 %v5471_v26 }
 0x37d   :  { %4099 = vmatprep.subr.bf16.mxu0 %v5475_v29  ;;  %4131 = vmatprep.subr.bf16.mxu1 %v5478_v32 }
 0x380   :  { %4101 = vmatpush1.bf16.msra.mxu0 %v5484_v36  ;;  %4133 = vmatpush1.bf16.msra.mxu1 %v5488_v40 }
 0x381   :  { %4103 = vmatprep.subr.bf16.mxu0 %v5492_v44  ;;  %4135 = vmatprep.subr.bf16.mxu1 %v5495_v48 }
 0x384   :  { %4105 = vmatpush1.bf16.msra.mxu0 %v5501_v54  ;;  %4137 = vmatpush1.bf16.msra.mxu1 %v5505_v58 }
 0x385   :  { %4107 = vmatprep.subr.bf16.mxu0 %v5509_v62  ;;  %4139 = vmatprep.subr.bf16.mxu1 %v5512_v4 }
 0x388   :  { %4109 = vmatpush1.bf16.msra.mxu0 %v5518_v9  ;;  %4141 = vmatpush1.bf16.msra.mxu1 %v5522_v14 }
 0x389   :  { %4111 = vmatprep.subr.bf16.mxu0 %v5526_v18  ;;  %4143 = vmatprep.subr.bf16.mxu1 %v5529_v22 }
 0x38c   :  { %4113 = vmatpush1.bf16.msra.mxu0 %v5535_v25  ;;  %4145 = vmatpush1.bf16.msra.mxu1 %v5539_v27 }
 0x38d   :  { %4147 = vmatprep.subr.bf16.mxu0 %v5412_v38  ;;  %4179 = vmatprep.subr.bf16.mxu1 %v5414_v41 }
 0x442   :  { %v1068_v51 = vpop.f32.mrb[6].mxu0  ;;  %v1139_v17 = vpop.f32.mrb[6].mxu1 }
 0x443   :  { %v4920_v20 = vadd.f32 %v1068_v51, %v5595_v35  ;;  %v1070_v21 = vpop.f32.mrb[7].mxu0  ;;  %v1141_v24 = vpop.f32.mrb[7].mxu1  ;;  %v4936_v45 = vadd.f32 %v1139_v17, %v5606_v55 }
 0x444   :  { %v4921_v28 = vadd.f32 %v1070_v21, %v5599_v37  ;;  %v4937_v49 = vadd.f32 %v1141_v24, %v5612_v1 }
 0x445   :  { %v3722_v39 = vmul.f32 -1.442695, %v4920_v20  ;;  %v3724_v52 = vmul.f32 -1.442695, %v4936_v45 }
 0x446   :  { %v3723_v43 = vmul.f32 -1.442695, %v4921_v28 }
 0x447   :  { %5095 = vpow2.f32 %v3722_v39 }
 0x448   :  { %5097 = vpow2.f32 %v3723_v43 }
 0x449   :  { %5099 = vtanh.f32 %v4937_v49 }
 0x44a   :  { %5101 = vpow2.f32 %v3724_v52 }
 0x451   :  { %v5096_v57 = vpop.eup %5095 }
 0x452   :  { %v1157_v61 = vadd.f32 1.0, %v5096_v57  ;;  %v5098_v33 = vpop.eup %5097 }
 0x453   :  { %v1158_v7 = vadd.f32 1.0, %v5098_v33  ;;  %v5100_v8 = vpop.eup %5099 }
 0x454   :  { %5103 = vrcp.f32 %v1157_v61  ;;  %v5102_v11 = vpop.eup %5101 }
 0x455   :  { %5105 = vrcp.f32 %v1158_v7  ;;  %v1159_v21 = vadd.f32 1.0, %v5102_v11 }
 0x457   :  { %5107 = vrcp.f32 %v1159_v21 }
 0x45e   :  { %v5104_v12 = vpop.eup %5103 }
 0x45f   :  { %v1168_v51 = vmul.f32 %v5104_v12, %v5100_v8  ;;  %v5106_v20 = vpop.eup %5105 }
 0x460   :  { %v1167_v28 = vmul.f32 %v5106_v20, %v5707_v5 }
 0x461   :  { %v5108_v24 = vpop.eup %5107 }
 0x462   :  { %v5753_v17 = vadd.f32 %v1168_v51, %v1167_v28 }
 0x464   :  { %5109 = vtanh.f32 %v5753_v17 }
 0x46e   :  { %v5110_v39 = vpop.eup %5109 }
 0x46f   :  { %v5756_v43 = vmul.f32 %v5110_v39, %v5108_v24 }
 0x471   :  { %1242 = vmatmul.mubr.f32.vlgmr.msra.gmra.mrb[8].mxu0 %v5756_v43  ;;  %1313 = vmatmul.mubr.f32.vlgmr.msra.gmra.mrb[8].mxu1 %v5756_v43 }
 0x472   :  { %4149 = vmatpush1.bf16.msra.mxu0 %v5419_v47  ;;  %4181 = vmatpush1.bf16.msra.mxu1 %v5422_v50 }
 0x473   :  { %4151 = vmatprep.subr.bf16.mxu0 %v5425_v53  ;;  %4183 = vmatprep.subr.bf16.mxu1 %v5427_v56 }
 0x474   :  { %1416 = vmatprep.mubr.f32.mxu0 %v5355_v0  ;;  %1487 = vmatprep.mubr.f32.mxu1 %v5355_v0 }
 0x476   :  { %4153 = vmatpush1.bf16.msra.mxu0 %v5433_v60  ;;  %4185 = vmatpush1.bf16.msra.mxu1 %v5437_v63 }
 0x477   :  { %4155 = vmatprep.subr.bf16.mxu0 %v5441_v3  ;;  %4187 = vmatprep.subr.bf16.mxu1 %v5444_v6 }
 0x47a   :  { %4157 = vmatpush1.bf16.msra.mxu0 %v5450_v10  ;;  %4189 = vmatpush1.bf16.msra.mxu1 %v5454_v13 }
 0x47b   :  { %4159 = vmatprep.subr.bf16.mxu0 %v5458_v16  ;;  %4191 = vmatprep.subr.bf16.mxu1 %v5461_v19 }
 0x47e   :  { %4161 = vmatpush1.bf16.msra.mxu0 %v5467_v23  ;;  %4193 = vmatpush1.bf16.msra.mxu1 %v5471_v26 }
 0x47f   :  { %4163 = vmatprep.subr.bf16.mxu0 %v5475_v29  ;;  %4195 = vmatprep.subr.bf16.mxu1 %v5478_v32 }
 0x482   :  { %4165 = vmatpush1.bf16.msra.mxu0 %v5484_v36  ;;  %4197 = vmatpush1.bf16.msra.mxu1 %v5488_v40 }
 0x483   :  { %4167 = vmatprep.subr.bf16.mxu0 %v5492_v44  ;;  %4199 = vmatprep.subr.bf16.mxu1 %v5495_v48 }
 0x486   :  { %4169 = vmatpush1.bf16.msra.mxu0 %v5501_v54  ;;  %4201 = vmatpush1.bf16.msra.mxu1 %v5505_v58 }
 0x487   :  { %4171 = vmatprep.subr.bf16.mxu0 %v5509_v62  ;;  %4203 = vmatprep.subr.bf16.mxu1 %v5512_v4 }
 0x48a   :  { %4173 = vmatpush1.bf16.msra.mxu0 %v5518_v9  ;;  %4205 = vmatpush1.bf16.msra.mxu1 %v5522_v14 }
 0x48b   :  { %4175 = vmatprep.subr.bf16.mxu0 %v5526_v18  ;;  %4207 = vmatprep.subr.bf16.mxu1 %v5529_v22 }
 0x48e   :  { %4177 = vmatpush1.bf16.msra.mxu0 %v5535_v25  ;;  %4209 = vmatpush1.bf16.msra.mxu1 %v5539_v27 }
 0x48f   :  { %4211 = vmatprep.subr.bf16.mxu0 %v5412_v38  ;;  %4243 = vmatprep.subr.bf16.mxu1 %v5414_v41 }
 0x544   :  { %v1243_v5 = vpop.f32.mrb[8].mxu0  ;;  %v1314_v45 = vpop.f32.mrb[8].mxu1 }
 0x545   :  { %v4922_v49 = vadd.f32 %v1243_v5, %v5595_v35  ;;  %v1245_v52 = vpop.f32.mrb[9].mxu0  ;;  %v1316_v57 = vpop.f32.mrb[9].mxu1  ;;  %v4938_v8 = vadd.f32 %v1314_v45, %v5606_v55 }
 0x546   :  { %v4923_v61 = vadd.f32 %v1245_v52, %v5599_v37  ;;  %v4939_v11 = vadd.f32 %v1316_v57, %v5612_v1 }
 0x547   :  { %v3725_v33 = vmul.f32 -1.442695, %v4922_v49  ;;  %v3727_v12 = vmul.f32 -1.442695, %v4938_v8 }
 0x548   :  { %v3726_v7 = vmul.f32 -1.442695, %v4923_v61 }
 0x549   :  { %5111 = vpow2.f32 %v3725_v33 }
 0x54a   :  { %5113 = vpow2.f32 %v3726_v7 }
 0x54b   :  { %5115 = vtanh.f32 %v4939_v11 }
 0x54c   :  { %5117 = vpow2.f32 %v3727_v12 }
 0x553   :  { %v5112_v51 = vpop.eup %5111 }
 0x554   :  { %v1332_v20 = vadd.f32 1.0, %v5112_v51  ;;  %v5114_v21 = vpop.eup %5113 }
 0x555   :  { %v1333_v28 = vadd.f32 1.0, %v5114_v21  ;;  %v5116_v24 = vpop.eup %5115 }
 0x556   :  { %5119 = vrcp.f32 %v1332_v20  ;;  %v5118_v39 = vpop.eup %5117 }
 0x557   :  { %5121 = vrcp.f32 %v1333_v28  ;;  %v1334_v61 = vadd.f32 1.0, %v5118_v39 }
 0x559   :  { %5123 = vrcp.f32 %v1334_v61 }
 0x560   :  { %v5120_v5 = vpop.eup %5119 }
 0x561   :  { %v1343_v49 = vmul.f32 %v5120_v5, %v5116_v24  ;;  %v5122_v52 = vpop.eup %5121 }
 0x562   :  { %v1342_v33 = vmul.f32 %v5122_v52, %v5753_v17 }
 0x563   :  { %v5124_v57 = vpop.eup %5123 }
 0x564   :  { %v5799_v45 = vadd.f32 %v1343_v49, %v1342_v33 }
 0x566   :  { %5125 = vtanh.f32 %v5799_v45 }
 0x570   :  { %v5126_v7 = vpop.eup %5125 }
 0x571   :  { %v5802_v8 = vmul.f32 %v5126_v7, %v5124_v57 }
 0x573   :  { %1417 = vmatmul.mubr.f32.vlgmr.msra.gmra.mrb[10].mxu0 %v5802_v8  ;;  %1488 = vmatmul.mubr.f32.vlgmr.msra.gmra.mrb[10].mxu1 %v5802_v8 }
 0x574   :  { %4213 = vmatpush1.bf16.msra.mxu0 %v5419_v47  ;;  %4245 = vmatpush1.bf16.msra.mxu1 %v5422_v50 }
 0x575   :  { %4215 = vmatprep.subr.bf16.mxu0 %v5425_v53  ;;  %4247 = vmatprep.subr.bf16.mxu1 %v5427_v56 }
 0x576   :  { %1591 = vmatprep.mubr.f32.mxu0 %v5355_v0  ;;  %1662 = vmatprep.mubr.f32.mxu1 %v5355_v0 }
 0x578   :  { %4217 = vmatpush1.bf16.msra.mxu0 %v5433_v60  ;;  %4249 = vmatpush1.bf16.msra.mxu1 %v5437_v63 }
 0x579   :  { %4219 = vmatprep.subr.bf16.mxu0 %v5441_v3  ;;  %4251 = vmatprep.subr.bf16.mxu1 %v5444_v6 }
 0x57c   :  { %4221 = vmatpush1.bf16.msra.mxu0 %v5450_v10  ;;  %4253 = vmatpush1.bf16.msra.mxu1 %v5454_v13 }
 0x57d   :  { %4223 = vmatprep.subr.bf16.mxu0 %v5458_v16  ;;  %4255 = vmatprep.subr.bf16.mxu1 %v5461_v19 }
 0x580   :  { %4225 = vmatpush1.bf16.msra.mxu0 %v5467_v23  ;;  %4257 = vmatpush1.bf16.msra.mxu1 %v5471_v26 }
 0x581   :  { %4227 = vmatprep.subr.bf16.mxu0 %v5475_v29  ;;  %4259 = vmatprep.subr.bf16.mxu1 %v5478_v32 }
 0x584   :  { %4229 = vmatpush1.bf16.msra.mxu0 %v5484_v36  ;;  %4261 = vmatpush1.bf16.msra.mxu1 %v5488_v40 }
 0x585   :  { %4231 = vmatprep.subr.bf16.mxu0 %v5492_v44  ;;  %4263 = vmatprep.subr.bf16.mxu1 %v5495_v48 }
 0x588   :  { %4233 = vmatpush1.bf16.msra.mxu0 %v5501_v54  ;;  %4265 = vmatpush1.bf16.msra.mxu1 %v5505_v58 }
 0x589   :  { %4235 = vmatprep.subr.bf16.mxu0 %v5509_v62  ;;  %4267 = vmatprep.subr.bf16.mxu1 %v5512_v4 }
 0x58c   :  { %4237 = vmatpush1.bf16.msra.mxu0 %v5518_v9  ;;  %4269 = vmatpush1.bf16.msra.mxu1 %v5522_v14 }
 0x58d   :  { %4239 = vmatprep.subr.bf16.mxu0 %v5526_v18  ;;  %4271 = vmatprep.subr.bf16.mxu1 %v5529_v22 }
 0x590   :  { %4241 = vmatpush1.bf16.msra.mxu0 %v5535_v25  ;;  %4273 = vmatpush1.bf16.msra.mxu1 %v5539_v27 }
 0x591   :  { %4275 = vmatprep.subr.bf16.mxu0 %v5412_v38  ;;  %4307 = vmatprep.subr.bf16.mxu1 %v5414_v41 }
 0x646   :  { %v1418_v17 = vpop.f32.mrb[10].mxu0  ;;  %v1489_v11 = vpop.f32.mrb[10].mxu1 }
 0x647   :  { %v4924_v12 = vadd.f32 %v1418_v17, %v5595_v35  ;;  %v1420_v51 = vpop.f32.mrb[11].mxu0  ;;  %v1491_v20 = vpop.f32.mrb[11].mxu1  ;;  %v4940_v39 = vadd.f32 %v1489_v11, %v5606_v55 }
 0x648   :  { %v4925_v21 = vadd.f32 %v1420_v51, %v5599_v37  ;;  %v4941_v5 = vadd.f32 %v1491_v20, %v5612_v1 }
 0x649   :  { %v3728_v28 = vmul.f32 -1.442695, %v4924_v12  ;;  %v3730_v49 = vmul.f32 -1.442695, %v4940_v39  ;;  %v1878_v39 = vld [vmem:[#allocation6 + $0x210] sm:$0xff] }
 0x64a   :  { %v3729_v24 = vmul.f32 -1.442695, %v4925_v21 }
 0x64b   :  { %5127 = vpow2.f32 %v3728_v28 }
 0x64c   :  { %5129 = vpow2.f32 %v3729_v24 }
 0x64d   :  { %5131 = vtanh.f32 %v4941_v5  ;;  %v1882_v5 = vld [vmem:[#allocation6 + $0x230] sm:$0xff] }
 0x64e   :  { %5133 = vpow2.f32 %v3730_v49  ;;  %v1885_v49 = vld [vmem:[#allocation6 + $0x248] sm:$0xff] }
 0x655   :  { %v5128_v38 = vpop.eup %5127 }
 0x656   :  { %v1507_v52 = vadd.f32 1.0, %v5128_v38  ;;  %v5130_v41 = vpop.eup %5129  ;;  %v1889_v38 = vld [vmem:[#allocation6 + $0x268] sm:$0xff] }
 0x657   :  { %v1508_v61 = vadd.f32 1.0, %v5130_v41  ;;  %v5132_v33 = vpop.eup %5131  ;;  %v1891_v41 = vld [vmem:[#allocation6 + $0x278] sm:$0xff] }
 0x658   :  { %5135 = vrcp.f32 %v1507_v52  ;;  %v5134_v57 = vpop.eup %5133  ;;  %v1887_v52 = vld [vmem:[#allocation6 + $0x258] sm:$0xff] }
 0x659   :  { %5137 = vrcp.f32 %v1508_v61  ;;  %v1509_v51 = vadd.f32 1.0, %v5134_v57 }
 0x65b   :  { %5139 = vrcp.f32 %v1509_v51 }
 0x662   :  { %v5136_v7 = vpop.eup %5135 }
 0x663   :  { %v1518_v17 = vmul.f32 %v5136_v7, %v5132_v33  ;;  %v5138_v12 = vpop.eup %5137  ;;  %v4372_v7 = vpack.c.bf16 %v1882_v5, %v1878_v39  ;;  %v1908_v39 = vld [vmem:[#allocation6 + $0x300] sm:$0xff] }
 0x664   :  { %v1517_v21 = vmul.f32 %v5138_v12, %v5799_v45  ;;  %v1880_v45 = vld [vmem:[#allocation6 + $0x220] sm:$0xff] }
 0x665   :  { %v5140_v20 = vpop.eup %5139  ;;  %v1888_v12 = vld [vmem:[#allocation6 + $0x260] sm:$0xff] }
 0x666   :  { %v5845_v11 = vadd.f32 %v1518_v17, %v1517_v21  ;;  %v1884_v17 = vld [vmem:[#allocation6 + $0x240] sm:$0xff]  ;;  %v4342_v21 = vpack.c.bf16 %v1889_v38, %v1885_v49 }
 0x667   :  { %v1912_v5 = vld [vmem:[#allocation6 + $0x320] sm:$0xff] }
 0x668   :  { %5141 = vtanh.f32 %v5845_v11 }
 0x672   :  { %v5142_v28 = vpop.eup %5141 }
 0x673   :  { %v5848_v24 = vmul.f32 %v5142_v28, %v5140_v20  ;;  %v1886_v20 = vld [vmem:[#allocation6 + $0x250] sm:$0xff] }
 0x674   :  { %v1890_v28 = vld [vmem:[#allocation6 + $0x270] sm:$0xff] }
 0x675   :  { %1592 = vmatmul.mubr.f32.vlgmr.msra.gmra.mrb[12].mxu0 %v5848_v24  ;;  %1663 = vmatmul.mubr.f32.vlgmr.msra.gmra.mrb[12].mxu1 %v5848_v24 }
 0x676   :  { %4277 = vmatpush1.bf16.msra.mxu0 %v5419_v47  ;;  %4309 = vmatpush1.bf16.msra.mxu1 %v5422_v50  ;;  %v1877_v47 = vld [vmem:[#allocation6 + $0x208] sm:$0xff] }
 0x677   :  { %4279 = vmatprep.subr.bf16.mxu0 %v5425_v53  ;;  %4311 = vmatprep.subr.bf16.mxu1 %v5427_v56  ;;  %v1881_v50 = vld [vmem:[#allocation6 + $0x228] sm:$0xff]  ;;  %v1879_v53 = vld [vmem:[#allocation6 + $0x218] sm:$0xff] }
 0x678   :  { %1766 = vmatprep.mubr.f32.mxu0 %v5355_v0  ;;  %1837 = vmatprep.mubr.f32.mxu1 %v5355_v0  ;;  %v4338_v56 = vpack.c.bf16 %v1881_v50, %v1877_v47  ;;  %v1893_v47 = vld [vmem:[#allocation6 + $0x288] sm:$0xff] }
 0x679   :  { %v1897_v50 = vld [vmem:[#allocation6 + $0x2a8] sm:$0xff] }
 0x67a   :  { %4281 = vmatpush1.bf16.msra.mxu0 %v5433_v60  ;;  %4313 = vmatpush1.bf16.msra.mxu1 %v5437_v63  ;;  %v1883_v60 = vld [vmem:[#allocation6 + $0x238] sm:$0xff] }
 0x67b   :  { %4283 = vmatprep.subr.bf16.mxu0 %v5441_v3  ;;  %4315 = vmatprep.subr.bf16.mxu1 %v5444_v6  ;;  %v4370_v63 = vpack.c.bf16 %v1883_v60, %v1879_v53  ;;  %v1895_v53 = vld [vmem:[#allocation6 + $0x298] sm:$0xff]  ;;  %v4344_v60 = vpack.c.bf16 %v1888_v12, %v1884_v17  ;;  %v4356_v17 = vpack.c.bf16 %v1912_v5, %v1908_v39  ;;  %v1943_v5 = vld [vmem:[#allocation8 + $0x210] sm:$0xff] }
 0x67e   :  { %4285 = vmatpush1.bf16.msra.mxu0 %v5450_v10  ;;  %4317 = vmatpush1.bf16.msra.mxu1 %v5454_v13 }
 0x67f   :  { %4287 = vmatprep.subr.bf16.mxu0 %v5458_v16  ;;  %4319 = vmatprep.subr.bf16.mxu1 %v5461_v19 }
 0x682   :  { %4289 = vmatpush1.bf16.msra.mxu0 %v5467_v23  ;;  %4321 = vmatpush1.bf16.msra.mxu1 %v5471_v26 }
 0x683   :  { %4291 = vmatprep.subr.bf16.mxu0 %v5475_v29  ;;  %4323 = vmatprep.subr.bf16.mxu1 %v5478_v32 }
 0x686   :  { %4293 = vmatpush1.bf16.msra.mxu0 %v5484_v36  ;;  %4325 = vmatpush1.bf16.msra.mxu1 %v5488_v40 }
 0x687   :  { %4295 = vmatprep.subr.bf16.mxu0 %v5492_v44  ;;  %4327 = vmatprep.subr.bf16.mxu1 %v5495_v48 }
 0x68a   :  { %4297 = vmatpush1.bf16.msra.mxu0 %v5501_v54  ;;  %4329 = vmatpush1.bf16.msra.mxu1 %v5505_v58 }
 0x68b   :  { %4299 = vmatprep.subr.bf16.mxu0 %v5509_v62  ;;  %4331 = vmatprep.subr.bf16.mxu1 %v5512_v4 }
 0x68e   :  { %4301 = vmatpush1.bf16.msra.mxu0 %v5518_v9  ;;  %4333 = vmatpush1.bf16.msra.mxu1 %v5522_v14 }
 0x68f   :  { %4303 = vmatprep.subr.bf16.mxu0 %v5526_v18  ;;  %4335 = vmatprep.subr.bf16.mxu1 %v5529_v22 }
 0x692   :  { %4305 = vmatpush1.bf16.msra.mxu0 %v5535_v25  ;;  %4337 = vmatpush1.bf16.msra.mxu1 %v5539_v27  ;;  %v1876_v27 = vld [vmem:[#allocation6 + $0x200] sm:$0xff] }
 0x693   :  { %4339 = vmatprep.subr.bf16.mxu0 %v4338_v56  ;;  %4371 = vmatprep.subr.bf16.mxu1 %v4370_v63  ;;  %v4340_v57 = vpack.c.bf16 %v1880_v45, %v1876_v27  ;;  %v1899_v56 = vld [vmem:[#allocation6 + $0x2b8] sm:$0xff]  ;;  %v4376_v63 = vpack.c.bf16 %v1890_v28, %v1886_v20 }
 0x748   :  { %v1593_v3 = vpop.f32.mrb[12].mxu0  ;;  %v1664_v6 = vpop.f32.mrb[12].mxu1 }
 0x749   :  { %v4926_v10 = vadd.f32 %v1593_v3, %v5595_v35  ;;  %v1595_v13 = vpop.f32.mrb[13].mxu0  ;;  %v1666_v16 = vpop.f32.mrb[13].mxu1  ;;  %v4942_v29 = vadd.f32 %v1664_v6, %v5606_v55  ;;  %v1892_v3 = vld [vmem:[#allocation6 + $0x280] sm:$0xff] }
 0x74a   :  { %v4927_v19 = vadd.f32 %v1595_v13, %v5599_v37  ;;  %v4943_v32 = vadd.f32 %v1666_v16, %v5612_v1  ;;  %v1896_v6 = vld [vmem:[#allocation6 + $0x2a0] sm:$0xff]  ;;  %v4378_v13 = vpack.c.bf16 %v1899_v56, %v1895_v53  ;;  %v1894_v16 = vld [vmem:[#allocation6 + $0x290] sm:$0xff]  ;;  %v1925_v53 = vld [vmem:[#allocation6 + $0x388] sm:$0xff] }
 0x74b   :  { %v3731_v23 = vmul.f32 -1.442695, %v4926_v10  ;;  %v3733_v36 = vmul.f32 -1.442695, %v4942_v29  ;;  %v4346_v10 = vpack.c.bf16 %v1897_v50, %v1893_v47  ;;  %v1903_v29 = vld [vmem:[#allocation6 + $0x2d8] sm:$0xff]  ;;  %v1918_v47 = vld [vmem:[#allocation6 + $0x350] sm:$0xff] }
 0x74c   :  { %v3732_v26 = vmul.f32 -1.442695, %v4927_v19  ;;  %v1898_v19 = vld [vmem:[#allocation6 + $0x2b0] sm:$0xff]  ;;  %v1929_v56 = vld [vmem:[#allocation6 + $0x3a8] sm:$0xff] }
 0x74d   :  { %5143 = vpow2.f32 %v3731_v23  ;;  %v1901_v23 = vld [vmem:[#allocation6 + $0x2c8] sm:$0xff]  ;;  %v1922_v50 = vld [vmem:[#allocation6 + $0x370] sm:$0xff] }
 0x74e   :  { %5145 = vpow2.f32 %v3732_v26  ;;  %v1905_v26 = vld [vmem:[#allocation6 + $0x2e8] sm:$0xff] }
 0x74f   :  { %5147 = vtanh.f32 %v4943_v32  ;;  %v1907_v32 = vld [vmem:[#allocation6 + $0x2f8] sm:$0xff] }
 0x750   :  { %5149 = vpow2.f32 %v3733_v36  ;;  %v4348_v36 = vpack.c.bf16 %v1896_v6, %v1892_v3  ;;  %v4392_v6 = vpack.c.bf16 %v1922_v50, %v1918_v47  ;;  %v1962_v47 = vld [vmem:[#allocation8 + $0x2a8] sm:$0xff]  ;;  %v1960_v50 = vld [vmem:[#allocation8 + $0x298] sm:$0xff] }
 0x757   :  { %v5144_v40 = vpop.eup %5143 }
 0x758   :  { %v1682_v44 = vadd.f32 1.0, %v5144_v40  ;;  %v5146_v48 = vpop.eup %5145  ;;  %v4380_v40 = vpack.c.bf16 %v1898_v19, %v1894_v16  ;;  %v4362_v16 = vpack.c.bf16 %v1929_v56, %v1925_v53  ;;  %v1964_v56 = vld [vmem:[#allocation8 + $0x2b8] sm:$0xff] }
 0x759   :  { %v1683_v54 = vadd.f32 1.0, %v5146_v48  ;;  %v5148_v58 = vpop.eup %5147  ;;  %v1904_v48 = vld [vmem:[#allocation6 + $0x2e0] sm:$0xff] }
 0x75a   :  { %5151 = vrcp.f32 %v1682_v44  ;;  %v5150_v62 = vpop.eup %5149  ;;  %v1900_v44 = vld [vmem:[#allocation6 + $0x2c0] sm:$0xff] }
 0x75b   :  { %5153 = vrcp.f32 %v1683_v54  ;;  %v1684_v18 = vadd.f32 1.0, %v5150_v62  ;;  %v4350_v54 = vpack.c.bf16 %v1905_v26, %v1901_v23  ;;  %v1902_v62 = vld [vmem:[#allocation6 + $0x2d0] sm:$0xff]  ;;  %v4352_v27 = vpack.c.bf16 %v1904_v48, %v1900_v44 }
 0x75c   :  { %v1926_v23 = vld [vmem:[#allocation6 + $0x390] sm:$0xff] }
 0x75d   :  { %5155 = vrcp.f32 %v1684_v18  ;;  %v1911_v18 = vld [vmem:[#allocation6 + $0x318] sm:$0xff]  ;;  %v1930_v26 = vld [vmem:[#allocation6 + $0x3b0] sm:$0xff] }
 0x75e   :  { %v4396_v48 = vpack.c.bf16 %v1930_v26, %v1926_v23  ;;  %v1970_v23 = vld [vmem:[#allocation8 + $0x2e8] sm:$0xff]  ;;  %v1968_v26 = vld [vmem:[#allocation8 + $0x2d8] sm:$0xff] }
 0x764   :  { %v5152_v4 = vpop.eup %5151 }
 0x765   :  { %v1693_v9 = vmul.f32 %v5152_v4, %v5148_v58  ;;  %v5154_v14 = vpop.eup %5153  ;;  %v4382_v58 = vpack.c.bf16 %v1907_v32, %v1903_v29  ;;  %v1906_v4 = vld [vmem:[#allocation6 + $0x2f0] sm:$0xff]  ;;  %v1933_v29 = vld [vmem:[#allocation6 + $0x3c8] sm:$0xff] }
 0x766   :  { %v1692_v22 = vmul.f32 %v5154_v14, %v5845_v11  ;;  %v4374_v11 = vpack.c.bf16 %v1891_v41, %v1887_v52  ;;  %v1913_v14 = vld [vmem:[#allocation6 + $0x328] sm:$0xff]  ;;  %v4384_v45 = vpack.c.bf16 %v1906_v4, %v1902_v62  ;;  %v1910_v52 = vld [vmem:[#allocation6 + $0x310] sm:$0xff]  ;;  %v1936_v4 = vld [vmem:[#allocation6 + $0x3e0] sm:$0xff] }
 0x767   :  { %v5156_v61 = vpop.eup %5155  ;;  %v1914_v41 = vld [vmem:[#allocation6 + $0x330] sm:$0xff]  ;;  %v1937_v32 = vld [vmem:[#allocation6 + $0x3e8] sm:$0xff] }
 0x768   :  { %v5889_v25 = vadd.f32 %v1693_v9, %v1692_v22  ;;  %v1909_v9 = vld [vmem:[#allocation6 + $0x308] sm:$0xff]  ;;  %v1915_v22 = vld [vmem:[#allocation6 + $0x338] sm:$0xff]  ;;  %v4388_v12 = vpack.c.bf16 %v1914_v41, %v1910_v52 }
 0x769   :  { %v4354_v49 = vpack.c.bf16 %v1913_v14, %v1909_v9  ;;  %v4386_v38 = vpack.c.bf16 %v1915_v22, %v1911_v18  ;;  %v1934_v9 = vld [vmem:[#allocation6 + $0x3d0] sm:$0xff]  ;;  %v1954_v52 = vld [vmem:[#allocation8 + $0x268] sm:$0xff]  ;;  %v1952_v41 = vld [vmem:[#allocation8 + $0x258] sm:$0xff] }
 0x76a   :  { %5157 = vtanh.f32 %v5889_v25  ;;  %v1938_v14 = vld [vmem:[#allocation6 + $0x3f0] sm:$0xff] }
 0x76b   :  { %v4400_v22 = vpack.c.bf16 %v1938_v14, %v1934_v9  ;;  %v1978_v9 = vld [vmem:[#allocation8 + $0x328] sm:$0xff]  ;;  %v1976_v14 = vld [vmem:[#allocation8 + $0x318] sm:$0xff] }
 0x774   :  { %v5158_v33 = vpop.eup %5157 }
 0x775   :  { %v5892_v51 = vmul.f32 %v5158_v33, %v5156_v61  ;;  %v1917_v61 = vld [vmem:[#allocation6 + $0x348] sm:$0xff] }
 0x776   :  { %v1921_v33 = vld [vmem:[#allocation6 + $0x368] sm:$0xff] }
 0x777   :  { %1767 = vmatmul.mubr.f32.vlgmr.msra.gmra.mrb[14].mxu0 %v5892_v51  ;;  %1838 = vmatmul.mubr.f32.vlgmr.msra.gmra.mrb[14].mxu1 %v5892_v51  ;;  %v4358_v20 = vpack.c.bf16 %v1921_v33, %v1917_v61  ;;  %v1956_v33 = vld [vmem:[#allocation8 + $0x278] sm:$0xff] }
 0x778   :  { %4341 = vmatpush1.bf16.msra.mxu0 %v4340_v57  ;;  %4373 = vmatpush1.bf16.msra.mxu1 %v4372_v7  ;;  %v1919_v57 = vld [vmem:[#allocation6 + $0x358] sm:$0xff] }
 0x779   :  { %4343 = vmatprep.subr.bf16.mxu0 %v4342_v21  ;;  %4375 = vmatprep.subr.bf16.mxu1 %v4374_v11  ;;  %v1923_v7 = vld [vmem:[#allocation6 + $0x378] sm:$0xff]  ;;  %v1916_v21 = vld [vmem:[#allocation6 + $0x340] sm:$0xff] }
 0x77a   :  { %2100 = vmatprep.mubr.f32.mxu0 %v5355_v0  ;;  %2213 = vmatprep.mubr.f32.mxu1 %v5355_v0  ;;  %v1920_v11 = vld [vmem:[#allocation6 + $0x360] sm:$0xff]  ;;  %v4390_v28 = vpack.c.bf16 %v1923_v7, %v1919_v57 }
 0x77b   :  { %v4360_v3 = vpack.c.bf16 %v1920_v11, %v1916_v21  ;;  %v1949_v57 = vld [vmem:[#allocation8 + $0x240] sm:$0xff]  ;;  %v1951_v21 = vld [vmem:[#allocation8 + $0x250] sm:$0xff] }
 0x77c   :  { %4345 = vmatpush1.bf16.msra.mxu0 %v4344_v60  ;;  %4377 = vmatpush1.bf16.msra.mxu1 %v4376_v63  ;;  %v1927_v60 = vld [vmem:[#allocation6 + $0x398] sm:$0xff]  ;;  %v1953_v7 = vld [vmem:[#allocation8 + $0x260] sm:$0xff]  ;;  %v1955_v11 = vld [vmem:[#allocation8 + $0x270] sm:$0xff] }
 0x77d   :  { %4347 = vmatprep.subr.bf16.mxu0 %v4346_v10  ;;  %4379 = vmatprep.subr.bf16.mxu1 %v4378_v13  ;;  %v1931_v63 = vld [vmem:[#allocation6 + $0x3b8] sm:$0xff]  ;;  %v1924_v10 = vld [vmem:[#allocation6 + $0x380] sm:$0xff] }
 0x77e   :  { %v1928_v13 = vld [vmem:[#allocation6 + $0x3a0] sm:$0xff]  ;;  %v4394_v19 = vpack.c.bf16 %v1931_v63, %v1927_v60 }
 0x77f   :  { %v4364_v44 = vpack.c.bf16 %v1928_v13, %v1924_v10  ;;  %v1957_v60 = vld [vmem:[#allocation8 + $0x280] sm:$0xff]  ;;  %v1959_v10 = vld [vmem:[#allocation8 + $0x290] sm:$0xff] }
 0x780   :  { %4349 = vmatpush1.bf16.msra.mxu0 %v4348_v36  ;;  %4381 = vmatpush1.bf16.msra.mxu1 %v4380_v40  ;;  %v1935_v36 = vld [vmem:[#allocation6 + $0x3d8] sm:$0xff]  ;;  %v1961_v63 = vld [vmem:[#allocation8 + $0x2a0] sm:$0xff]  ;;  %v1963_v13 = vld [vmem:[#allocation8 + $0x2b0] sm:$0xff] }
 0x781   :  { %4351 = vmatprep.subr.bf16.mxu0 %v4350_v54  ;;  %4383 = vmatprep.subr.bf16.mxu1 %v4382_v58  ;;  %v1939_v40 = vld [vmem:[#allocation6 + $0x3f8] sm:$0xff]  ;;  %v1932_v54 = vld [vmem:[#allocation6 + $0x3c0] sm:$0xff]  ;;  %v4366_v58 = vpack.c.bf16 %v1937_v32, %v1933_v29 }
 0x782   :  { %v4398_v62 = vpack.c.bf16 %v1939_v40, %v1935_v36  ;;  %v4368_v18 = vpack.c.bf16 %v1936_v4, %v1932_v54  ;;  %v1972_v32 = vld [vmem:[#allocation8 + $0x2f8] sm:$0xff]  ;;  %v1965_v36 = vld [vmem:[#allocation8 + $0x2c0] sm:$0xff]  ;;  %v1967_v54 = vld [vmem:[#allocation8 + $0x2d0] sm:$0xff] }
 0x783   :  { %v1969_v40 = vld [vmem:[#allocation8 + $0x2e0] sm:$0xff]  ;;  %v1974_v4 = vld [vmem:[#allocation8 + $0x308] sm:$0xff] }
 0x784   :  { %4353 = vmatpush1.bf16.msra.mxu0 %v4352_v27  ;;  %4385 = vmatpush1.bf16.msra.mxu1 %v4384_v45  ;;  %v1941_v27 = vld [vmem:[#allocation8 + $0x200] sm:$0xff] }
 0x785   :  { %4355 = vmatprep.subr.bf16.mxu0 %v4354_v49  ;;  %4387 = vmatprep.subr.bf16.mxu1 %v4386_v38  ;;  %v1947_v49 = vld [vmem:[#allocation8 + $0x230] sm:$0xff]  ;;  %v1950_v38 = vld [vmem:[#allocation8 + $0x248] sm:$0xff] }
 0x786   :  { %v5938_v61 = vpack.c.bf16 %v1954_v52, %v1950_v38  ;;  %v1986_v38 = vld [vmem:[#allocation8 + $0x368] sm:$0xff]  ;;  %v1984_v52 = vld [vmem:[#allocation8 + $0x358] sm:$0xff] }
 0x788   :  { %4357 = vmatpush1.bf16.msra.mxu0 %v4356_v17  ;;  %4389 = vmatpush1.bf16.msra.mxu1 %v4388_v12  ;;  %v5940_v17 = vpack.c.bf16 %v1956_v33, %v1952_v41  ;;  %v5942_v12 = vpack.c.bf16 %v1953_v7, %v1949_v57  ;;  %v1988_v41 = vld [vmem:[#allocation8 + $0x378] sm:$0xff]  ;;  %v1981_v7 = vld [vmem:[#allocation8 + $0x340] sm:$0xff] }
 0x789   :  { %4359 = vmatprep.subr.bf16.mxu0 %v4358_v20  ;;  %4391 = vmatprep.subr.bf16.mxu1 %v4390_v28  ;;  %v5945_v20 = vpack.c.bf16 %v1955_v11, %v1951_v21  ;;  %v1958_v28 = vld [vmem:[#allocation8 + $0x288] sm:$0xff]  ;;  %v5987_v57 = vpack.c.bf16 %v1988_v41, %v1984_v52  ;;  %v1985_v21 = vld [vmem:[#allocation8 + $0x360] sm:$0xff]  ;;  %v1983_v11 = vld [vmem:[#allocation8 + $0x350] sm:$0xff] }
 0x78a   :  { %v5950_v53 = vpack.c.bf16 %v1962_v47, %v1958_v28  ;;  %v5990_v28 = vpack.c.bf16 %v1985_v21, %v1981_v7  ;;  %v1987_v47 = vld [vmem:[#allocation8 + $0x370] sm:$0xff] }
 0x78c   :  { %4361 = vmatpush1.bf16.msra.mxu0 %v4360_v3  ;;  %4393 = vmatpush1.bf16.msra.mxu1 %v4392_v6  ;;  %v5952_v3 = vpack.c.bf16 %v1964_v56, %v1960_v50  ;;  %v5954_v6 = vpack.c.bf16 %v1961_v63, %v1957_v60  ;;  %v1990_v50 = vld [vmem:[#allocation8 + $0x388] sm:$0xff]  ;;  %v5994_v60 = vpack.c.bf16 %v1987_v47, %v1983_v11 }
 0x78d   :  { %4363 = vmatprep.subr.bf16.mxu0 %v4362_v16  ;;  %4395 = vmatprep.subr.bf16.mxu1 %v4394_v19  ;;  %v5957_v16 = vpack.c.bf16 %v1963_v13, %v1959_v10  ;;  %v1966_v19 = vld [vmem:[#allocation8 + $0x2c8] sm:$0xff]  ;;  %v1992_v10 = vld [vmem:[#allocation8 + $0x398] sm:$0xff] }
 0x78e   :  { %v5962_v29 = vpack.c.bf16 %v1970_v23, %v1966_v19  ;;  %v1994_v56 = vld [vmem:[#allocation8 + $0x3a8] sm:$0xff]  ;;  %v1996_v13 = vld [vmem:[#allocation8 + $0x3b8] sm:$0xff]  ;;  %v1989_v19 = vld [vmem:[#allocation8 + $0x380] sm:$0xff] }
 0x78f   :  { %v5996_v63 = vpack.c.bf16 %v1994_v56, %v1990_v50  ;;  %v5998_v23 = vpack.c.bf16 %v1996_v13, %v1992_v10 }
 0x790   :  { %4365 = vmatpush1.bf16.msra.mxu0 %v4364_v44  ;;  %4397 = vmatpush1.bf16.msra.mxu1 %v4396_v48  ;;  %v5964_v44 = vpack.c.bf16 %v1972_v32, %v1968_v26  ;;  %v5966_v48 = vpack.c.bf16 %v1969_v40, %v1965_v36  ;;  %v1993_v26 = vld [vmem:[#allocation8 + $0x3a0] sm:$0xff]  ;;  %v1991_v32 = vld [vmem:[#allocation8 + $0x390] sm:$0xff] }
 0x791   :  { %4367 = vmatprep.subr.bf16.mxu0 %v4366_v58  ;;  %4399 = vmatprep.subr.bf16.mxu1 %v4398_v62  ;;  %v1971_v58 = vld [vmem:[#allocation8 + $0x2f0] sm:$0xff]  ;;  %v6001_v40 = vpack.c.bf16 %v1993_v26, %v1989_v19 }
 0x792   :  { %v5969_v62 = vpack.c.bf16 %v1971_v58, %v1967_v54  ;;  %v1995_v36 = vld [vmem:[#allocation8 + $0x3b0] sm:$0xff]  ;;  %v1998_v58 = vld [vmem:[#allocation8 + $0x3c8] sm:$0xff] }
 0x793   :  { %v6005_v54 = vpack.c.bf16 %v1995_v36, %v1991_v32 }
 0x794   :  { %4369 = vmatpush1.bf16.msra.mxu0 %v4368_v18  ;;  %4401 = vmatpush1.bf16.msra.mxu1 %v4400_v22  ;;  %v5974_v18 = vpack.c.bf16 %v1978_v9, %v1974_v4  ;;  %v1980_v22 = vld [vmem:[#allocation8 + $0x338] sm:$0xff]  ;;  %v2002_v4 = vld [vmem:[#allocation8 + $0x3e8] sm:$0xff] }
 0x795   :  { %v2000_v9 = vld [vmem:[#allocation8 + $0x3d8] sm:$0xff] }
 0x797   :  { %2101 = vmatmul.mubr.f32.vlgmr.msra.gmra.mrb[16].mxu0 %v5618_v46  ;;  %2214 = vmatmul.mubr.f32.vlgmr.msra.gmra.mrb[16].mxu1 %v5618_v46  ;;  %v1942_v46 = vld [vmem:[#allocation8 + $0x208] sm:$0xff] }
 0x798   :  { %2106 = vmatprep.mubr.f32.mxu0 %v5355_v0  ;;  %2219 = vmatprep.mubr.f32.mxu1 %v5355_v0 }
 0x79b   :  { %2107 = vmatmul.mubr.f32.gmra.mrb[18].mxu0 %v5664_v2  ;;  %2220 = vmatmul.mubr.f32.gmra.mrb[18].mxu1 %v5664_v2  ;;  %v1946_v2 = vld [vmem:[#allocation8 + $0x228] sm:$0xff] }
 0x79c   :  { %2112 = vmatprep.mubr.f32.mxu0 %v5355_v0  ;;  %2225 = vmatprep.mubr.f32.mxu1 %v5355_v0 }
 0x79f   :  { %2113 = vmatmul.mubr.f32.gmra.mrb[20].mxu0 %v5710_v15  ;;  %2226 = vmatmul.mubr.f32.gmra.mrb[20].mxu1 %v5710_v15  ;;  %v1944_v15 = vld [vmem:[#allocation8 + $0x218] sm:$0xff] }
 0x7a0   :  { %2118 = vmatprep.mubr.f32.mxu0 %v5355_v0  ;;  %2231 = vmatprep.mubr.f32.mxu1 %v5355_v0 }
 0x7a3   :  { %2119 = vmatmul.mubr.f32.gmra.mrb[22].mxu0 %v5756_v43  ;;  %2232 = vmatmul.mubr.f32.gmra.mrb[22].mxu1 %v5756_v43  ;;  %v5926_v43 = vpack.c.bf16 %v1946_v2, %v1942_v46  ;;  %v1973_v46 = vld [vmem:[#allocation8 + $0x300] sm:$0xff] }
 0x7a4   :  { %2124 = vmatprep.mubr.f32.mxu0 %v5355_v0  ;;  %2237 = vmatprep.mubr.f32.mxu1 %v5355_v0  ;;  %v1977_v2 = vld [vmem:[#allocation8 + $0x320] sm:$0xff] }
 0x7a5   :  { %4403 = vmatprep.subr.bf16.mxu0 %v5926_v43 }
 0x7a7   :  { %2125 = vmatmul.mubr.f32.gmra.mrb[24].mxu0 %v5802_v8  ;;  %2238 = vmatmul.mubr.f32.gmra.mrb[24].mxu1 %v5802_v8  ;;  %v1948_v8 = vld [vmem:[#allocation8 + $0x238] sm:$0xff] }
 0x7a8   :  { %2130 = vmatprep.mubr.f32.mxu0 %v5355_v0  ;;  %2243 = vmatprep.mubr.f32.mxu1 %v5355_v0  ;;  %v5928_v45 = vpack.c.bf16 %v1948_v8, %v1944_v15  ;;  %v5976_v15 = vpack.c.bf16 %v1980_v22, %v1976_v14  ;;  %v5978_v8 = vpack.c.bf16 %v1977_v2, %v1973_v46  ;;  %v2004_v22 = vld [vmem:[#allocation8 + $0x3f8] sm:$0xff]  ;;  %v1997_v46 = vld [vmem:[#allocation8 + $0x3c0] sm:$0xff] }
 0x7a9   :  { %v6010_v14 = vpack.c.bf16 %v2002_v4, %v1998_v58  ;;  %v2001_v2 = vld [vmem:[#allocation8 + $0x3e0] sm:$0xff] }
 0x7aa   :  { %4435 = vmatprep.subr.bf16.mxu1 %v5928_v45 }
 0x7ab   :  { %2131 = vmatmul.mubr.f32.gmra.mrb[26].mxu0 %v5848_v24  ;;  %2244 = vmatmul.mubr.f32.gmra.mrb[26].mxu1 %v5848_v24  ;;  %v1945_v24 = vld [vmem:[#allocation8 + $0x220] sm:$0xff] }
 0x7ac   :  { %2136 = vmatprep.mubr.f32.mxu0 %v5355_v0  ;;  %2249 = vmatprep.mubr.f32.mxu1 %v5355_v0  ;;  %v5930_v39 = vpack.c.bf16 %v1945_v24, %v1941_v27  ;;  %v1975_v27 = vld [vmem:[#allocation8 + $0x310] sm:$0xff] }
 0x7ad   :  { %v1979_v24 = vld [vmem:[#allocation8 + $0x330] sm:$0xff] }
 0x7ae   :  { %4405 = vmatpush1.bf16.msra.mxu0 %v5930_v39 }
 0x7af   :  { %2137 = vmatmul.mubr.f32.gmra.mrb[28].mxu0 %v5892_v51  ;;  %2250 = vmatmul.mubr.f32.gmra.mrb[28].mxu1 %v5892_v51  ;;  %v5933_v51 = vpack.c.bf16 %v1947_v49, %v1943_v5  ;;  %v1982_v5 = vld [vmem:[#allocation8 + $0x348] sm:$0xff]  ;;  %v5981_v49 = vpack.c.bf16 %v1979_v24, %v1975_v27  ;;  %v6012_v27 = vpack.c.bf16 %v2004_v22, %v2000_v9 }
 0x7b0   :  { %2142 = vmatprep.mubr.f32.mxu0 %v5355_v0  ;;  %2255 = vmatprep.mubr.f32.mxu1 %v5355_v0  ;;  %v5985_v33 = vpack.c.bf16 %v1986_v38, %v1982_v5  ;;  %v6014_v24 = vpack.c.bf16 %v2001_v2, %v1997_v46  ;;  %v1999_v5 = vld [vmem:[#allocation8 + $0x3d0] sm:$0xff] }
 0x7b1   :  { %4437 = vmatpush1.bf16.msra.mxu1 %v5933_v51  ;;  %4407 = vmatprep.subr.bf16.mxu0 %v5938_v61  ;;  %v2003_v38 = vld [vmem:[#allocation8 + $0x3f0] sm:$0xff] }
 0x7b2   :  { %4439 = vmatprep.subr.bf16.mxu1 %v5940_v17  ;;  %4409 = vmatpush1.bf16.msra.mxu0 %v5942_v12  ;;  %v6017_v52 = vpack.c.bf16 %v2003_v38, %v1999_v5 }
 0x7b3   :  { %4411 = vmatprep.subr.bf16.mxu0 %v5950_v53 }
 0x7b5   :  { %4441 = vmatpush1.bf16.msra.mxu1 %v5945_v20 }
 0x7b6   :  { %4443 = vmatprep.subr.bf16.mxu1 %v5952_v3  ;;  %4413 = vmatpush1.bf16.msra.mxu0 %v5954_v6 }
 0x7b7   :  { %4415 = vmatprep.subr.bf16.mxu0 %v5962_v29 }
 0x7b9   :  { %4445 = vmatpush1.bf16.msra.mxu1 %v5957_v16 }
 0x7ba   :  { %4447 = vmatprep.subr.bf16.mxu1 %v5964_v44  ;;  %4417 = vmatpush1.bf16.msra.mxu0 %v5966_v48 }
 0x7bb   :  { %4419 = vmatprep.subr.bf16.mxu0 %v5974_v18 }
 0x7bd   :  { %4449 = vmatpush1.bf16.msra.mxu1 %v5969_v62 }
 0x7be   :  { %4451 = vmatprep.subr.bf16.mxu1 %v5976_v15  ;;  %4421 = vmatpush1.bf16.msra.mxu0 %v5978_v8 }
 0x7bf   :  { %4423 = vmatprep.subr.bf16.mxu0 %v5985_v33 }
 0x7c1   :  { %4453 = vmatpush1.bf16.msra.mxu1 %v5981_v49 }
 0x7c2   :  { %4455 = vmatprep.subr.bf16.mxu1 %v5987_v57  ;;  %4425 = vmatpush1.bf16.msra.mxu0 %v5990_v28 }
 0x7c3   :  { %4427 = vmatprep.subr.bf16.mxu0 %v5996_v63 }
 0x7c5   :  { %4457 = vmatpush1.bf16.msra.mxu1 %v5994_v60 }
 0x7c6   :  { %4459 = vmatprep.subr.bf16.mxu1 %v5998_v23  ;;  %4429 = vmatpush1.bf16.msra.mxu0 %v6001_v40 }
 0x7c7   :  { %4431 = vmatprep.subr.bf16.mxu0 %v6010_v14 }
 0x7c9   :  { %4461 = vmatpush1.bf16.msra.mxu1 %v6005_v54 }
 0x7ca   :  { %4463 = vmatprep.subr.bf16.mxu1 %v6012_v27  ;;  %4433 = vmatpush1.bf16.msra.mxu0 %v6014_v24 }
 0x7cb   :  { %4467 = vmatprep.subr.bf16.mxu0 %v5926_v43 }
 0x7cd   :  { %4465 = vmatpush1.bf16.msra.mxu1 %v6017_v52 }
 0x7ce   :  { %4499 = vmatprep.subr.bf16.mxu1 %v5928_v45 }
 0x84a   :  { %v1768_v41 = vpop.f32.mrb[14].mxu0  ;;  %v1839_v7 = vpop.f32.mrb[14].mxu1 }
 0x84b   :  { %v4928_v21 = vadd.f32 %v1768_v41, %v5595_v35  ;;  %v1770_v11 = vpop.f32.mrb[15].mxu0  ;;  %v1841_v47 = vpop.f32.mrb[15].mxu1  ;;  %v4944_v13 = vadd.f32 %v1839_v7, %v5606_v55 }
 0x84c   :  { %v4929_v50 = vadd.f32 %v1770_v11, %v5599_v37  ;;  %v4945_v19 = vadd.f32 %v1841_v47, %v5612_v1 }
 0x84d   :  { %v3734_v56 = vmul.f32 -1.442695, %v4928_v21  ;;  %v3736_v26 = vmul.f32 -1.442695, %v4944_v13 }
 0x84e   :  { %v3735_v10 = vmul.f32 -1.442695, %v4929_v50 }
 0x84f   :  { %5159 = vpow2.f32 %v3734_v56 }
 0x850   :  { %5161 = vpow2.f32 %v3735_v10 }
 0x851   :  { %5163 = vtanh.f32 %v4945_v19 }
 0x852   :  { %5165 = vpow2.f32 %v3736_v26 }
 0x859   :  { %v5160_v32 = vpop.eup %5159 }
 0x85a   :  { %v1857_v36 = vadd.f32 1.0, %v5160_v32  ;;  %v5162_v58 = vpop.eup %5161 }
 0x85b   :  { %v1858_v35 = vadd.f32 1.0, %v5162_v58  ;;  %v5164_v4 = vpop.eup %5163 }
 0x85c   :  { %5167 = vrcp.f32 %v1857_v36  ;;  %v5166_v9 = vpop.eup %5165 }
 0x85d   :  { %5169 = vrcp.f32 %v1858_v35  ;;  %v1859_v2 = vadd.f32 1.0, %v5166_v9 }
 0x85f   :  { %5171 = vrcp.f32 %v1859_v2 }
 0x866   :  { %v5168_v37 = vpop.eup %5167 }
 0x867   :  { %v1868_v22 = vmul.f32 %v5168_v37, %v5164_v4  ;;  %v5170_v46 = vpop.eup %5169 }
 0x868   :  { %v1867_v5 = vmul.f32 %v5170_v46, %v5889_v25  ;;  %v3737_v25 = vld [vmem:[%s6359_s3 + $0x4] sm:$0xf] }
 0x869   :  { %v5172_v1 = vpop.eup %5171  ;;  %v6078_v7 = vrot.slane %v3737_v25, %v195_v31  ;;  %v6082_v21 = vrot.slane %v3737_v25, %v199_v34  ;;  %v6088_v32 = vrot.slane %v3737_v25, %v203_v42  ;;  %v6092_v31 = vrot.slane %v3737_v25, %v207_v59 }
 0x86a   :  { %v1869_v55 = vadd.f32 %v1868_v22, %v1867_v5 }
 0x86c   :  { %3701 = vst [vmem:[%s6361_s5] sm:$0xff] %v1869_v55  ;;  %5173 = vtanh.f32 %v1869_v55 }
 0x876   :  { %v5174_v38 = vpop.eup %5173 }
 0x877   :  { %v1871_v41 = vmul.f32 %v5174_v38, %v5172_v1 }
 0x879   :  { %2143 = vmatmul.mubr.f32.gmra.mrb[30].mxu0 %v1871_v41  ;;  %3697 = vst [vmem:[%s6360_s4] sm:$0xff] %v1871_v41  ;;  %2256 = vmatmul.mubr.f32.gmra.mrb[30].mxu1 %v1871_v41 }
 0x87a   :  { %2366 = vmatprep.mubr.f32.mxu0 %v5355_v0  ;;  %2437 = vmatprep.mubr.f32.mxu1 %v5355_v0 }
 0x87d   :  { %2367 = vmatmul.mubr.f32.vlgmr.msra.gmra.mrb[16].mxu0 %v5355_v0  ;;  %2438 = vmatmul.mubr.f32.vlgmr.msra.gmra.mrb[16].mxu1 %v5355_v0 }
 0x87e   :  { %4469 = vmatpush1.bf16.msra.mxu0 %v5930_v39  ;;  %4501 = vmatpush1.bf16.msra.mxu1 %v5933_v51 }
 0x87f   :  { %4471 = vmatprep.subr.bf16.mxu0 %v5938_v61  ;;  %4503 = vmatprep.subr.bf16.mxu1 %v5940_v17 }
 0x880   :  { %2540 = vmatprep.mubr.f32.mxu0 %v5355_v0  ;;  %2611 = vmatprep.mubr.f32.mxu1 %v5355_v0 }
 0x882   :  { %4473 = vmatpush1.bf16.msra.mxu0 %v5942_v12  ;;  %4505 = vmatpush1.bf16.msra.mxu1 %v5945_v20 }
 0x883   :  { %4475 = vmatprep.subr.bf16.mxu0 %v5950_v53  ;;  %4507 = vmatprep.subr.bf16.mxu1 %v5952_v3 }
 0x886   :  { %4477 = vmatpush1.bf16.msra.mxu0 %v5954_v6  ;;  %4509 = vmatpush1.bf16.msra.mxu1 %v5957_v16 }
 0x887   :  { %4479 = vmatprep.subr.bf16.mxu0 %v5962_v29  ;;  %4511 = vmatprep.subr.bf16.mxu1 %v5964_v44 }
 0x88a   :  { %4481 = vmatpush1.bf16.msra.mxu0 %v5966_v48  ;;  %4513 = vmatpush1.bf16.msra.mxu1 %v5969_v62 }
 0x88b   :  { %4483 = vmatprep.subr.bf16.mxu0 %v5974_v18  ;;  %4515 = vmatprep.subr.bf16.mxu1 %v5976_v15 }
 0x88e   :  { %4485 = vmatpush1.bf16.msra.mxu0 %v5978_v8  ;;  %4517 = vmatpush1.bf16.msra.mxu1 %v5981_v49 }
 0x88f   :  { %4487 = vmatprep.subr.bf16.mxu0 %v5985_v33  ;;  %4519 = vmatprep.subr.bf16.mxu1 %v5987_v57 }
 0x892   :  { %4489 = vmatpush1.bf16.msra.mxu0 %v5990_v28  ;;  %4521 = vmatpush1.bf16.msra.mxu1 %v5994_v60 }
 0x893   :  { %4491 = vmatprep.subr.bf16.mxu0 %v5996_v63  ;;  %4523 = vmatprep.subr.bf16.mxu1 %v5998_v23 }
 0x896   :  { %4493 = vmatpush1.bf16.msra.mxu0 %v6001_v40  ;;  %4525 = vmatpush1.bf16.msra.mxu1 %v6005_v54 }
 0x897   :  { %4495 = vmatprep.subr.bf16.mxu0 %v6010_v14  ;;  %4527 = vmatprep.subr.bf16.mxu1 %v6012_v27 }
 0x89a   :  { %4497 = vmatpush1.bf16.msra.mxu0 %v6014_v24  ;;  %4529 = vmatpush1.bf16.msra.mxu1 %v6017_v52 }
 0x89b   :  { %4531 = vmatprep.subr.bf16.mxu0 %v5926_v43  ;;  %4563 = vmatprep.subr.bf16.mxu1 %v5928_v45 }
 0x950   :  { %v2368_v11 = vpop.f32.mrb[16].mxu0  ;;  %v2439_v47 = vpop.f32.mrb[16].mxu1 }
 0x951   :  { %v4946_v50 = vadd.f32 %v2368_v11, %v6078_v7  ;;  %v2370_v56 = vpop.f32.mrb[17].mxu0  ;;  %v2441_v10 = vpop.f32.mrb[17].mxu1  ;;  %v4962_v34 = vadd.f32 %v2439_v47, %v6088_v32 }
 0x952   :  { %v4947_v13 = vadd.f32 %v2370_v56, %v6082_v21  ;;  %v4963_v36 = vadd.f32 %v2441_v10, %v6092_v31 }
 0x953   :  { %v3738_v19 = vmul.f32 -1.442695, %v4946_v50  ;;  %v3740_v58 = vmul.f32 -1.442695, %v4962_v34 }
 0x954   :  { %v3739_v26 = vmul.f32 -1.442695, %v4947_v13 }
 0x955   :  { %5175 = vpow2.f32 %v3738_v19 }
 0x956   :  { %5177 = vpow2.f32 %v3739_v26 }
 0x957   :  { %5179 = vtanh.f32 %v4963_v36 }
 0x958   :  { %5181 = vpow2.f32 %v3740_v58 }
 0x95f   :  { %v5176_v35 = vpop.eup %5175 }
 0x960   :  { %v2457_v4 = vadd.f32 1.0, %v5176_v35  ;;  %v5178_v9 = vpop.eup %5177 }
 0x961   :  { %v2458_v37 = vadd.f32 1.0, %v5178_v9  ;;  %v5180_v42 = vpop.eup %5179 }
 0x962   :  { %5183 = vrcp.f32 %v2457_v4  ;;  %v5182_v22 = vpop.eup %5181 }
 0x963   :  { %5185 = vrcp.f32 %v2458_v37  ;;  %v2459_v59 = vadd.f32 1.0, %v5182_v22 }
 0x965   :  { %5187 = vrcp.f32 %v2459_v59 }
 0x96c   :  { %v5184_v46 = vpop.eup %5183 }
 0x96d   :  { %v2468_v2 = vmul.f32 %v5184_v46, %v5180_v42  ;;  %v5186_v30 = vpop.eup %5185 }
 0x96e   :  { %v2467_v5 = vmul.f32 0.0, %v5186_v30 }
 0x96f   :  { %v5188_v1 = vpop.eup %5187 }
 0x970   :  { %v6096_v55 = vadd.f32 %v2468_v2, %v2467_v5 }
 0x972   :  { %5189 = vtanh.f32 %v6096_v55 }
 0x97c   :  { %v5190_v38 = vpop.eup %5189 }
 0x97d   :  { %v2471_v41 = vmul.f32 %v5190_v38, %v5188_v1 }
 0x97f   :  { %2541 = vmatmul.mubr.f32.vlgmr.msra.gmra.mrb[18].mxu0 %v2471_v41  ;;  %2612 = vmatmul.mubr.f32.vlgmr.msra.gmra.mrb[18].mxu1 %v2471_v41 }
 0x980   :  { %4533 = vmatpush1.bf16.msra.mxu0 %v5930_v39  ;;  %4565 = vmatpush1.bf16.msra.mxu1 %v5933_v51 }
 0x981   :  { %4535 = vmatprep.subr.bf16.mxu0 %v5938_v61  ;;  %4567 = vmatprep.subr.bf16.mxu1 %v5940_v17 }
 0x982   :  { %2714 = vmatprep.mubr.f32.mxu0 %v5355_v0  ;;  %2785 = vmatprep.mubr.f32.mxu1 %v5355_v0 }
 0x984   :  { %4537 = vmatpush1.bf16.msra.mxu0 %v5942_v12  ;;  %4569 = vmatpush1.bf16.msra.mxu1 %v5945_v20 }
 0x985   :  { %4539 = vmatprep.subr.bf16.mxu0 %v5950_v53  ;;  %4571 = vmatprep.subr.bf16.mxu1 %v5952_v3 }
 0x988   :  { %4541 = vmatpush1.bf16.msra.mxu0 %v5954_v6  ;;  %4573 = vmatpush1.bf16.msra.mxu1 %v5957_v16 }
 0x989   :  { %4543 = vmatprep.subr.bf16.mxu0 %v5962_v29  ;;  %4575 = vmatprep.subr.bf16.mxu1 %v5964_v44 }
 0x98c   :  { %4545 = vmatpush1.bf16.msra.mxu0 %v5966_v48  ;;  %4577 = vmatpush1.bf16.msra.mxu1 %v5969_v62 }
 0x98d   :  { %4547 = vmatprep.subr.bf16.mxu0 %v5974_v18  ;;  %4579 = vmatprep.subr.bf16.mxu1 %v5976_v15 }
 0x990   :  { %4549 = vmatpush1.bf16.msra.mxu0 %v5978_v8  ;;  %4581 = vmatpush1.bf16.msra.mxu1 %v5981_v49 }
 0x991   :  { %4551 = vmatprep.subr.bf16.mxu0 %v5985_v33  ;;  %4583 = vmatprep.subr.bf16.mxu1 %v5987_v57 }
 0x994   :  { %4553 = vmatpush1.bf16.msra.mxu0 %v5990_v28  ;;  %4585 = vmatpush1.bf16.msra.mxu1 %v5994_v60 }
 0x995   :  { %4555 = vmatprep.subr.bf16.mxu0 %v5996_v63  ;;  %4587 = vmatprep.subr.bf16.mxu1 %v5998_v23 }
 0x998   :  { %4557 = vmatpush1.bf16.msra.mxu0 %v6001_v40  ;;  %4589 = vmatpush1.bf16.msra.mxu1 %v6005_v54 }
 0x999   :  { %4559 = vmatprep.subr.bf16.mxu0 %v6010_v14  ;;  %4591 = vmatprep.subr.bf16.mxu1 %v6012_v27 }
 0x99c   :  { %4561 = vmatpush1.bf16.msra.mxu0 %v6014_v24  ;;  %4593 = vmatpush1.bf16.msra.mxu1 %v6017_v52 }
 0x99d   :  { %4595 = vmatprep.subr.bf16.mxu0 %v5926_v43  ;;  %4627 = vmatprep.subr.bf16.mxu1 %v5928_v45 }
 0xa52   :  { %v2542_v25 = vpop.f32.mrb[18].mxu0  ;;  %v2613_v11 = vpop.f32.mrb[18].mxu1 }
 0xa53   :  { %v4948_v47 = vadd.f32 %v2542_v25, %v6078_v7  ;;  %v2544_v50 = vpop.f32.mrb[19].mxu0  ;;  %v2615_v56 = vpop.f32.mrb[19].mxu1  ;;  %v4964_v26 = vadd.f32 %v2613_v11, %v6088_v32 }
 0xa54   :  { %v4949_v10 = vadd.f32 %v2544_v50, %v6082_v21  ;;  %v4965_v34 = vadd.f32 %v2615_v56, %v6092_v31 }
 0xa55   :  { %v3741_v13 = vmul.f32 -1.442695, %v4948_v47  ;;  %v3743_v36 = vmul.f32 -1.442695, %v4964_v26 }
 0xa56   :  { %v3742_v19 = vmul.f32 -1.442695, %v4949_v10 }
 0xa57   :  { %5191 = vpow2.f32 %v3741_v13 }
 0xa58   :  { %5193 = vpow2.f32 %v3742_v19 }
 0xa59   :  { %5195 = vtanh.f32 %v4965_v34 }
 0xa5a   :  { %5197 = vpow2.f32 %v3743_v36 }
 0xa61   :  { %v5192_v58 = vpop.eup %5191 }
 0xa62   :  { %v2631_v35 = vadd.f32 1.0, %v5192_v58  ;;  %v5194_v4 = vpop.eup %5193 }
 0xa63   :  { %v2632_v9 = vadd.f32 1.0, %v5194_v4  ;;  %v5196_v37 = vpop.eup %5195 }
 0xa64   :  { %5199 = vrcp.f32 %v2631_v35  ;;  %v5198_v42 = vpop.eup %5197 }
 0xa65   :  { %5201 = vrcp.f32 %v2632_v9  ;;  %v2633_v30 = vadd.f32 1.0, %v5198_v42 }
 0xa67   :  { %5203 = vrcp.f32 %v2633_v30 }
 0xa6e   :  { %v5200_v22 = vpop.eup %5199 }
 0xa6f   :  { %v2642_v46 = vmul.f32 %v5200_v22, %v5196_v37  ;;  %v5202_v2 = vpop.eup %5201 }
 0xa70   :  { %v2641_v59 = vmul.f32 %v5202_v2, %v6096_v55 }
 0xa71   :  { %v5204_v1 = vpop.eup %5203 }
 0xa72   :  { %v6138_v5 = vadd.f32 %v2642_v46, %v2641_v59 }
 0xa74   :  { %5205 = vtanh.f32 %v6138_v5 }
 0xa7e   :  { %v5206_v38 = vpop.eup %5205 }
 0xa7f   :  { %v2645_v41 = vmul.f32 %v5206_v38, %v5204_v1 }
 0xa81   :  { %2715 = vmatmul.mubr.f32.vlgmr.msra.gmra.mrb[20].mxu0 %v2645_v41  ;;  %2786 = vmatmul.mubr.f32.vlgmr.msra.gmra.mrb[20].mxu1 %v2645_v41 }
 0xa82   :  { %4597 = vmatpush1.bf16.msra.mxu0 %v5930_v39  ;;  %4629 = vmatpush1.bf16.msra.mxu1 %v5933_v51 }
 0xa83   :  { %4599 = vmatprep.subr.bf16.mxu0 %v5938_v61  ;;  %4631 = vmatprep.subr.bf16.mxu1 %v5940_v17 }
 0xa84   :  { %2888 = vmatprep.mubr.f32.mxu0 %v5355_v0  ;;  %2959 = vmatprep.mubr.f32.mxu1 %v5355_v0 }
 0xa86   :  { %4601 = vmatpush1.bf16.msra.mxu0 %v5942_v12  ;;  %4633 = vmatpush1.bf16.msra.mxu1 %v5945_v20 }
 0xa87   :  { %4603 = vmatprep.subr.bf16.mxu0 %v5950_v53  ;;  %4635 = vmatprep.subr.bf16.mxu1 %v5952_v3 }
 0xa8a   :  { %4605 = vmatpush1.bf16.msra.mxu0 %v5954_v6  ;;  %4637 = vmatpush1.bf16.msra.mxu1 %v5957_v16 }
 0xa8b   :  { %4607 = vmatprep.subr.bf16.mxu0 %v5962_v29  ;;  %4639 = vmatprep.subr.bf16.mxu1 %v5964_v44 }
 0xa8e   :  { %4609 = vmatpush1.bf16.msra.mxu0 %v5966_v48  ;;  %4641 = vmatpush1.bf16.msra.mxu1 %v5969_v62 }
 0xa8f   :  { %4611 = vmatprep.subr.bf16.mxu0 %v5974_v18  ;;  %4643 = vmatprep.subr.bf16.mxu1 %v5976_v15 }
 0xa92   :  { %4613 = vmatpush1.bf16.msra.mxu0 %v5978_v8  ;;  %4645 = vmatpush1.bf16.msra.mxu1 %v5981_v49 }
 0xa93   :  { %4615 = vmatprep.subr.bf16.mxu0 %v5985_v33  ;;  %4647 = vmatprep.subr.bf16.mxu1 %v5987_v57 }
 0xa96   :  { %4617 = vmatpush1.bf16.msra.mxu0 %v5990_v28  ;;  %4649 = vmatpush1.bf16.msra.mxu1 %v5994_v60 }
 0xa97   :  { %4619 = vmatprep.subr.bf16.mxu0 %v5996_v63  ;;  %4651 = vmatprep.subr.bf16.mxu1 %v5998_v23 }
 0xa9a   :  { %4621 = vmatpush1.bf16.msra.mxu0 %v6001_v40  ;;  %4653 = vmatpush1.bf16.msra.mxu1 %v6005_v54 }
 0xa9b   :  { %4623 = vmatprep.subr.bf16.mxu0 %v6010_v14  ;;  %4655 = vmatprep.subr.bf16.mxu1 %v6012_v27 }
 0xa9e   :  { %4625 = vmatpush1.bf16.msra.mxu0 %v6014_v24  ;;  %4657 = vmatpush1.bf16.msra.mxu1 %v6017_v52 }
 0xa9f   :  { %4659 = vmatprep.subr.bf16.mxu0 %v5926_v43  ;;  %4691 = vmatprep.subr.bf16.mxu1 %v5928_v45 }
 0xb54   :  { %v2716_v55 = vpop.f32.mrb[20].mxu0  ;;  %v2787_v25 = vpop.f32.mrb[20].mxu1 }
 0xb55   :  { %v4950_v11 = vadd.f32 %v2716_v55, %v6078_v7  ;;  %v2718_v47 = vpop.f32.mrb[21].mxu0  ;;  %v2789_v50 = vpop.f32.mrb[21].mxu1  ;;  %v4966_v19 = vadd.f32 %v2787_v25, %v6088_v32 }
 0xb56   :  { %v4951_v56 = vadd.f32 %v2718_v47, %v6082_v21  ;;  %v4967_v26 = vadd.f32 %v2789_v50, %v6092_v31 }
 0xb57   :  { %v3744_v10 = vmul.f32 -1.442695, %v4950_v11  ;;  %v3746_v34 = vmul.f32 -1.442695, %v4966_v19 }
 0xb58   :  { %v3745_v13 = vmul.f32 -1.442695, %v4951_v56 }
 0xb59   :  { %5207 = vpow2.f32 %v3744_v10 }
 0xb5a   :  { %5209 = vpow2.f32 %v3745_v13 }
 0xb5b   :  { %5211 = vtanh.f32 %v4967_v26 }
 0xb5c   :  { %5213 = vpow2.f32 %v3746_v34 }
 0xb63   :  { %v5208_v36 = vpop.eup %5207 }
 0xb64   :  { %v2805_v58 = vadd.f32 1.0, %v5208_v36  ;;  %v5210_v35 = vpop.eup %5209 }
 0xb65   :  { %v2806_v4 = vadd.f32 1.0, %v5210_v35  ;;  %v5212_v9 = vpop.eup %5211 }
 0xb66   :  { %5215 = vrcp.f32 %v2805_v58  ;;  %v5214_v37 = vpop.eup %5213 }
 0xb67   :  { %5217 = vrcp.f32 %v2806_v4  ;;  %v2807_v2 = vadd.f32 1.0, %v5214_v37 }
 0xb69   :  { %5219 = vrcp.f32 %v2807_v2 }
 0xb70   :  { %v5216_v42 = vpop.eup %5215 }
 0xb71   :  { %v2816_v22 = vmul.f32 %v5216_v42, %v5212_v9  ;;  %v5218_v46 = vpop.eup %5217 }
 0xb72   :  { %v2815_v30 = vmul.f32 %v5218_v46, %v6138_v5 }
 0xb73   :  { %v5220_v1 = vpop.eup %5219 }
 0xb74   :  { %v6180_v59 = vadd.f32 %v2816_v22, %v2815_v30 }
 0xb76   :  { %5221 = vtanh.f32 %v6180_v59 }
 0xb80   :  { %v5222_v38 = vpop.eup %5221 }
 0xb81   :  { %v2819_v41 = vmul.f32 %v5222_v38, %v5220_v1 }
 0xb83   :  { %2889 = vmatmul.mubr.f32.vlgmr.msra.gmra.mrb[22].mxu0 %v2819_v41  ;;  %2960 = vmatmul.mubr.f32.vlgmr.msra.gmra.mrb[22].mxu1 %v2819_v41 }
 0xb84   :  { %4661 = vmatpush1.bf16.msra.mxu0 %v5930_v39  ;;  %4693 = vmatpush1.bf16.msra.mxu1 %v5933_v51 }
 0xb85   :  { %4663 = vmatprep.subr.bf16.mxu0 %v5938_v61  ;;  %4695 = vmatprep.subr.bf16.mxu1 %v5940_v17 }
 0xb86   :  { %3062 = vmatprep.mubr.f32.mxu0 %v5355_v0  ;;  %3133 = vmatprep.mubr.f32.mxu1 %v5355_v0 }
 0xb88   :  { %4665 = vmatpush1.bf16.msra.mxu0 %v5942_v12  ;;  %4697 = vmatpush1.bf16.msra.mxu1 %v5945_v20 }
 0xb89   :  { %4667 = vmatprep.subr.bf16.mxu0 %v5950_v53  ;;  %4699 = vmatprep.subr.bf16.mxu1 %v5952_v3 }
 0xb8c   :  { %4669 = vmatpush1.bf16.msra.mxu0 %v5954_v6  ;;  %4701 = vmatpush1.bf16.msra.mxu1 %v5957_v16 }
 0xb8d   :  { %4671 = vmatprep.subr.bf16.mxu0 %v5962_v29  ;;  %4703 = vmatprep.subr.bf16.mxu1 %v5964_v44 }
 0xb90   :  { %4673 = vmatpush1.bf16.msra.mxu0 %v5966_v48  ;;  %4705 = vmatpush1.bf16.msra.mxu1 %v5969_v62 }
 0xb91   :  { %4675 = vmatprep.subr.bf16.mxu0 %v5974_v18  ;;  %4707 = vmatprep.subr.bf16.mxu1 %v5976_v15 }
 0xb94   :  { %4677 = vmatpush1.bf16.msra.mxu0 %v5978_v8  ;;  %4709 = vmatpush1.bf16.msra.mxu1 %v5981_v49 }
 0xb95   :  { %4679 = vmatprep.subr.bf16.mxu0 %v5985_v33  ;;  %4711 = vmatprep.subr.bf16.mxu1 %v5987_v57 }
 0xb98   :  { %4681 = vmatpush1.bf16.msra.mxu0 %v5990_v28  ;;  %4713 = vmatpush1.bf16.msra.mxu1 %v5994_v60 }
 0xb99   :  { %4683 = vmatprep.subr.bf16.mxu0 %v5996_v63  ;;  %4715 = vmatprep.subr.bf16.mxu1 %v5998_v23 }
 0xb9c   :  { %4685 = vmatpush1.bf16.msra.mxu0 %v6001_v40  ;;  %4717 = vmatpush1.bf16.msra.mxu1 %v6005_v54 }
 0xb9d   :  { %4687 = vmatprep.subr.bf16.mxu0 %v6010_v14  ;;  %4719 = vmatprep.subr.bf16.mxu1 %v6012_v27 }
 0xba0   :  { %4689 = vmatpush1.bf16.msra.mxu0 %v6014_v24  ;;  %4721 = vmatpush1.bf16.msra.mxu1 %v6017_v52 }
 0xba1   :  { %4723 = vmatprep.subr.bf16.mxu0 %v5926_v43  ;;  %4755 = vmatprep.subr.bf16.mxu1 %v5928_v45 }
 0xc56   :  { %v2890_v5 = vpop.f32.mrb[22].mxu0  ;;  %v2961_v55 = vpop.f32.mrb[22].mxu1 }
 0xc57   :  { %v4952_v25 = vadd.f32 %v2890_v5, %v6078_v7  ;;  %v2892_v11 = vpop.f32.mrb[23].mxu0  ;;  %v2963_v47 = vpop.f32.mrb[23].mxu1  ;;  %v4968_v13 = vadd.f32 %v2961_v55, %v6088_v32 }
 0xc58   :  { %v4953_v50 = vadd.f32 %v2892_v11, %v6082_v21  ;;  %v4969_v19 = vadd.f32 %v2963_v47, %v6092_v31 }
 0xc59   :  { %v3747_v56 = vmul.f32 -1.442695, %v4952_v25  ;;  %v3749_v26 = vmul.f32 -1.442695, %v4968_v13 }
 0xc5a   :  { %v3748_v10 = vmul.f32 -1.442695, %v4953_v50 }
 0xc5b   :  { %5223 = vpow2.f32 %v3747_v56 }
 0xc5c   :  { %5225 = vpow2.f32 %v3748_v10 }
 0xc5d   :  { %5227 = vtanh.f32 %v4969_v19 }
 0xc5e   :  { %5229 = vpow2.f32 %v3749_v26 }
 0xc65   :  { %v5224_v34 = vpop.eup %5223 }
 0xc66   :  { %v2979_v36 = vadd.f32 1.0, %v5224_v34  ;;  %v5226_v58 = vpop.eup %5225 }
 0xc67   :  { %v2980_v35 = vadd.f32 1.0, %v5226_v58  ;;  %v5228_v4 = vpop.eup %5227 }
 0xc68   :  { %5231 = vrcp.f32 %v2979_v36  ;;  %v5230_v9 = vpop.eup %5229 }
 0xc69   :  { %5233 = vrcp.f32 %v2980_v35  ;;  %v2981_v46 = vadd.f32 1.0, %v5230_v9 }
 0xc6b   :  { %5235 = vrcp.f32 %v2981_v46 }
 0xc72   :  { %v5232_v37 = vpop.eup %5231 }
 0xc73   :  { %v2990_v42 = vmul.f32 %v5232_v37, %v5228_v4  ;;  %v5234_v22 = vpop.eup %5233 }
 0xc74   :  { %v2989_v2 = vmul.f32 %v5234_v22, %v6180_v59 }
 0xc75   :  { %v5236_v1 = vpop.eup %5235 }
 0xc76   :  { %v6222_v30 = vadd.f32 %v2990_v42, %v2989_v2 }
 0xc78   :  { %5237 = vtanh.f32 %v6222_v30 }
 0xc82   :  { %v5238_v38 = vpop.eup %5237 }
 0xc83   :  { %v2993_v41 = vmul.f32 %v5238_v38, %v5236_v1 }
 0xc85   :  { %3063 = vmatmul.mubr.f32.vlgmr.msra.gmra.mrb[24].mxu0 %v2993_v41  ;;  %3134 = vmatmul.mubr.f32.vlgmr.msra.gmra.mrb[24].mxu1 %v2993_v41 }
 0xc86   :  { %4725 = vmatpush1.bf16.msra.mxu0 %v5930_v39  ;;  %4757 = vmatpush1.bf16.msra.mxu1 %v5933_v51 }
 0xc87   :  { %4727 = vmatprep.subr.bf16.mxu0 %v5938_v61  ;;  %4759 = vmatprep.subr.bf16.mxu1 %v5940_v17 }
 0xc88   :  { %3236 = vmatprep.mubr.f32.mxu0 %v5355_v0  ;;  %3307 = vmatprep.mubr.f32.mxu1 %v5355_v0 }
 0xc8a   :  { %4729 = vmatpush1.bf16.msra.mxu0 %v5942_v12  ;;  %4761 = vmatpush1.bf16.msra.mxu1 %v5945_v20 }
 0xc8b   :  { %4731 = vmatprep.subr.bf16.mxu0 %v5950_v53  ;;  %4763 = vmatprep.subr.bf16.mxu1 %v5952_v3 }
 0xc8e   :  { %4733 = vmatpush1.bf16.msra.mxu0 %v5954_v6  ;;  %4765 = vmatpush1.bf16.msra.mxu1 %v5957_v16 }
 0xc8f   :  { %4735 = vmatprep.subr.bf16.mxu0 %v5962_v29  ;;  %4767 = vmatprep.subr.bf16.mxu1 %v5964_v44 }
 0xc92   :  { %4737 = vmatpush1.bf16.msra.mxu0 %v5966_v48  ;;  %4769 = vmatpush1.bf16.msra.mxu1 %v5969_v62 }
 0xc93   :  { %4739 = vmatprep.subr.bf16.mxu0 %v5974_v18  ;;  %4771 = vmatprep.subr.bf16.mxu1 %v5976_v15 }
 0xc96   :  { %4741 = vmatpush1.bf16.msra.mxu0 %v5978_v8  ;;  %4773 = vmatpush1.bf16.msra.mxu1 %v5981_v49 }
 0xc97   :  { %4743 = vmatprep.subr.bf16.mxu0 %v5985_v33  ;;  %4775 = vmatprep.subr.bf16.mxu1 %v5987_v57 }
 0xc9a   :  { %4745 = vmatpush1.bf16.msra.mxu0 %v5990_v28  ;;  %4777 = vmatpush1.bf16.msra.mxu1 %v5994_v60 }
 0xc9b   :  { %4747 = vmatprep.subr.bf16.mxu0 %v5996_v63  ;;  %4779 = vmatprep.subr.bf16.mxu1 %v5998_v23 }
 0xc9e   :  { %4749 = vmatpush1.bf16.msra.mxu0 %v6001_v40  ;;  %4781 = vmatpush1.bf16.msra.mxu1 %v6005_v54 }
 0xc9f   :  { %4751 = vmatprep.subr.bf16.mxu0 %v6010_v14  ;;  %4783 = vmatprep.subr.bf16.mxu1 %v6012_v27 }
 0xca2   :  { %4753 = vmatpush1.bf16.msra.mxu0 %v6014_v24  ;;  %4785 = vmatpush1.bf16.msra.mxu1 %v6017_v52 }
 0xca3   :  { %4787 = vmatprep.subr.bf16.mxu0 %v5926_v43  ;;  %4819 = vmatprep.subr.bf16.mxu1 %v5928_v45 }
 0xd58   :  { %v3064_v59 = vpop.f32.mrb[24].mxu0  ;;  %v3135_v5 = vpop.f32.mrb[24].mxu1 }
 0xd59   :  { %v4954_v55 = vadd.f32 %v3064_v59, %v6078_v7  ;;  %v3066_v25 = vpop.f32.mrb[25].mxu0  ;;  %v3137_v11 = vpop.f32.mrb[25].mxu1  ;;  %v4970_v10 = vadd.f32 %v3135_v5, %v6088_v32 }
 0xd5a   :  { %v4955_v47 = vadd.f32 %v3066_v25, %v6082_v21  ;;  %v4971_v13 = vadd.f32 %v3137_v11, %v6092_v31 }
 0xd5b   :  { %v3750_v50 = vmul.f32 -1.442695, %v4954_v55  ;;  %v3752_v19 = vmul.f32 -1.442695, %v4970_v10 }
 0xd5c   :  { %v3751_v56 = vmul.f32 -1.442695, %v4955_v47 }
 0xd5d   :  { %5239 = vpow2.f32 %v3750_v50 }
 0xd5e   :  { %5241 = vpow2.f32 %v3751_v56 }
 0xd5f   :  { %5243 = vtanh.f32 %v4971_v13 }
 0xd60   :  { %5245 = vpow2.f32 %v3752_v19 }
 0xd67   :  { %v5240_v26 = vpop.eup %5239 }
 0xd68   :  { %v3153_v34 = vadd.f32 1.0, %v5240_v26  ;;  %v5242_v36 = vpop.eup %5241 }
 0xd69   :  { %v3154_v58 = vadd.f32 1.0, %v5242_v36  ;;  %v5244_v35 = vpop.eup %5243 }
 0xd6a   :  { %5247 = vrcp.f32 %v3153_v34  ;;  %v5246_v4 = vpop.eup %5245 }
 0xd6b   :  { %5249 = vrcp.f32 %v3154_v58  ;;  %v3155_v22 = vadd.f32 1.0, %v5246_v4 }
 0xd6d   :  { %5251 = vrcp.f32 %v3155_v22 }
 0xd74   :  { %v5248_v9 = vpop.eup %5247 }
 0xd75   :  { %v3164_v37 = vmul.f32 %v5248_v9, %v5244_v35  ;;  %v5250_v42 = vpop.eup %5249 }
 0xd76   :  { %v3163_v46 = vmul.f32 %v5250_v42, %v6222_v30 }
 0xd77   :  { %v5252_v1 = vpop.eup %5251 }
 0xd78   :  { %v6264_v2 = vadd.f32 %v3164_v37, %v3163_v46 }
 0xd7a   :  { %5253 = vtanh.f32 %v6264_v2 }
 0xd84   :  { %v5254_v38 = vpop.eup %5253 }
 0xd85   :  { %v3167_v41 = vmul.f32 %v5254_v38, %v5252_v1 }
 0xd87   :  { %3237 = vmatmul.mubr.f32.vlgmr.msra.gmra.mrb[26].mxu0 %v3167_v41  ;;  %3308 = vmatmul.mubr.f32.vlgmr.msra.gmra.mrb[26].mxu1 %v3167_v41 }
 0xd88   :  { %4789 = vmatpush1.bf16.msra.mxu0 %v5930_v39  ;;  %4821 = vmatpush1.bf16.msra.mxu1 %v5933_v51 }
 0xd89   :  { %4791 = vmatprep.subr.bf16.mxu0 %v5938_v61  ;;  %4823 = vmatprep.subr.bf16.mxu1 %v5940_v17 }
 0xd8a   :  { %3410 = vmatprep.mubr.f32.mxu0 %v5355_v0  ;;  %3481 = vmatprep.mubr.f32.mxu1 %v5355_v0 }
 0xd8c   :  { %4793 = vmatpush1.bf16.msra.mxu0 %v5942_v12  ;;  %4825 = vmatpush1.bf16.msra.mxu1 %v5945_v20 }
 0xd8d   :  { %4795 = vmatprep.subr.bf16.mxu0 %v5950_v53  ;;  %4827 = vmatprep.subr.bf16.mxu1 %v5952_v3 }
 0xd90   :  { %4797 = vmatpush1.bf16.msra.mxu0 %v5954_v6  ;;  %4829 = vmatpush1.bf16.msra.mxu1 %v5957_v16 }
 0xd91   :  { %4799 = vmatprep.subr.bf16.mxu0 %v5962_v29  ;;  %4831 = vmatprep.subr.bf16.mxu1 %v5964_v44 }
 0xd94   :  { %4801 = vmatpush1.bf16.msra.mxu0 %v5966_v48  ;;  %4833 = vmatpush1.bf16.msra.mxu1 %v5969_v62 }
 0xd95   :  { %4803 = vmatprep.subr.bf16.mxu0 %v5974_v18  ;;  %4835 = vmatprep.subr.bf16.mxu1 %v5976_v15 }
 0xd98   :  { %4805 = vmatpush1.bf16.msra.mxu0 %v5978_v8  ;;  %4837 = vmatpush1.bf16.msra.mxu1 %v5981_v49 }
 0xd99   :  { %4807 = vmatprep.subr.bf16.mxu0 %v5985_v33  ;;  %4839 = vmatprep.subr.bf16.mxu1 %v5987_v57 }
 0xd9c   :  { %4809 = vmatpush1.bf16.msra.mxu0 %v5990_v28  ;;  %4841 = vmatpush1.bf16.msra.mxu1 %v5994_v60 }
 0xd9d   :  { %4811 = vmatprep.subr.bf16.mxu0 %v5996_v63  ;;  %4843 = vmatprep.subr.bf16.mxu1 %v5998_v23 }
 0xda0   :  { %4813 = vmatpush1.bf16.msra.mxu0 %v6001_v40  ;;  %4845 = vmatpush1.bf16.msra.mxu1 %v6005_v54 }
 0xda1   :  { %4815 = vmatprep.subr.bf16.mxu0 %v6010_v14  ;;  %4847 = vmatprep.subr.bf16.mxu1 %v6012_v27 }
 0xda4   :  { %4817 = vmatpush1.bf16.msra.mxu0 %v6014_v24  ;;  %4849 = vmatpush1.bf16.msra.mxu1 %v6017_v52 }
 0xda5   :  { %4851 = vmatprep.subr.bf16.mxu0 %v5926_v43  ;;  %4883 = vmatprep.subr.bf16.mxu1 %v5928_v45 }
 0xe5a   :  { %v3238_v30 = vpop.f32.mrb[26].mxu0  ;;  %v3309_v59 = vpop.f32.mrb[26].mxu1 }
 0xe5b   :  { %v4956_v5 = vadd.f32 %v3238_v30, %v6078_v7  ;;  %v3240_v55 = vpop.f32.mrb[27].mxu0  ;;  %v3311_v25 = vpop.f32.mrb[27].mxu1  ;;  %v4972_v56 = vadd.f32 %v3309_v59, %v6088_v32 }
 0xe5c   :  { %v4957_v11 = vadd.f32 %v3240_v55, %v6082_v21  ;;  %v4973_v10 = vadd.f32 %v3311_v25, %v6092_v31 }
 0xe5d   :  { %v3753_v47 = vmul.f32 -1.442695, %v4956_v5  ;;  %v3755_v13 = vmul.f32 -1.442695, %v4972_v56 }
 0xe5e   :  { %v3754_v50 = vmul.f32 -1.442695, %v4957_v11 }
 0xe5f   :  { %5255 = vpow2.f32 %v3753_v47 }
 0xe60   :  { %5257 = vpow2.f32 %v3754_v50 }
 0xe61   :  { %5259 = vtanh.f32 %v4973_v10 }
 0xe62   :  { %5261 = vpow2.f32 %v3755_v13 }
 0xe69   :  { %v5256_v43 = vpop.eup %5255 }
 0xe6a   :  { %v3327_v19 = vadd.f32 1.0, %v5256_v43  ;;  %v5258_v45 = vpop.eup %5257 }
 0xe6b   :  { %v3328_v26 = vadd.f32 1.0, %v5258_v45  ;;  %v5260_v34 = vpop.eup %5259 }
 0xe6c   :  { %5263 = vrcp.f32 %v3327_v19  ;;  %v5262_v36 = vpop.eup %5261 }
 0xe6d   :  { %5265 = vrcp.f32 %v3328_v26  ;;  %v3329_v9 = vadd.f32 1.0, %v5262_v36 }
 0xe6f   :  { %5267 = vrcp.f32 %v3329_v9 }
 0xe76   :  { %v5264_v58 = vpop.eup %5263 }
 0xe77   :  { %v3338_v35 = vmul.f32 %v5264_v58, %v5260_v34  ;;  %v5266_v4 = vpop.eup %5265 }
 0xe78   :  { %v3337_v37 = vmul.f32 %v5266_v4, %v6264_v2 }
 0xe79   :  { %v5268_v22 = vpop.eup %5267 }
 0xe7a   :  { %v6306_v42 = vadd.f32 %v3338_v35, %v3337_v37 }
 0xe7c   :  { %5269 = vtanh.f32 %v6306_v42 }
 0xe86   :  { %v5270_v46 = vpop.eup %5269 }
 0xe87   :  { %v3341_v1 = vmul.f32 %v5270_v46, %v5268_v22 }
 0xe89   :  { %3411 = vmatmul.mubr.f32.vlgmr.msra.gmra.mrb[28].mxu0 %v3341_v1  ;;  %3482 = vmatmul.mubr.f32.vlgmr.msra.gmra.mrb[28].mxu1 %v3341_v1 }
 0xe8a   :  { %4853 = vmatpush1.bf16.msra.mxu0 %v5930_v39  ;;  %4885 = vmatpush1.bf16.msra.mxu1 %v5933_v51 }
 0xe8b   :  { %4855 = vmatprep.subr.bf16.mxu0 %v5938_v61  ;;  %4887 = vmatprep.subr.bf16.mxu1 %v5940_v17 }
 0xe8c   :  { %3584 = vmatprep.mubr.f32.mxu0 %v5355_v0  ;;  %3655 = vmatprep.mubr.f32.mxu1 %v5355_v0 }
 0xe8e   :  { %4857 = vmatpush1.bf16.msra.mxu0 %v5942_v12  ;;  %4889 = vmatpush1.bf16.msra.mxu1 %v5945_v20 }
 0xe8f   :  { %4859 = vmatprep.subr.bf16.mxu0 %v5950_v53  ;;  %4891 = vmatprep.subr.bf16.mxu1 %v5952_v3 }
 0xe92   :  { %4861 = vmatpush1.bf16.msra.mxu0 %v5954_v6  ;;  %4893 = vmatpush1.bf16.msra.mxu1 %v5957_v16 }
 0xe93   :  { %4863 = vmatprep.subr.bf16.mxu0 %v5962_v29  ;;  %4895 = vmatprep.subr.bf16.mxu1 %v5964_v44 }
 0xe96   :  { %4865 = vmatpush1.bf16.msra.mxu0 %v5966_v48  ;;  %4897 = vmatpush1.bf16.msra.mxu1 %v5969_v62 }
 0xe97   :  { %4867 = vmatprep.subr.bf16.mxu0 %v5974_v18  ;;  %4899 = vmatprep.subr.bf16.mxu1 %v5976_v15 }
 0xe9a   :  { %4869 = vmatpush1.bf16.msra.mxu0 %v5978_v8  ;;  %4901 = vmatpush1.bf16.msra.mxu1 %v5981_v49 }
 0xe9b   :  { %4871 = vmatprep.subr.bf16.mxu0 %v5985_v33  ;;  %4903 = vmatprep.subr.bf16.mxu1 %v5987_v57 }
 0xe9e   :  { %4873 = vmatpush1.bf16.msra.mxu0 %v5990_v28  ;;  %4905 = vmatpush1.bf16.msra.mxu1 %v5994_v60 }
 0xe9f   :  { %4875 = vmatprep.subr.bf16.mxu0 %v5996_v63  ;;  %4907 = vmatprep.subr.bf16.mxu1 %v5998_v23 }
 0xea2   :  { %4877 = vmatpush1.bf16.msra.mxu0 %v6001_v40  ;;  %4909 = vmatpush1.bf16.msra.mxu1 %v6005_v54 }
 0xea3   :  { %4879 = vmatprep.subr.bf16.mxu0 %v6010_v14  ;;  %4911 = vmatprep.subr.bf16.mxu1 %v6012_v27 }
 0xea6   :  { %4881 = vmatpush1.bf16.msra.mxu0 %v6014_v24  ;;  %4913 = vmatpush1.bf16.msra.mxu1 %v6017_v52 }
 0xf5c   :  { %v3412_v0 = vpop.f32.mrb[28].mxu0  ;;  %v3483_v39 = vpop.f32.mrb[28].mxu1 }
 0xf5d   :  { %v4958_v51 = vadd.f32 %v3412_v0, %v6078_v7  ;;  %v3414_v61 = vpop.f32.mrb[29].mxu0  ;;  %v3485_v17 = vpop.f32.mrb[29].mxu1  ;;  %v4974_v3 = vadd.f32 %v3483_v39, %v6088_v32 }
 0xf5e   :  { %v4959_v12 = vadd.f32 %v3414_v61, %v6082_v21  ;;  %v4975_v6 = vadd.f32 %v3485_v17, %v6092_v31 }
 0xf5f   :  { %v3756_v20 = vmul.f32 -1.442695, %v4958_v51  ;;  %v3758_v16 = vmul.f32 -1.442695, %v4974_v3 }
 0xf60   :  { %v3757_v53 = vmul.f32 -1.442695, %v4959_v12 }
 0xf61   :  { %5271 = vpow2.f32 %v3756_v20 }
 0xf62   :  { %5273 = vpow2.f32 %v3757_v53 }
 0xf63   :  { %5275 = vtanh.f32 %v4975_v6 }
 0xf64   :  { %5277 = vpow2.f32 %v3758_v16 }
 0xf6b   :  { %v5272_v29 = vpop.eup %5271 }
 0xf6c   :  { %v3501_v44 = vadd.f32 1.0, %v5272_v29  ;;  %v5274_v48 = vpop.eup %5273 }
 0xf6d   :  { %v3502_v62 = vadd.f32 1.0, %v5274_v48  ;;  %v5276_v18 = vpop.eup %5275 }
 0xf6e   :  { %5279 = vrcp.f32 %v3501_v44  ;;  %v5278_v15 = vpop.eup %5277 }
 0xf6f   :  { %5281 = vrcp.f32 %v3502_v62  ;;  %v3503_v57 = vadd.f32 1.0, %v5278_v15 }
 0xf71   :  { %5283 = vrcp.f32 %v3503_v57 }
 0xf78   :  { %v5280_v8 = vpop.eup %5279 }
 0xf79   :  { %v3512_v49 = vmul.f32 %v5280_v8, %v5276_v18  ;;  %v5282_v33 = vpop.eup %5281 }
 0xf7a   :  { %v3511_v28 = vmul.f32 %v5282_v33, %v6306_v42 }
 0xf7b   :  { %v5284_v63 = vpop.eup %5283 }
 0xf7c   :  { %v3513_v60 = vadd.f32 %v3512_v49, %v3511_v28 }
 0xf7e   :  { %5285 = vtanh.f32 %v3513_v60 }
 0xf88   :  { %v5286_v23 = vpop.eup %5285 }
 0xf89   :  { %v3515_v40 = vmul.f32 %v5286_v23, %v5284_v63 }
 0xf8b   :  { %3585 = vmatmul.mubr.f32.vlgmr.msra.gmra.mrb[30].mxu0 %v3515_v40  ;;  %3656 = vmatmul.mubr.f32.vlgmr.msra.gmra.mrb[30].mxu1 %v3515_v40 }
0x105e   :  { %v3586_v54 = vpop.f32.mrb[30].mxu0  ;;  %v3657_v14 = vpop.f32.mrb[30].mxu1 }
0x105f   :  { %v4960_v27 = vadd.f32 %v3586_v54, %v6078_v7  ;;  %v3588_v24 = vpop.f32.mrb[31].mxu0  ;;  %v3659_v52 = vpop.f32.mrb[31].mxu1  ;;  %v4976_v30 = vadd.f32 %v3657_v14, %v6088_v32 }
0x1060   :  { %v4961_v2 = vadd.f32 %v3588_v24, %v6082_v21  ;;  %v4977_v59 = vadd.f32 %v3659_v52, %v6092_v31 }
0x1061   :  { %v3759_v38 = vmul.f32 -1.442695, %v4960_v27  ;;  %v3761_v5 = vmul.f32 -1.442695, %v4976_v30 }
0x1062   :  { %v3760_v41 = vmul.f32 -1.442695, %v4961_v2 }
0x1063   :  { %5287 = vpow2.f32 %v3759_v38 }
0x1064   :  { %5289 = vpow2.f32 %v3760_v41 }
0x1065   :  { %5291 = vtanh.f32 %v4977_v59 }
0x1066   :  { %5293 = vpow2.f32 %v3761_v5 }
0x106d   :  { %v5288_v55 = vpop.eup %5287 }
0x106e   :  { %v3675_v25 = vadd.f32 1.0, %v5288_v55  ;;  %v5290_v11 = vpop.eup %5289 }
0x106f   :  { %v3676_v7 = vadd.f32 1.0, %v5290_v11  ;;  %v5292_v47 = vpop.eup %5291 }
0x1070   :  { %5295 = vrcp.f32 %v3675_v25  ;;  %v5294_v50 = vpop.eup %5293 }
0x1071   :  { %5297 = vrcp.f32 %v3676_v7  ;;  %v3677_v13 = vadd.f32 1.0, %v5294_v50 }
0x1073   :  { %5299 = vrcp.f32 %v3677_v13 }
0x107a   :  { %v5296_v21 = vpop.eup %5295 }
0x107b   :  { %v3686_v56 = vmul.f32 %v5296_v21, %v5292_v47  ;;  %v5298_v10 = vpop.eup %5297 }
0x107c   :  { %v3685_v43 = vmul.f32 %v5298_v10, %v3513_v60 }
0x107d   :  { %v5300_v32 = vpop.eup %5299 }
0x107e   :  { %v3687_v19 = vadd.f32 %v3686_v56, %v3685_v43 }
0x1080   :  { %5301 = vtanh.f32 %v3687_v19  ;;  %3702 = vst [vmem:[%s6361_s5 + $0x8] sm:$0xff] %v3687_v19 }
0x108a   :  { %v5302_v31 = vpop.eup %5301 }
0x108b   :  { %v3689_v45 = vmul.f32 %v5302_v31, %v5300_v32 }
0x108d   :  { %3698 = vst [vmem:[%s6360_s4 + $0x8] sm:$0xff] %v3689_v45 }
0x108e   :  { %3711 = vsyncpa [#allocation7], 1 }
0x108f   :  { %3712 = vsyncpa [#allocation9], 1 }

</bundles_post_ra>
